<compile_context>
chip_gen: v6e
topology: v6e:2x2x1
jax: 0.10.0
libtpu: 0.0.40
codegen_flags: <defaults>
</compile_context>

<pallas_src>
import functools
import math

import numpy as np
import jax
import jax.numpy as jnp
from jax import lax
from jax.experimental import pallas as pl
from jax.experimental.pallas import tpu as pltpu


# (in_ch, out_ch, kernel, stride, padding, leaky_relu_after) -- fixed by the
# PyTorch module; 32x32 inputs give spatial sizes 32 -> 16 -> 8 -> 4 -> 1.
LAYER_CFG = [
    (3, 8, 4, 2, 1, True),
    (8, 16, 4, 2, 1, True),
    (16, 32, 4, 2, 1, True),
    (32, 1, 4, 1, 0, False),
]
K = 4                                   # every kernel is 4x4
ICP0 = 8                                # layer-1 in-channels zero-padded 3 -> 8
_ICPS = (ICP0, 8, 16)                   # (padded) in-channels of the 3 s=2 convs
_OCS = (8, 16, 32)                      # their out-channels
_WPS = (34, 18, 10)                     # padded input widths
_OHS = (16, 8, 4)                       # output spatial sizes
_CANVAS = ((18, 1), (10, 1), (4, 0))    # (next padded width, pad offset)
_QS = tuple(wp * wp - 3 * wp - 3 for wp in _WPS)   # 1051, 267, 67
_LS = tuple(cw * cw for cw, _ in _CANVAS)          # 324, 100, 16


# ----------------------------------------------------------------------------
# Fused kernel: NB images per grid step
# ----------------------------------------------------------------------------
def _disc_kernel(x_ref, w1, w2, w3, sel1, sel2, sel3, bm1, bm2, bm3,
                 w4t, gsum, b4, out_ref, im1, im2, im3, v1, v2, v3, *, nb):
    acts = x_ref[...]                                   # (nb*8, 1156) f32
    layers = ((w1, sel1, bm1, im1, v1, _ICPS[0], _OCS[0], _WPS[0], _QS[0]),
              (w2, sel2, bm2, im2, v2, _ICPS[1], _OCS[1], _WPS[1], _QS[1]),
              (w3, sel3, bm3, im3, v3, _ICPS[2], _OCS[2], _WPS[2], _QS[2]))
    for w_ref, sel_ref, bm_ref, im_ref, v_ref, icp, oc, wp, q in layers:
        w = w_ref[...]                                  # (oc, 16*icp) bf16
        for n in range(nb):
            a = acts[n * icp:(n + 1) * icp, :]          # (icp, wp*wp) f32
            # im2col: 16 static lane-shifted copies stacked at 8-aligned
            # sublane offsets of a VMEM scratch.
            for kh in range(K):
                for kw in range(K):
                    t = kh * K + kw
                    s = kh * wp + kw
                    im_ref[t * icp:(t + 1) * icp, :] = a[:, s:s + q]
            # ONE deep-contraction weight matmul per image:
            #   (oc, 16*icp) @ (16*icp, q)   with 16*icp = 128/128/256
            v_ref[n * oc:(n + 1) * oc, :] = jnp.dot(
                w, im_ref[...].astype(jnp.bfloat16),
                preferred_element_type=jnp.float32)
        # Batched stride-2 selection + scatter into the next layer's zero-padded
        # flattened canvas: (nb*oc, q) @ (q, L).  Bias only at interior canvas
        # positions; LeakyReLU(0)=0 keeps the pad ring exactly zero.
        pre = jnp.dot(v_ref[...].astype(jnp.bfloat16), sel_ref[...],
                      preferred_element_type=jnp.float32) + bm_ref[...]
        acts = jnp.where(pre >= 0.0, pre, 0.2 * pre)    # (nb*oc, L) f32

    # Final Conv2d(32 -> 1, k=4, s=1, p=0) on the 4x4 maps: elementwise mul +
    # lane reduce + tiny group-sum matmul -> one (nb, 1) result per step.
    prod = acts * w4t[...]                              # (nb*32, 16)
    rowsum = jnp.sum(prod, axis=1, keepdims=True)       # (nb*32, 1)
    res = jnp.dot(gsum[...], rowsum,
                  preferred_element_type=jnp.float32) + b4[...]   # (nb, 1)
    out_ref[...] = res.reshape(1, nb, 1)


# ----------------------------------------------------------------------------
# Host-side (one-time) parameter repacking
# ----------------------------------------------------------------------------
def _make_sel(wp, oh, canvas_w, off, q):
    """0/1 matrix: row 2*i*wp+2*j -> column (i+off)*canvas_w+(j+off)."""
    sel = np.zeros((q, canvas_w * canvas_w), np.float32)
    interior = np.zeros((canvas_w * canvas_w,), np.float32)
    for i in range(oh):
        for j in range(oh):
            p = (i + off) * canvas_w + (j + off)
            sel[2 * i * wp + 2 * j, p] = 1.0
            interior[p] = 1.0
    return sel, interior


def prepare_params(params, nb):
    (w1, b1), (w2, b2), (w3, b3), (w4, b4) = params

    def pack_w(w, icp):                 # OIHW -> (OC, K*K*ICp), tap-major cols
        oc, ic, kh, kw = w.shape
        wt = jnp.transpose(w, (0, 2, 3, 1)).reshape(oc, kh * kw, ic)
        if icp > ic:
            wt = jnp.pad(wt, ((0, 0), (0, 0), (0, icp - ic)))
        return wt.reshape(oc, kh * kw * icp).astype(jnp.bfloat16)

    ws = [pack_w(w1, _ICPS[0]), pack_w(w2, _ICPS[1]), pack_w(w3, _ICPS[2])]
    sels, bms = [], []
    for wp, oh, (cw, off), q, b in zip(_WPS, _OHS, _CANVAS, _QS, (b1, b2, b3)):
        sel, interior = _make_sel(wp, oh, cw, off, q)
        sels.append(jnp.asarray(sel, jnp.bfloat16))          # 0/1 exact in bf16
        bm = b[:, None] * jnp.asarray(interior)[None, :]     # (oc, L) f32
        bms.append(jnp.tile(bm, (nb, 1)).astype(jnp.float32))

    w4t = jnp.tile(w4[0].reshape(w4.shape[1], K * K), (nb, 1)).astype(jnp.float32)
    gsum = jnp.asarray(np.kron(np.eye(nb, dtype=np.float32),
                               np.ones((1, w4.shape[1]), np.float32)))
    return (ws[0], ws[1], ws[2], sels[0], sels[1], sels[2],
            bms[0], bms[1], bms[2], w4t, gsum,
            b4.reshape(1, 1).astype(jnp.float32))


# ----------------------------------------------------------------------------
# Forward pass: pad/flatten input (tiny XLA op) + single fused pallas_call
# ----------------------------------------------------------------------------
def discriminator_forward(x, params, nb_per_step=None):
    B, C = x.shape[0], x.shape[1]
    if nb_per_step is None:
        # NB images per grid step; keeps >= 2 steps for small B (v7x: 2 TCs),
        # and NB<=8 keeps Sel-matmul LHS rows at 64/128/256.
        nb_per_step = max(1, min(8, B // 2))
    nb = int(nb_per_step)
    g = -(-B // nb)                     # number of grid steps
    bp = g * nb                         # padded batch
    lp0 = _WPS[0] * _WPS[0]             # 1156

    # Zero-pad batch to bp, channels 3 -> 8, spatial 32 -> 34; flatten so rows
    # are (image, channel) pairs and lanes are padded spatial positions.
    xp = jnp.pad(x.astype(jnp.float32),
                 ((0, bp - B), (0, ICP0 - C), (1, 1), (1, 1)))
    x2d = xp.reshape(bp * ICP0, lp0)

    prepped = prepare_params(params, nb)

    # Cost estimate: fused-matmul flops per image; constants counted once.
    flops_img = 2 * 32 * (K * K) + 2 * 32
    for icp, oc, q, l_out in zip(_ICPS, _OCS, _QS, _LS):
        flops_img += 2 * oc * (K * K * icp) * q + 2 * oc * q * l_out
    const_bytes = sum(int(a.size) * int(a.dtype.itemsize) for a in prepped)
    bytes_accessed = int(x2d.size) * 4 + const_bytes + bp * 4

    out = pl.pallas_call(
        functools.partial(_disc_kernel, nb=nb),
        out_shape=jax.ShapeDtypeStruct((g, nb, 1), jnp.float32),
        grid=(g,),
        in_specs=[pl.BlockSpec((nb * ICP0, lp0), lambda i: (i, 0))]
                 + [pl.BlockSpec(a.shape, lambda i: (0, 0)) for a in prepped],
        out_specs=pl.BlockSpec((1, nb, 1), lambda i: (i, 0, 0)),
        scratch_shapes=[pltpu.VMEM((K * K * _ICPS[l], _QS[l]), jnp.float32)
                        for l in range(3)]
                       + [pltpu.VMEM((nb * _OCS[l], _QS[l]), jnp.float32)
                          for l in range(3)],
        compiler_params=pltpu.CompilerParams(
            dimension_semantics=("parallel",)),
        cost_estimate=pl.CostEstimate(flops=int(flops_img * bp),
                                      transcendentals=0,
                                      bytes_accessed=int(bytes_accessed)),
    )(x2d, *prepped)
    return out.reshape(bp, 1, 1, 1)[:B]


# ----------------------------------------------------------------------------
# Parameter init (deterministic, PyTorch-default-style uniform bounds)
# ----------------------------------------------------------------------------
def init_params(key):
    params = []
    for (ic, oc, k, _s, _p, _act) in LAYER_CFG:
        key, kw_, kb_ = jax.random.split(key, 3)
        fan_in = ic * k * k
        bound = 1.0 / math.sqrt(fan_in)
        w = jax.random.uniform(kw_, (oc, ic, k, k), jnp.float32, -bound, bound)
        b = jax.random.uniform(kb_, (oc,), jnp.float32, -bound, bound)
        params.append((w, b))
    return params


# ----------------------------------------------------------------------------
# Pure-JAX reference (correctness check)
# ----------------------------------------------------------------------------
def discriminator_reference(x, params):
    for (w, b), (_ic, _oc, _k, s, p, act) in zip(params, LAYER_CFG):
        x = lax.conv_general_dilated(
            x, w, window_strides=(s, s), padding=[(p, p), (p, p)],
            dimension_numbers=('NCHW', 'OIHW', 'NCHW'))
        x = x + b.reshape(1, -1, 1, 1)
        if act:
            x = jnp.where(x >= 0.0, x, 0.2 * x)
    return x


if __name__ == "__main__":
    key = jax.random.PRNGKey(0)
    key, kx = jax.random.split(key)
    params = init_params(key)

    # 32x32 RGB images: 32 -> 16 -> 8 -> 4 -> 1, final output (B, 1, 1, 1).
    # B=2 exercises nb=1 (2 grid steps); B=8 exercises nb=4 batching per step.
    for batch in (2, 8):
        x = jax.random.normal(jax.random.fold_in(kx, batch),
                              (batch, 3, 32, 32), jnp.float32)
        out = jax.block_until_ready(discriminator_forward(x, params))
        ref = jax.block_until_ready(discriminator_reference(x, params))
        assert out.shape == (batch, 1, 1, 1), out.shape
        # bf16 MXU operands (f32 accumulate) -> tolerance loosened vs pure f32.
        assert jnp.allclose(out, ref, atol=1e-2, rtol=1e-2), (batch, out, ref)
    print("KERNEL_OK")
</pallas_src>

<mosaic_0001>
module attributes {stable_mosaic.version = 11 : i64} {
  func.func @_disc_kernel(%arg0: i32, %arg1: memref<8x1156xf32, #tpu.memory_space<vmem>>, %arg2: memref<8x128xbf16, #tpu.memory_space<vmem>>, %arg3: memref<16x128xbf16, #tpu.memory_space<vmem>>, %arg4: memref<32x256xbf16, #tpu.memory_space<vmem>>, %arg5: memref<1051x324xbf16, #tpu.memory_space<vmem>>, %arg6: memref<267x100xbf16, #tpu.memory_space<vmem>>, %arg7: memref<67x16xbf16, #tpu.memory_space<vmem>>, %arg8: memref<8x324xf32, #tpu.memory_space<vmem>>, %arg9: memref<16x100xf32, #tpu.memory_space<vmem>>, %arg10: memref<32x16xf32, #tpu.memory_space<vmem>>, %arg11: memref<32x16xf32, #tpu.memory_space<vmem>>, %arg12: memref<1x32xf32, #tpu.memory_space<vmem>>, %arg13: memref<1x1xf32, #tpu.memory_space<vmem>>, %arg14: memref<1x1x1xf32, #tpu.memory_space<vmem>>, %arg15: memref<128x1051xf32, #tpu.memory_space<vmem>>, %arg16: memref<128x267xf32, #tpu.memory_space<vmem>>, %arg17: memref<256x67xf32, #tpu.memory_space<vmem>>, %arg18: memref<8x1051xf32, #tpu.memory_space<vmem>>, %arg19: memref<16x267xf32, #tpu.memory_space<vmem>>, %arg20: memref<32x67xf32, #tpu.memory_space<vmem>>) attributes {dimension_semantics = [#tpu.dimension_semantics<parallel>], iteration_bounds = array<i64: 2>, scalar_prefetch = 0 : i64, scratch_operands = 6 : i64, tpu.core_type = #tpu.core_type<tc>, window_params = [{transform_indices = @transform_0, window_bounds = array<i64: 8, 1156>}, {pipeline_mode = #tpu.pipeline_mode<synchronous>, transform_indices = @transform_1, window_bounds = array<i64: 8, 128>}, {pipeline_mode = #tpu.pipeline_mode<synchronous>, transform_indices = @transform_2, window_bounds = array<i64: 16, 128>}, {pipeline_mode = #tpu.pipeline_mode<synchronous>, transform_indices = @transform_3, window_bounds = array<i64: 32, 256>}, {pipeline_mode = #tpu.pipeline_mode<synchronous>, transform_indices = @transform_4, window_bounds = array<i64: 1051, 324>}, {pipeline_mode = #tpu.pipeline_mode<synchronous>, transform_indices = @transform_5, window_bounds = array<i64: 267, 100>}, {pipeline_mode = #tpu.pipeline_mode<synchronous>, transform_indices = @transform_6, window_bounds = array<i64: 67, 16>}, {pipeline_mode = #tpu.pipeline_mode<synchronous>, transform_indices = @transform_7, window_bounds = array<i64: 8, 324>}, {pipeline_mode = #tpu.pipeline_mode<synchronous>, transform_indices = @transform_8, window_bounds = array<i64: 16, 100>}, {pipeline_mode = #tpu.pipeline_mode<synchronous>, transform_indices = @transform_9, window_bounds = array<i64: 32, 16>}, {pipeline_mode = #tpu.pipeline_mode<synchronous>, transform_indices = @transform_10, window_bounds = array<i64: 32, 16>}, {pipeline_mode = #tpu.pipeline_mode<synchronous>, transform_indices = @transform_11, window_bounds = array<i64: 1, 32>}, {pipeline_mode = #tpu.pipeline_mode<synchronous>, transform_indices = @transform_12, window_bounds = array<i64: 1, 1>}, {transform_indices = @transform_13, window_bounds = array<i64: 1, 1, 1>}]} {
    %c0 = arith.constant 0 : index
    %c0_0 = arith.constant 0 : index
    %0 = vector.load %arg1[%c0, %c0_0] : memref<8x1156xf32, #tpu.memory_space<vmem>>, vector<8x1156xf32>
    %c0_1 = arith.constant 0 : index
    %c0_2 = arith.constant 0 : index
    %1 = vector.load %arg2[%c0_1, %c0_2] : memref<8x128xbf16, #tpu.memory_space<vmem>>, vector<8x128xbf16>
    %2 = vector.extract_strided_slice %0 {offsets = [0, 0], sizes = [8, 1051], strides = [1, 1]} : vector<8x1156xf32> to vector<8x1051xf32>
    %c0_3 = arith.constant 0 : index
    %c0_4 = arith.constant 0 : index
    %3 = vector.load %arg15[%c0_3, %c0_4] : memref<128x1051xf32, #tpu.memory_space<vmem>>, vector<8x1051xf32>
    tpu.vector_store %arg15[%c0_3, %c0_4], %2 {strides = array<i32>} : memref<128x1051xf32, #tpu.memory_space<vmem>>, vector<8x1051xf32>,
    %4 = vector.extract_strided_slice %0 {offsets = [0, 1], sizes = [8, 1051], strides = [1, 1]} : vector<8x1156xf32> to vector<8x1051xf32>
    %c8 = arith.constant 8 : index
    %c0_5 = arith.constant 0 : index
    %5 = vector.load %arg15[%c8, %c0_5] : memref<128x1051xf32, #tpu.memory_space<vmem>>, vector<8x1051xf32>
    tpu.vector_store %arg15[%c8, %c0_5], %4 {strides = array<i32>} : memref<128x1051xf32, #tpu.memory_space<vmem>>, vector<8x1051xf32>,
    %6 = vector.extract_strided_slice %0 {offsets = [0, 2], sizes = [8, 1051], strides = [1, 1]} : vector<8x1156xf32> to vector<8x1051xf32>
    %c16 = arith.constant 16 : index
    %c0_6 = arith.constant 0 : index
    %7 = vector.load %arg15[%c16, %c0_6] : memref<128x1051xf32, #tpu.memory_space<vmem>>, vector<8x1051xf32>
    tpu.vector_store %arg15[%c16, %c0_6], %6 {strides = array<i32>} : memref<128x1051xf32, #tpu.memory_space<vmem>>, vector<8x1051xf32>,
    %8 = vector.extract_strided_slice %0 {offsets = [0, 3], sizes = [8, 1051], strides = [1, 1]} : vector<8x1156xf32> to vector<8x1051xf32>
    %c24 = arith.constant 24 : index
    %c0_7 = arith.constant 0 : index
    %9 = vector.load %arg15[%c24, %c0_7] : memref<128x1051xf32, #tpu.memory_space<vmem>>, vector<8x1051xf32>
    tpu.vector_store %arg15[%c24, %c0_7], %8 {strides = array<i32>} : memref<128x1051xf32, #tpu.memory_space<vmem>>, vector<8x1051xf32>,
    %10 = vector.extract_strided_slice %0 {offsets = [0, 34], sizes = [8, 1051], strides = [1, 1]} : vector<8x1156xf32> to vector<8x1051xf32>
    %c32 = arith.constant 32 : index
    %c0_8 = arith.constant 0 : index
    %11 = vector.load %arg15[%c32, %c0_8] : memref<128x1051xf32, #tpu.memory_space<vmem>>, vector<8x1051xf32>
    tpu.vector_store %arg15[%c32, %c0_8], %10 {strides = array<i32>} : memref<128x1051xf32, #tpu.memory_space<vmem>>, vector<8x1051xf32>,
    %12 = vector.extract_strided_slice %0 {offsets = [0, 35], sizes = [8, 1051], strides = [1, 1]} : vector<8x1156xf32> to vector<8x1051xf32>
    %c40 = arith.constant 40 : index
    %c0_9 = arith.constant 0 : index
    %13 = vector.load %arg15[%c40, %c0_9] : memref<128x1051xf32, #tpu.memory_space<vmem>>, vector<8x1051xf32>
    tpu.vector_store %arg15[%c40, %c0_9], %12 {strides = array<i32>} : memref<128x1051xf32, #tpu.memory_space<vmem>>, vector<8x1051xf32>,
    %14 = vector.extract_strided_slice %0 {offsets = [0, 36], sizes = [8, 1051], strides = [1, 1]} : vector<8x1156xf32> to vector<8x1051xf32>
    %c48 = arith.constant 48 : index
    %c0_10 = arith.constant 0 : index
    %15 = vector.load %arg15[%c48, %c0_10] : memref<128x1051xf32, #tpu.memory_space<vmem>>, vector<8x1051xf32>
    tpu.vector_store %arg15[%c48, %c0_10], %14 {strides = array<i32>} : memref<128x1051xf32, #tpu.memory_space<vmem>>, vector<8x1051xf32>,
    %16 = vector.extract_strided_slice %0 {offsets = [0, 37], sizes = [8, 1051], strides = [1, 1]} : vector<8x1156xf32> to vector<8x1051xf32>
    %c56 = arith.constant 56 : index
    %c0_11 = arith.constant 0 : index
    %17 = vector.load %arg15[%c56, %c0_11] : memref<128x1051xf32, #tpu.memory_space<vmem>>, vector<8x1051xf32>
    tpu.vector_store %arg15[%c56, %c0_11], %16 {strides = array<i32>} : memref<128x1051xf32, #tpu.memory_space<vmem>>, vector<8x1051xf32>,
    %18 = vector.extract_strided_slice %0 {offsets = [0, 68], sizes = [8, 1051], strides = [1, 1]} : vector<8x1156xf32> to vector<8x1051xf32>
    %c64 = arith.constant 64 : index
    %c0_12 = arith.constant 0 : index
    %19 = vector.load %arg15[%c64, %c0_12] : memref<128x1051xf32, #tpu.memory_space<vmem>>, vector<8x1051xf32>
    tpu.vector_store %arg15[%c64, %c0_12], %18 {strides = array<i32>} : memref<128x1051xf32, #tpu.memory_space<vmem>>, vector<8x1051xf32>,
    %20 = vector.extract_strided_slice %0 {offsets = [0, 69], sizes = [8, 1051], strides = [1, 1]} : vector<8x1156xf32> to vector<8x1051xf32>
    %c72 = arith.constant 72 : index
    %c0_13 = arith.constant 0 : index
    %21 = vector.load %arg15[%c72, %c0_13] : memref<128x1051xf32, #tpu.memory_space<vmem>>, vector<8x1051xf32>
    tpu.vector_store %arg15[%c72, %c0_13], %20 {strides = array<i32>} : memref<128x1051xf32, #tpu.memory_space<vmem>>, vector<8x1051xf32>,
    %22 = vector.extract_strided_slice %0 {offsets = [0, 70], sizes = [8, 1051], strides = [1, 1]} : vector<8x1156xf32> to vector<8x1051xf32>
    %c80 = arith.constant 80 : index
    %c0_14 = arith.constant 0 : index
    %23 = vector.load %arg15[%c80, %c0_14] : memref<128x1051xf32, #tpu.memory_space<vmem>>, vector<8x1051xf32>
    tpu.vector_store %arg15[%c80, %c0_14], %22 {strides = array<i32>} : memref<128x1051xf32, #tpu.memory_space<vmem>>, vector<8x1051xf32>,
    %24 = vector.extract_strided_slice %0 {offsets = [0, 71], sizes = [8, 1051], strides = [1, 1]} : vector<8x1156xf32> to vector<8x1051xf32>
    %c88 = arith.constant 88 : index
    %c0_15 = arith.constant 0 : index
    %25 = vector.load %arg15[%c88, %c0_15] : memref<128x1051xf32, #tpu.memory_space<vmem>>, vector<8x1051xf32>
    tpu.vector_store %arg15[%c88, %c0_15], %24 {strides = array<i32>} : memref<128x1051xf32, #tpu.memory_space<vmem>>, vector<8x1051xf32>,
    %26 = vector.extract_strided_slice %0 {offsets = [0, 102], sizes = [8, 1051], strides = [1, 1]} : vector<8x1156xf32> to vector<8x1051xf32>
    %c96 = arith.constant 96 : index
    %c0_16 = arith.constant 0 : index
    %27 = vector.load %arg15[%c96, %c0_16] : memref<128x1051xf32, #tpu.memory_space<vmem>>, vector<8x1051xf32>
    tpu.vector_store %arg15[%c96, %c0_16], %26 {strides = array<i32>} : memref<128x1051xf32, #tpu.memory_space<vmem>>, vector<8x1051xf32>,
    %28 = vector.extract_strided_slice %0 {offsets = [0, 103], sizes = [8, 1051], strides = [1, 1]} : vector<8x1156xf32> to vector<8x1051xf32>
    %c104 = arith.constant 104 : index
    %c0_17 = arith.constant 0 : index
    %29 = vector.load %arg15[%c104, %c0_17] : memref<128x1051xf32, #tpu.memory_space<vmem>>, vector<8x1051xf32>
    tpu.vector_store %arg15[%c104, %c0_17], %28 {strides = array<i32>} : memref<128x1051xf32, #tpu.memory_space<vmem>>, vector<8x1051xf32>,
    %30 = vector.extract_strided_slice %0 {offsets = [0, 104], sizes = [8, 1051], strides = [1, 1]} : vector<8x1156xf32> to vector<8x1051xf32>
    %c112 = arith.constant 112 : index
    %c0_18 = arith.constant 0 : index
    %31 = vector.load %arg15[%c112, %c0_18] : memref<128x1051xf32, #tpu.memory_space<vmem>>, vector<8x1051xf32>
    tpu.vector_store %arg15[%c112, %c0_18], %30 {strides = array<i32>} : memref<128x1051xf32, #tpu.memory_space<vmem>>, vector<8x1051xf32>,
    %32 = vector.extract_strided_slice %0 {offsets = [0, 105], sizes = [8, 1051], strides = [1, 1]} : vector<8x1156xf32> to vector<8x1051xf32>
    %c120 = arith.constant 120 : index
    %c0_19 = arith.constant 0 : index
    %33 = vector.load %arg15[%c120, %c0_19] : memref<128x1051xf32, #tpu.memory_space<vmem>>, vector<8x1051xf32>
    tpu.vector_store %arg15[%c120, %c0_19], %32 {strides = array<i32>} : memref<128x1051xf32, #tpu.memory_space<vmem>>, vector<8x1051xf32>,
    %c0_20 = arith.constant 0 : index
    %c0_21 = arith.constant 0 : index
    %34 = vector.load %arg15[%c0_20, %c0_21] : memref<128x1051xf32, #tpu.memory_space<vmem>>, vector<128x1051xf32>
    %35 = arith.truncf %34 : vector<128x1051xf32> to vector<128x1051xbf16>
    %cst = arith.constant dense<0.000000e+00> : vector<8x1051xf32>
    %36 = tpu.matmul %1, %35, %cst {dimension_numbers = #tpu.dot_dimension_numbers<[1], [0], [0], [1], [0, 0, 1, 1], [], []>} : vector<8x128xbf16>, vector<128x1051xbf16>, vector<8x1051xf32> -> vector<8x1051xf32>
    %c0_22 = arith.constant 0 : index
    %c0_23 = arith.constant 0 : index
    %37 = vector.load %arg18[%c0_22, %c0_23] : memref<8x1051xf32, #tpu.memory_space<vmem>>, vector<8x1051xf32>
    tpu.vector_store %arg18[%c0_22, %c0_23], %36 {strides = array<i32>} : memref<8x1051xf32, #tpu.memory_space<vmem>>, vector<8x1051xf32>,
    %c0_24 = arith.constant 0 : index
    %c0_25 = arith.constant 0 : index
    %38 = vector.load %arg18[%c0_24, %c0_25] : memref<8x1051xf32, #tpu.memory_space<vmem>>, vector<8x1051xf32>
    %39 = arith.truncf %38 : vector<8x1051xf32> to vector<8x1051xbf16>
    %c0_26 = arith.constant 0 : index
    %c0_27 = arith.constant 0 : index
    %40 = vector.load %arg5[%c0_26, %c0_27] : memref<1051x324xbf16, #tpu.memory_space<vmem>>, vector<1051x324xbf16>
    %cst_28 = arith.constant dense<0.000000e+00> : vector<8x324xf32>
    %41 = tpu.matmul %39, %40, %cst_28 {dimension_numbers = #tpu.dot_dimension_numbers<[1], [0], [0], [1], [0, 0, 1, 1], [], []>} : vector<8x1051xbf16>, vector<1051x324xbf16>, vector<8x324xf32> -> vector<8x324xf32>
    %c0_29 = arith.constant 0 : index
    %c0_30 = arith.constant 0 : index
    %42 = vector.load %arg8[%c0_29, %c0_30] : memref<8x324xf32, #tpu.memory_space<vmem>>, vector<8x324xf32>
    %43 = arith.addf %41, %42 : vector<8x324xf32>
    %cst_31 = arith.constant 0.000000e+00 : f32
    %44 = vector.broadcast %cst_31 : f32 to vector<8x324xf32>
    %45 = arith.cmpf oge, %43, %44 : vector<8x324xf32>
    %cst_32 = arith.constant 2.000000e-01 : f32
    %46 = vector.broadcast %cst_32 : f32 to vector<8x324xf32>
    %47 = arith.mulf %46, %43 : vector<8x324xf32>
    %48 = arith.select %45, %43, %47 : vector<8x324xi1>, vector<8x324xf32>
    %c0_33 = arith.constant 0 : index
    %c0_34 = arith.constant 0 : index
    %49 = vector.load %arg3[%c0_33, %c0_34] : memref<16x128xbf16, #tpu.memory_space<vmem>>, vector<16x128xbf16>
    %50 = vector.extract_strided_slice %48 {offsets = [0, 0], sizes = [8, 267], strides = [1, 1]} : vector<8x324xf32> to vector<8x267xf32>
    %c0_35 = arith.constant 0 : index
    %c0_36 = arith.constant 0 : index
    %51 = vector.load %arg16[%c0_35, %c0_36] : memref<128x267xf32, #tpu.memory_space<vmem>>, vector<8x267xf32>
    tpu.vector_store %arg16[%c0_35, %c0_36], %50 {strides = array<i32>} : memref<128x267xf32, #tpu.memory_space<vmem>>, vector<8x267xf32>,
    %52 = vector.extract_strided_slice %48 {offsets = [0, 1], sizes = [8, 267], strides = [1, 1]} : vector<8x324xf32> to vector<8x267xf32>
    %c8_37 = arith.constant 8 : index
    %c0_38 = arith.constant 0 : index
    %53 = vector.load %arg16[%c8_37, %c0_38] : memref<128x267xf32, #tpu.memory_space<vmem>>, vector<8x267xf32>
    tpu.vector_store %arg16[%c8_37, %c0_38], %52 {strides = array<i32>} : memref<128x267xf32, #tpu.memory_space<vmem>>, vector<8x267xf32>,
    %54 = vector.extract_strided_slice %48 {offsets = [0, 2], sizes = [8, 267], strides = [1, 1]} : vector<8x324xf32> to vector<8x267xf32>
    %c16_39 = arith.constant 16 : index
    %c0_40 = arith.constant 0 : index
    %55 = vector.load %arg16[%c16_39, %c0_40] : memref<128x267xf32, #tpu.memory_space<vmem>>, vector<8x267xf32>
    tpu.vector_store %arg16[%c16_39, %c0_40], %54 {strides = array<i32>} : memref<128x267xf32, #tpu.memory_space<vmem>>, vector<8x267xf32>,
    %56 = vector.extract_strided_slice %48 {offsets = [0, 3], sizes = [8, 267], strides = [1, 1]} : vector<8x324xf32> to vector<8x267xf32>
    %c24_41 = arith.constant 24 : index
    %c0_42 = arith.constant 0 : index
    %57 = vector.load %arg16[%c24_41, %c0_42] : memref<128x267xf32, #tpu.memory_space<vmem>>, vector<8x267xf32>
    tpu.vector_store %arg16[%c24_41, %c0_42], %56 {strides = array<i32>} : memref<128x267xf32, #tpu.memory_space<vmem>>, vector<8x267xf32>,
    %58 = vector.extract_strided_slice %48 {offsets = [0, 18], sizes = [8, 267], strides = [1, 1]} : vector<8x324xf32> to vector<8x267xf32>
    %c32_43 = arith.constant 32 : index
    %c0_44 = arith.constant 0 : index
    %59 = vector.load %arg16[%c32_43, %c0_44] : memref<128x267xf32, #tpu.memory_space<vmem>>, vector<8x267xf32>
    tpu.vector_store %arg16[%c32_43, %c0_44], %58 {strides = array<i32>} : memref<128x267xf32, #tpu.memory_space<vmem>>, vector<8x267xf32>,
    %60 = vector.extract_strided_slice %48 {offsets = [0, 19], sizes = [8, 267], strides = [1, 1]} : vector<8x324xf32> to vector<8x267xf32>
    %c40_45 = arith.constant 40 : index
    %c0_46 = arith.constant 0 : index
    %61 = vector.load %arg16[%c40_45, %c0_46] : memref<128x267xf32, #tpu.memory_space<vmem>>, vector<8x267xf32>
    tpu.vector_store %arg16[%c40_45, %c0_46], %60 {strides = array<i32>} : memref<128x267xf32, #tpu.memory_space<vmem>>, vector<8x267xf32>,
    %62 = vector.extract_strided_slice %48 {offsets = [0, 20], sizes = [8, 267], strides = [1, 1]} : vector<8x324xf32> to vector<8x267xf32>
    %c48_47 = arith.constant 48 : index
    %c0_48 = arith.constant 0 : index
    %63 = vector.load %arg16[%c48_47, %c0_48] : memref<128x267xf32, #tpu.memory_space<vmem>>, vector<8x267xf32>
    tpu.vector_store %arg16[%c48_47, %c0_48], %62 {strides = array<i32>} : memref<128x267xf32, #tpu.memory_space<vmem>>, vector<8x267xf32>,
    %64 = vector.extract_strided_slice %48 {offsets = [0, 21], sizes = [8, 267], strides = [1, 1]} : vector<8x324xf32> to vector<8x267xf32>
    %c56_49 = arith.constant 56 : index
    %c0_50 = arith.constant 0 : index
    %65 = vector.load %arg16[%c56_49, %c0_50] : memref<128x267xf32, #tpu.memory_space<vmem>>, vector<8x267xf32>
    tpu.vector_store %arg16[%c56_49, %c0_50], %64 {strides = array<i32>} : memref<128x267xf32, #tpu.memory_space<vmem>>, vector<8x267xf32>,
    %66 = vector.extract_strided_slice %48 {offsets = [0, 36], sizes = [8, 267], strides = [1, 1]} : vector<8x324xf32> to vector<8x267xf32>
    %c64_51 = arith.constant 64 : index
    %c0_52 = arith.constant 0 : index
    %67 = vector.load %arg16[%c64_51, %c0_52] : memref<128x267xf32, #tpu.memory_space<vmem>>, vector<8x267xf32>
    tpu.vector_store %arg16[%c64_51, %c0_52], %66 {strides = array<i32>} : memref<128x267xf32, #tpu.memory_space<vmem>>, vector<8x267xf32>,
    %68 = vector.extract_strided_slice %48 {offsets = [0, 37], sizes = [8, 267], strides = [1, 1]} : vector<8x324xf32> to vector<8x267xf32>
    %c72_53 = arith.constant 72 : index
    %c0_54 = arith.constant 0 : index
    %69 = vector.load %arg16[%c72_53, %c0_54] : memref<128x267xf32, #tpu.memory_space<vmem>>, vector<8x267xf32>
    tpu.vector_store %arg16[%c72_53, %c0_54], %68 {strides = array<i32>} : memref<128x267xf32, #tpu.memory_space<vmem>>, vector<8x267xf32>,
    %70 = vector.extract_strided_slice %48 {offsets = [0, 38], sizes = [8, 267], strides = [1, 1]} : vector<8x324xf32> to vector<8x267xf32>
    %c80_55 = arith.constant 80 : index
    %c0_56 = arith.constant 0 : index
    %71 = vector.load %arg16[%c80_55, %c0_56] : memref<128x267xf32, #tpu.memory_space<vmem>>, vector<8x267xf32>
    tpu.vector_store %arg16[%c80_55, %c0_56], %70 {strides = array<i32>} : memref<128x267xf32, #tpu.memory_space<vmem>>, vector<8x267xf32>,
    %72 = vector.extract_strided_slice %48 {offsets = [0, 39], sizes = [8, 267], strides = [1, 1]} : vector<8x324xf32> to vector<8x267xf32>
    %c88_57 = arith.constant 88 : index
    %c0_58 = arith.constant 0 : index
    %73 = vector.load %arg16[%c88_57, %c0_58] : memref<128x267xf32, #tpu.memory_space<vmem>>, vector<8x267xf32>
    tpu.vector_store %arg16[%c88_57, %c0_58], %72 {strides = array<i32>} : memref<128x267xf32, #tpu.memory_space<vmem>>, vector<8x267xf32>,
    %74 = vector.extract_strided_slice %48 {offsets = [0, 54], sizes = [8, 267], strides = [1, 1]} : vector<8x324xf32> to vector<8x267xf32>
    %c96_59 = arith.constant 96 : index
    %c0_60 = arith.constant 0 : index
    %75 = vector.load %arg16[%c96_59, %c0_60] : memref<128x267xf32, #tpu.memory_space<vmem>>, vector<8x267xf32>
    tpu.vector_store %arg16[%c96_59, %c0_60], %74 {strides = array<i32>} : memref<128x267xf32, #tpu.memory_space<vmem>>, vector<8x267xf32>,
    %76 = vector.extract_strided_slice %48 {offsets = [0, 55], sizes = [8, 267], strides = [1, 1]} : vector<8x324xf32> to vector<8x267xf32>
    %c104_61 = arith.constant 104 : index
    %c0_62 = arith.constant 0 : index
    %77 = vector.load %arg16[%c104_61, %c0_62] : memref<128x267xf32, #tpu.memory_space<vmem>>, vector<8x267xf32>
    tpu.vector_store %arg16[%c104_61, %c0_62], %76 {strides = array<i32>} : memref<128x267xf32, #tpu.memory_space<vmem>>, vector<8x267xf32>,
    %78 = vector.extract_strided_slice %48 {offsets = [0, 56], sizes = [8, 267], strides = [1, 1]} : vector<8x324xf32> to vector<8x267xf32>
    %c112_63 = arith.constant 112 : index
    %c0_64 = arith.constant 0 : index
    %79 = vector.load %arg16[%c112_63, %c0_64] : memref<128x267xf32, #tpu.memory_space<vmem>>, vector<8x267xf32>
    tpu.vector_store %arg16[%c112_63, %c0_64], %78 {strides = array<i32>} : memref<128x267xf32, #tpu.memory_space<vmem>>, vector<8x267xf32>,
    %80 = vector.extract_strided_slice %48 {offsets = [0, 57], sizes = [8, 267], strides = [1, 1]} : vector<8x324xf32> to vector<8x267xf32>
    %c120_65 = arith.constant 120 : index
    %c0_66 = arith.constant 0 : index
    %81 = vector.load %arg16[%c120_65, %c0_66] : memref<128x267xf32, #tpu.memory_space<vmem>>, vector<8x267xf32>
    tpu.vector_store %arg16[%c120_65, %c0_66], %80 {strides = array<i32>} : memref<128x267xf32, #tpu.memory_space<vmem>>, vector<8x267xf32>,
    %c0_67 = arith.constant 0 : index
    %c0_68 = arith.constant 0 : index
    %82 = vector.load %arg16[%c0_67, %c0_68] : memref<128x267xf32, #tpu.memory_space<vmem>>, vector<128x267xf32>
    %83 = arith.truncf %82 : vector<128x267xf32> to vector<128x267xbf16>
    %cst_69 = arith.constant dense<0.000000e+00> : vector<16x267xf32>
    %84 = tpu.matmul %49, %83, %cst_69 {dimension_numbers = #tpu.dot_dimension_numbers<[1], [0], [0], [1], [0, 0, 1, 1], [], []>} : vector<16x128xbf16>, vector<128x267xbf16>, vector<16x267xf32> -> vector<16x267xf32>
    %c0_70 = arith.constant 0 : index
    %c0_71 = arith.constant 0 : index
    %85 = vector.load %arg19[%c0_70, %c0_71] : memref<16x267xf32, #tpu.memory_space<vmem>>, vector<16x267xf32>
    tpu.vector_store %arg19[%c0_70, %c0_71], %84 {strides = array<i32>} : memref<16x267xf32, #tpu.memory_space<vmem>>, vector<16x267xf32>,
    %c0_72 = arith.constant 0 : index
    %c0_73 = arith.constant 0 : index
    %86 = vector.load %arg19[%c0_72, %c0_73] : memref<16x267xf32, #tpu.memory_space<vmem>>, vector<16x267xf32>
    %87 = arith.truncf %86 : vector<16x267xf32> to vector<16x267xbf16>
    %c0_74 = arith.constant 0 : index
    %c0_75 = arith.constant 0 : index
    %88 = vector.load %arg6[%c0_74, %c0_75] : memref<267x100xbf16, #tpu.memory_space<vmem>>, vector<267x100xbf16>
    %cst_76 = arith.constant dense<0.000000e+00> : vector<16x100xf32>
    %89 = tpu.matmul %87, %88, %cst_76 {dimension_numbers = #tpu.dot_dimension_numbers<[1], [0], [0], [1], [0, 0, 1, 1], [], []>} : vector<16x267xbf16>, vector<267x100xbf16>, vector<16x100xf32> -> vector<16x100xf32>
    %c0_77 = arith.constant 0 : index
    %c0_78 = arith.constant 0 : index
    %90 = vector.load %arg9[%c0_77, %c0_78] : memref<16x100xf32, #tpu.memory_space<vmem>>, vector<16x100xf32>
    %91 = arith.addf %89, %90 : vector<16x100xf32>
    %cst_79 = arith.constant 0.000000e+00 : f32
    %92 = vector.broadcast %cst_79 : f32 to vector<16x100xf32>
    %93 = arith.cmpf oge, %91, %92 : vector<16x100xf32>
    %cst_80 = arith.constant 2.000000e-01 : f32
    %94 = vector.broadcast %cst_80 : f32 to vector<16x100xf32>
    %95 = arith.mulf %94, %91 : vector<16x100xf32>
    %96 = arith.select %93, %91, %95 : vector<16x100xi1>, vector<16x100xf32>
    %c0_81 = arith.constant 0 : index
    %c0_82 = arith.constant 0 : index
    %97 = vector.load %arg4[%c0_81, %c0_82] : memref<32x256xbf16, #tpu.memory_space<vmem>>, vector<32x256xbf16>
    %98 = vector.extract_strided_slice %96 {offsets = [0, 0], sizes = [16, 67], strides = [1, 1]} : vector<16x100xf32> to vector<16x67xf32>
    %c0_83 = arith.constant 0 : index
    %c0_84 = arith.constant 0 : index
    %99 = vector.load %arg17[%c0_83, %c0_84] : memref<256x67xf32, #tpu.memory_space<vmem>>, vector<16x67xf32>
    tpu.vector_store %arg17[%c0_83, %c0_84], %98 {strides = array<i32>} : memref<256x67xf32, #tpu.memory_space<vmem>>, vector<16x67xf32>,
    %100 = vector.extract_strided_slice %96 {offsets = [0, 1], sizes = [16, 67], strides = [1, 1]} : vector<16x100xf32> to vector<16x67xf32>
    %c16_85 = arith.constant 16 : index
    %c0_86 = arith.constant 0 : index
    %101 = vector.load %arg17[%c16_85, %c0_86] : memref<256x67xf32, #tpu.memory_space<vmem>>, vector<16x67xf32>
    tpu.vector_store %arg17[%c16_85, %c0_86], %100 {strides = array<i32>} : memref<256x67xf32, #tpu.memory_space<vmem>>, vector<16x67xf32>,
    %102 = vector.extract_strided_slice %96 {offsets = [0, 2], sizes = [16, 67], strides = [1, 1]} : vector<16x100xf32> to vector<16x67xf32>
    %c32_87 = arith.constant 32 : index
    %c0_88 = arith.constant 0 : index
    %103 = vector.load %arg17[%c32_87, %c0_88] : memref<256x67xf32, #tpu.memory_space<vmem>>, vector<16x67xf32>
    tpu.vector_store %arg17[%c32_87, %c0_88], %102 {strides = array<i32>} : memref<256x67xf32, #tpu.memory_space<vmem>>, vector<16x67xf32>,
    %104 = vector.extract_strided_slice %96 {offsets = [0, 3], sizes = [16, 67], strides = [1, 1]} : vector<16x100xf32> to vector<16x67xf32>
    %c48_89 = arith.constant 48 : index
    %c0_90 = arith.constant 0 : index
    %105 = vector.load %arg17[%c48_89, %c0_90] : memref<256x67xf32, #tpu.memory_space<vmem>>, vector<16x67xf32>
    tpu.vector_store %arg17[%c48_89, %c0_90], %104 {strides = array<i32>} : memref<256x67xf32, #tpu.memory_space<vmem>>, vector<16x67xf32>,
    %106 = vector.extract_strided_slice %96 {offsets = [0, 10], sizes = [16, 67], strides = [1, 1]} : vector<16x100xf32> to vector<16x67xf32>
    %c64_91 = arith.constant 64 : index
    %c0_92 = arith.constant 0 : index
    %107 = vector.load %arg17[%c64_91, %c0_92] : memref<256x67xf32, #tpu.memory_space<vmem>>, vector<16x67xf32>
    tpu.vector_store %arg17[%c64_91, %c0_92], %106 {strides = array<i32>} : memref<256x67xf32, #tpu.memory_space<vmem>>, vector<16x67xf32>,
    %108 = vector.extract_strided_slice %96 {offsets = [0, 11], sizes = [16, 67], strides = [1, 1]} : vector<16x100xf32> to vector<16x67xf32>
    %c80_93 = arith.constant 80 : index
    %c0_94 = arith.constant 0 : index
    %109 = vector.load %arg17[%c80_93, %c0_94] : memref<256x67xf32, #tpu.memory_space<vmem>>, vector<16x67xf32>
    tpu.vector_store %arg17[%c80_93, %c0_94], %108 {strides = array<i32>} : memref<256x67xf32, #tpu.memory_space<vmem>>, vector<16x67xf32>,
    %110 = vector.extract_strided_slice %96 {offsets = [0, 12], sizes = [16, 67], strides = [1, 1]} : vector<16x100xf32> to vector<16x67xf32>
    %c96_95 = arith.constant 96 : index
    %c0_96 = arith.constant 0 : index
    %111 = vector.load %arg17[%c96_95, %c0_96] : memref<256x67xf32, #tpu.memory_space<vmem>>, vector<16x67xf32>
    tpu.vector_store %arg17[%c96_95, %c0_96], %110 {strides = array<i32>} : memref<256x67xf32, #tpu.memory_space<vmem>>, vector<16x67xf32>,
    %112 = vector.extract_strided_slice %96 {offsets = [0, 13], sizes = [16, 67], strides = [1, 1]} : vector<16x100xf32> to vector<16x67xf32>
    %c112_97 = arith.constant 112 : index
    %c0_98 = arith.constant 0 : index
    %113 = vector.load %arg17[%c112_97, %c0_98] : memref<256x67xf32, #tpu.memory_space<vmem>>, vector<16x67xf32>
    tpu.vector_store %arg17[%c112_97, %c0_98], %112 {strides = array<i32>} : memref<256x67xf32, #tpu.memory_space<vmem>>, vector<16x67xf32>,
    %114 = vector.extract_strided_slice %96 {offsets = [0, 20], sizes = [16, 67], strides = [1, 1]} : vector<16x100xf32> to vector<16x67xf32>
    %c128 = arith.constant 128 : index
    %c0_99 = arith.constant 0 : index
    %115 = vector.load %arg17[%c128, %c0_99] : memref<256x67xf32, #tpu.memory_space<vmem>>, vector<16x67xf32>
    tpu.vector_store %arg17[%c128, %c0_99], %114 {strides = array<i32>} : memref<256x67xf32, #tpu.memory_space<vmem>>, vector<16x67xf32>,
    %116 = vector.extract_strided_slice %96 {offsets = [0, 21], sizes = [16, 67], strides = [1, 1]} : vector<16x100xf32> to vector<16x67xf32>
    %c144 = arith.constant 144 : index
    %c0_100 = arith.constant 0 : index
    %117 = vector.load %arg17[%c144, %c0_100] : memref<256x67xf32, #tpu.memory_space<vmem>>, vector<16x67xf32>
    tpu.vector_store %arg17[%c144, %c0_100], %116 {strides = array<i32>} : memref<256x67xf32, #tpu.memory_space<vmem>>, vector<16x67xf32>,
    %118 = vector.extract_strided_slice %96 {offsets = [0, 22], sizes = [16, 67], strides = [1, 1]} : vector<16x100xf32> to vector<16x67xf32>
    %c160 = arith.constant 160 : index
    %c0_101 = arith.constant 0 : index
    %119 = vector.load %arg17[%c160, %c0_101] : memref<256x67xf32, #tpu.memory_space<vmem>>, vector<16x67xf32>
    tpu.vector_store %arg17[%c160, %c0_101], %118 {strides = array<i32>} : memref<256x67xf32, #tpu.memory_space<vmem>>, vector<16x67xf32>,
    %120 = vector.extract_strided_slice %96 {offsets = [0, 23], sizes = [16, 67], strides = [1, 1]} : vector<16x100xf32> to vector<16x67xf32>
    %c176 = arith.constant 176 : index
    %c0_102 = arith.constant 0 : index
    %121 = vector.load %arg17[%c176, %c0_102] : memref<256x67xf32, #tpu.memory_space<vmem>>, vector<16x67xf32>
    tpu.vector_store %arg17[%c176, %c0_102], %120 {strides = array<i32>} : memref<256x67xf32, #tpu.memory_space<vmem>>, vector<16x67xf32>,
    %122 = vector.extract_strided_slice %96 {offsets = [0, 30], sizes = [16, 67], strides = [1, 1]} : vector<16x100xf32> to vector<16x67xf32>
    %c192 = arith.constant 192 : index
    %c0_103 = arith.constant 0 : index
    %123 = vector.load %arg17[%c192, %c0_103] : memref<256x67xf32, #tpu.memory_space<vmem>>, vector<16x67xf32>
    tpu.vector_store %arg17[%c192, %c0_103], %122 {strides = array<i32>} : memref<256x67xf32, #tpu.memory_space<vmem>>, vector<16x67xf32>,
    %124 = vector.extract_strided_slice %96 {offsets = [0, 31], sizes = [16, 67], strides = [1, 1]} : vector<16x100xf32> to vector<16x67xf32>
    %c208 = arith.constant 208 : index
    %c0_104 = arith.constant 0 : index
    %125 = vector.load %arg17[%c208, %c0_104] : memref<256x67xf32, #tpu.memory_space<vmem>>, vector<16x67xf32>
    tpu.vector_store %arg17[%c208, %c0_104], %124 {strides = array<i32>} : memref<256x67xf32, #tpu.memory_space<vmem>>, vector<16x67xf32>,
    %126 = vector.extract_strided_slice %96 {offsets = [0, 32], sizes = [16, 67], strides = [1, 1]} : vector<16x100xf32> to vector<16x67xf32>
    %c224 = arith.constant 224 : index
    %c0_105 = arith.constant 0 : index
    %127 = vector.load %arg17[%c224, %c0_105] : memref<256x67xf32, #tpu.memory_space<vmem>>, vector<16x67xf32>
    tpu.vector_store %arg17[%c224, %c0_105], %126 {strides = array<i32>} : memref<256x67xf32, #tpu.memory_space<vmem>>, vector<16x67xf32>,
    %128 = vector.extract_strided_slice %96 {offsets = [0, 33], sizes = [16, 67], strides = [1, 1]} : vector<16x100xf32> to vector<16x67xf32>
    %c240 = arith.constant 240 : index
    %c0_106 = arith.constant 0 : index
    %129 = vector.load %arg17[%c240, %c0_106] : memref<256x67xf32, #tpu.memory_space<vmem>>, vector<16x67xf32>
    tpu.vector_store %arg17[%c240, %c0_106], %128 {strides = array<i32>} : memref<256x67xf32, #tpu.memory_space<vmem>>, vector<16x67xf32>,
    %c0_107 = arith.constant 0 : index
    %c0_108 = arith.constant 0 : index
    %130 = vector.load %arg17[%c0_107, %c0_108] : memref<256x67xf32, #tpu.memory_space<vmem>>, vector<256x67xf32>
    %131 = arith.truncf %130 : vector<256x67xf32> to vector<256x67xbf16>
    %cst_109 = arith.constant dense<0.000000e+00> : vector<32x67xf32>
    %132 = tpu.matmul %97, %131, %cst_109 {dimension_numbers = #tpu.dot_dimension_numbers<[1], [0], [0], [1], [0, 0, 1, 1], [], []>} : vector<32x256xbf16>, vector<256x67xbf16>, vector<32x67xf32> -> vector<32x67xf32>
    %c0_110 = arith.constant 0 : index
    %c0_111 = arith.constant 0 : index
    %133 = vector.load %arg20[%c0_110, %c0_111] : memref<32x67xf32, #tpu.memory_space<vmem>>, vector<32x67xf32>
    tpu.vector_store %arg20[%c0_110, %c0_111], %132 {strides = array<i32>} : memref<32x67xf32, #tpu.memory_space<vmem>>, vector<32x67xf32>,
    %c0_112 = arith.constant 0 : index
    %c0_113 = arith.constant 0 : index
    %134 = vector.load %arg20[%c0_112, %c0_113] : memref<32x67xf32, #tpu.memory_space<vmem>>, vector<32x67xf32>
    %135 = arith.truncf %134 : vector<32x67xf32> to vector<32x67xbf16>
    %c0_114 = arith.constant 0 : index
    %c0_115 = arith.constant 0 : index
    %136 = vector.load %arg7[%c0_114, %c0_115] : memref<67x16xbf16, #tpu.memory_space<vmem>>, vector<67x16xbf16>
    %cst_116 = arith.constant dense<0.000000e+00> : vector<32x16xf32>
    %137 = tpu.matmul %135, %136, %cst_116 {dimension_numbers = #tpu.dot_dimension_numbers<[1], [0], [0], [1], [0, 0, 1, 1], [], []>} : vector<32x67xbf16>, vector<67x16xbf16>, vector<32x16xf32> -> vector<32x16xf32>
    %c0_117 = arith.constant 0 : index
    %c0_118 = arith.constant 0 : index
    %138 = vector.load %arg10[%c0_117, %c0_118] : memref<32x16xf32, #tpu.memory_space<vmem>>, vector<32x16xf32>
    %139 = arith.addf %137, %138 : vector<32x16xf32>
    %cst_119 = arith.constant 0.000000e+00 : f32
    %140 = vector.broadcast %cst_119 : f32 to vector<32x16xf32>
    %141 = arith.cmpf oge, %139, %140 : vector<32x16xf32>
    %cst_120 = arith.constant 2.000000e-01 : f32
    %142 = vector.broadcast %cst_120 : f32 to vector<32x16xf32>
    %143 = arith.mulf %142, %139 : vector<32x16xf32>
    %144 = arith.select %141, %139, %143 : vector<32x16xi1>, vector<32x16xf32>
    %c0_121 = arith.constant 0 : index
    %c0_122 = arith.constant 0 : index
    %145 = vector.load %arg11[%c0_121, %c0_122] : memref<32x16xf32, #tpu.memory_space<vmem>>, vector<32x16xf32>
    %146 = arith.mulf %144, %145 : vector<32x16xf32>
    %cst_123 = arith.constant dense<0.000000e+00> : vector<32xf32>
    %147 = vector.multi_reduction <add>, %146, %cst_123 [1] : vector<32x16xf32> to vector<32xf32>
    %148 = vector.shape_cast %147 : vector<32xf32> to vector<32x1xf32>
    %c0_124 = arith.constant 0 : index
    %c0_125 = arith.constant 0 : index
    %149 = vector.load %arg12[%c0_124, %c0_125] : memref<1x32xf32, #tpu.memory_space<vmem>>, vector<1x32xf32>
    %cst_126 = arith.constant dense<0.000000e+00> : vector<1x1xf32>
    %150 = tpu.matmul %149, %148, %cst_126 {dimension_numbers = #tpu.dot_dimension_numbers<[1], [0], [0], [1], [0, 0, 1, 1], [], []>} : vector<1x32xf32>, vector<32x1xf32>, vector<1x1xf32> -> vector<1x1xf32>
    %c0_127 = arith.constant 0 : index
    %c0_128 = arith.constant 0 : index
    %151 = vector.load %arg13[%c0_127, %c0_128] : memref<1x1xf32, #tpu.memory_space<vmem>>, vector<1x1xf32>
    %152 = arith.addf %150, %151 : vector<1x1xf32>
    %153 = vector.shape_cast %152 : vector<1x1xf32> to vector<1x1x1xf32>
    %c0_129 = arith.constant 0 : index
    %c0_130 = arith.constant 0 : index
    %c0_131 = arith.constant 0 : index
    %154 = vector.load %arg14[%c0_129, %c0_130, %c0_131] : memref<1x1x1xf32, #tpu.memory_space<vmem>>, vector<1x1x1xf32>
    tpu.vector_store %arg14[%c0_129, %c0_130, %c0_131], %153 {strides = array<i32>} : memref<1x1x1xf32, #tpu.memory_space<vmem>>, vector<1x1x1xf32>,
    return
  }
  func.func @transform_0(%arg0: i32) -> (i32, i32) {
    %c0_i32 = arith.constant 0 : i32
    %c0_i32_0 = arith.constant 0 : i32
    return %arg0, %c0_i32 : i32, i32
  }
  func.func @transform_1(%arg0: i32) -> (i32, i32) {
    %c0_i32 = arith.constant 0 : i32
    %c0_i32_0 = arith.constant 0 : i32
    %c0_i32_1 = arith.constant 0 : i32
    return %c0_i32, %c0_i32_0 : i32, i32
  }
  func.func @transform_2(%arg0: i32) -> (i32, i32) {
    %c0_i32 = arith.constant 0 : i32
    %c0_i32_0 = arith.constant 0 : i32
    %c0_i32_1 = arith.constant 0 : i32
    return %c0_i32, %c0_i32_0 : i32, i32
  }
  func.func @transform_3(%arg0: i32) -> (i32, i32) {
    %c0_i32 = arith.constant 0 : i32
    %c0_i32_0 = arith.constant 0 : i32
    %c0_i32_1 = arith.constant 0 : i32
    return %c0_i32, %c0_i32_0 : i32, i32
  }
  func.func @transform_4(%arg0: i32) -> (i32, i32) {
    %c0_i32 = arith.constant 0 : i32
    %c0_i32_0 = arith.constant 0 : i32
    %c0_i32_1 = arith.constant 0 : i32
    return %c0_i32, %c0_i32_0 : i32, i32
  }
  func.func @transform_5(%arg0: i32) -> (i32, i32) {
    %c0_i32 = arith.constant 0 : i32
    %c0_i32_0 = arith.constant 0 : i32
    %c0_i32_1 = arith.constant 0 : i32
    return %c0_i32, %c0_i32_0 : i32, i32
  }
  func.func @transform_6(%arg0: i32) -> (i32, i32) {
    %c0_i32 = arith.constant 0 : i32
    %c0_i32_0 = arith.constant 0 : i32
    %c0_i32_1 = arith.constant 0 : i32
    return %c0_i32, %c0_i32_0 : i32, i32
  }
  func.func @transform_7(%arg0: i32) -> (i32, i32) {
    %c0_i32 = arith.constant 0 : i32
    %c0_i32_0 = arith.constant 0 : i32
    %c0_i32_1 = arith.constant 0 : i32
    return %c0_i32, %c0_i32_0 : i32, i32
  }
  func.func @transform_8(%arg0: i32) -> (i32, i32) {
    %c0_i32 = arith.constant 0 : i32
    %c0_i32_0 = arith.constant 0 : i32
    %c0_i32_1 = arith.constant 0 : i32
    return %c0_i32, %c0_i32_0 : i32, i32
  }
  func.func @transform_9(%arg0: i32) -> (i32, i32) {
    %c0_i32 = arith.constant 0 : i32
    %c0_i32_0 = arith.constant 0 : i32
    %c0_i32_1 = arith.constant 0 : i32
    return %c0_i32, %c0_i32_0 : i32, i32
  }
  func.func @transform_10(%arg0: i32) -> (i32, i32) {
    %c0_i32 = arith.constant 0 : i32
    %c0_i32_0 = arith.constant 0 : i32
    %c0_i32_1 = arith.constant 0 : i32
    return %c0_i32, %c0_i32_0 : i32, i32
  }
  func.func @transform_11(%arg0: i32) -> (i32, i32) {
    %c0_i32 = arith.constant 0 : i32
    %c0_i32_0 = arith.constant 0 : i32
    %c0_i32_1 = arith.constant 0 : i32
    return %c0_i32, %c0_i32_0 : i32, i32
  }
  func.func @transform_12(%arg0: i32) -> (i32, i32) {
    %c0_i32 = arith.constant 0 : i32
    %c0_i32_0 = arith.constant 0 : i32
    %c0_i32_1 = arith.constant 0 : i32
    return %c0_i32, %c0_i32_0 : i32, i32
  }
  func.func @transform_13(%arg0: i32) -> (i32, i32, i32) {
    %c0_i32 = arith.constant 0 : i32
    %c0_i32_0 = arith.constant 0 : i32
    %c0_i32_1 = arith.constant 0 : i32
    return %arg0, %c0_i32, %c0_i32_0 : i32, i32, i32
  }
}

</mosaic_0001>

<bundles_post_ra>
// kernel: tpu_custom_call.1
= control target key start
LH: loop header
LB: loop body
LE: loop exit
PB: predicated region body
PF: predicated region fallthrough
CT: control target
= control target key end

     0   :  { %s5463_s27 = smov 0   ;;  %s7183_s0 = inlined_call_operand.vmem [shape: f32[16,1156], index: 0, kind: input, shape index: {}]   ;;  %s7184_s1 = inlined_call_operand.vmem [shape: bf16[8,128], index: 1, kind: input, shape index: {}]   ;;  %s7185_s2 = inlined_call_operand.vmem [shape: bf16[16,128], index: 2, kind: input, shape index: {}]   ;;  %s7186_s3 = inlined_call_operand.vmem [shape: bf16[32,256], index: 3, kind: input, shape index: {}]   ;;  %s7187_s4 = inlined_call_operand.vmem [shape: bf16[1051,324], index: 4, kind: input, shape index: {}]   ;;  %s7188_s5 = inlined_call_operand.vmem [shape: bf16[267,100], index: 5, kind: input, shape index: {}]   ;;  %s7189_s6 = inlined_call_operand.vmem [shape: bf16[67,16], index: 6, kind: input, shape index: {}]   ;;  %s7190_s7 = inlined_call_operand.vmem [shape: f32[8,324], index: 7, kind: input, shape index: {}]   ;;  %s7191_s8 = inlined_call_operand.vmem [shape: f32[16,100], index: 8, kind: input, shape index: {}]   ;;  %s7192_s9 = inlined_call_operand.vmem [shape: f32[32,16], index: 9, kind: input, shape index: {}]   ;;  %s7193_s10 = inlined_call_operand.vmem [shape: f32[32,16], index: 10, kind: input, shape index: {}]   ;;  %s7194_s11 = inlined_call_operand.vmem [shape: f32[1,32], index: 11, kind: input, shape index: {}]   ;;  %s7195_s12 = inlined_call_operand.<no memory space> [shape: f32[1,1], index: 12, kind: input, shape index: {}]   ;;  %s7196_s13 = inlined_call_operand.vmem [shape: f32[2,1,1], index: 13, kind: output, shape index: {}]  }
   0x1   :  { %v18_v0 = vstv %s7195_s12 }
   0x2   :  { %19 = vst [vmem:[#allocation8] sm:$0x1] %v18_v0 }
   0x3 LB: > { %s4508_s28 = sadd.s32 4294967295, %s5349_s27   ;;  %p4512_p0 = scmp.ge.s32.totalorder %s5349_s27, 1  ;;  %s5349_s27 = sphi %s5463_s27, %s25_s27  }
   0x4   : > { %p389_p1 = scmp.lt.s32.totalorder %s5349_s27, 3 }
   0x6   : > { %p390_p2 = pnand %p4512_p0, %p389_p1 }
   0x7   : > { %p431_p3 = scmp.lt.s32.totalorder (!%p390_p2), %s4508_s28, 1  ;;  %s5351_s15 = smov (!%p390_p2), 23  }
   0x8   : > { %393 = sbr.rel (%p390_p2) target bundleno = 2440 (0x988), region = 72  ;;  %s5352_s16 = smov (!%p390_p2), 24  }
   0x9   : > { %s5353_s17 = smov (!%p390_p2), 26   ;;  %s5354_s18 = smov (!%p390_p2), 25  }
   0xa   : > { %s5355_s19 = smov (!%p390_p2), 58   ;;  %s5356_s20 = smov (!%p390_p2), 57  }
   0xb   : > { %s5357_s21 = smov (!%p390_p2), 60   ;;  %s5358_s22 = smov (!%p390_p2), 59  }
   0xc   : > { %s5359_s23 = smov (!%p390_p2), 92   ;;  %s5360_s24 = smov (!%p390_p2), 91  }
   0xd   : > { %s7206_s28 = smov (!%p431_p3, %s4508_s28), 1  ;;  %s5361_s25 = smov 94   ;;  %vm1130_vm0 = vcmask 187392   ;;  %vm1082_vm1 = vcmask 195584   ;;  %vm986_vm2 = vcmask 211968   ;;  %vm1034_vm3 = vcmask 203776  }
   0xe   : > { %s4999_s12 = smul.u32 80, %s7206_s28  ;;  %s5362_s26 = smov 93   ;;  %vm893_vm4 = vcmask 474112   ;;  %vm938_vm5 = vcmask 465920   ;;  %v5366_v40 = vmov 0   ;;  %vm803_vm6 = vcmask 490496  }
   0xf   : > { %s5364_s29 = smov 125   ;;  %s7198_s30 = smov 127   ;;  %1406 = vmatprep.mubr.bf16.mxu0 %v5366_v40  ;;  %1447 = vmatprep.mubr.bf16.mxu1 %v5366_v40  ;;  %vm848_vm7 = vcmask 482304   ;;  %vm713_vm8 = vcmask 752640   ;;  %vm758_vm9 = vcmask 744448   ;;  %vm623_vm10 = vcmask 769024  }
  0x10   : > { %s5477_s14 = scalar_lea.vmem %s7183_s0, %s4999_s12  ;;  %s5363_s12 = smov 126   ;;  %vm668_vm11 = vcmask 760832   ;;  %vm459_vm12 = vcmask 220160   ;;  %vm533_vm13 = vcmask 1031168   ;;  %vm578_vm14 = vcmask 1022976  }
  0x11   : > { %v5480_v1 = vld [vmem:[%s5477_s14 + $0x8] sm:$0xff]  ;;  %v5483_v2 = vld [vmem:[%s5477_s14 + $0x10] sm:$0xff]  ;;  %v5486_v3 = vld [vmem:[%s5477_s14] sm:$0xff]  ;;  %vm7197_vm15 = vcmask 1039360  }
  0x12   : > { %1112 = vrot.lane.b32.xlu1 %v5480_v1, %s5351_s15  ;;  %452 = vst [vmem:[#allocation2 + $0x8] sm:$0xff] %v5480_v1  ;;  %1064 = vrot.lane.b32.xlu0 %v5480_v1, %s5352_s16  ;;  %453 = vst [vmem:[#allocation2 + $0x10] sm:$0xff] %v5483_v2  ;;  %v5496_v4 = vld [vmem:[%s5477_s14 + $0x20] sm:$0xff]  ;;  %v5499_v5 = vld [vmem:[%s5477_s14 + $0x18] sm:$0xff] }
  0x13   : > { %451 = vst [vmem:[#allocation2] sm:$0xff] %v5486_v3  ;;  %455 = vst [vmem:[#allocation2 + $0x20] sm:$0xff] %v5496_v4  ;;  %v5520_v6 = vld [vmem:[%s5477_s14 + $0x28] sm:$0xff]  ;;  %v5528_v7 = vld [vmem:[%s5477_s14 + $0x30] sm:$0xff] }
  0x14   : > { %454 = vst [vmem:[#allocation2 + $0x18] sm:$0xff] %v5499_v5  ;;  %456 = vst [vmem:[#allocation2 + $0x28] sm:$0xff] %v5520_v6  ;;  %v5588_v8 = vld [vmem:[%s5477_s14 + $0x38] sm:$0xff] }
  0x15   : > { %457 = vst [vmem:[#allocation2 + $0x30] sm:$0xff] %v5528_v7  ;;  %458 = vst [vmem:[#allocation2 + $0x38] sm:$0xff] %v5588_v8 }
  0x16   : > { %1114 = vrot.lane.b32.xlu1 %v5483_v2, %s5351_s15  ;;  %1066 = vrot.lane.b32.xlu0 %v5483_v2, %s5352_s16 }
  0x1a   : > { %1110 = vrot.lane.b32.xlu1 %v5486_v3, %s5351_s15  ;;  %1062 = vrot.lane.b32.xlu0 %v5486_v3, %s5352_s16 }
  0x1e   : > { %970 = vrot.lane.b32.xlu1 %v5483_v2, %s5353_s17  ;;  %968 = vrot.lane.b32.xlu0 %v5480_v1, %s5353_s17 }
  0x22   : > { %1018 = vrot.lane.b32.xlu1 %v5483_v2, %s5354_s18  ;;  %1016 = vrot.lane.b32.xlu0 %v5480_v1, %s5354_s18 }
  0x26   : > { %1014 = vrot.lane.b32.xlu1 %v5486_v3, %s5354_s18  ;;  %966 = vrot.lane.b32.xlu0 %v5486_v3, %s5353_s17 }
  0x2a   : > { %879 = vrot.lane.b32.xlu1 %v5483_v2, %s5355_s19  ;;  %877 = vrot.lane.b32.xlu0 %v5480_v1, %s5355_s19 }
  0x2e   : > { %924 = vrot.lane.b32.xlu1 %v5483_v2, %s5356_s20  ;;  %922 = vrot.lane.b32.xlu0 %v5480_v1, %s5356_s20 }
  0x32   : > { %920 = vrot.lane.b32.xlu1 %v5486_v3, %s5356_s20  ;;  %875 = vrot.lane.b32.xlu0 %v5486_v3, %s5355_s19 }
  0x36   : > { %1070 = vrot.lane.b32.xlu1 %v5496_v4, %s5352_s16  ;;  %1068 = vrot.lane.b32.xlu0 %v5499_v5, %s5352_s16 }
  0x3a   : > { %1118 = vrot.lane.b32.xlu1 %v5496_v4, %s5351_s15  ;;  %1116 = vrot.lane.b32.xlu0 %v5499_v5, %s5351_s15 }
  0x3e   : > { %789 = vrot.lane.b32.xlu1 %v5483_v2, %s5357_s21  ;;  %787 = vrot.lane.b32.xlu0 %v5480_v1, %s5357_s21 }
  0x42   : > { %834 = vrot.lane.b32.xlu1 %v5483_v2, %s5358_s22  ;;  %832 = vrot.lane.b32.xlu0 %v5480_v1, %s5358_s22 }
  0x46   : > { %830 = vrot.lane.b32.xlu1 %v5486_v3, %s5358_s22  ;;  %785 = vrot.lane.b32.xlu0 %v5486_v3, %s5357_s21 }
  0x4a   : > { %974 = vrot.lane.b32.xlu1 %v5496_v4, %s5353_s17  ;;  %972 = vrot.lane.b32.xlu0 %v5499_v5, %s5353_s17 }
  0x4e   : > { %1022 = vrot.lane.b32.xlu1 %v5496_v4, %s5354_s18  ;;  %1020 = vrot.lane.b32.xlu0 %v5499_v5, %s5354_s18 }
  0x52   : > { %699 = vrot.lane.b32.xlu1 %v5483_v2, %s5359_s23  ;;  %697 = vrot.lane.b32.xlu0 %v5480_v1, %s5359_s23 }
  0x56   : > { %744 = vrot.lane.b32.xlu1 %v5483_v2, %s5360_s24  ;;  %742 = vrot.lane.b32.xlu0 %v5480_v1, %s5360_s24 }
  0x5a   : > { %740 = vrot.lane.b32.xlu1 %v5486_v3, %s5360_s24  ;;  %695 = vrot.lane.b32.xlu0 %v5486_v3, %s5359_s23 }
  0x5e   : > { %883 = vrot.lane.b32.xlu1 %v5496_v4, %s5355_s19  ;;  %881 = vrot.lane.b32.xlu0 %v5499_v5, %s5355_s19 }
  0x62   : > { %928 = vrot.lane.b32.xlu1 %v5496_v4, %s5356_s20  ;;  %926 = vrot.lane.b32.xlu0 %v5499_v5, %s5356_s20 }
  0x66   : > { %609 = vrot.lane.b32.xlu1 %v5483_v2, %s5361_s25  ;;  %607 = vrot.lane.b32.xlu0 %v5480_v1, %s5361_s25 }
  0x6a   : > { %654 = vrot.lane.b32.xlu1 %v5483_v2, %s5362_s26  ;;  %652 = vrot.lane.b32.xlu0 %v5480_v1, %s5362_s26 }
  0x6e   : > { %650 = vrot.lane.b32.xlu1 %v5486_v3, %s5362_s26  ;;  %605 = vrot.lane.b32.xlu0 %v5486_v3, %s5361_s25 }
  0x72   : > { %793 = vrot.lane.b32.xlu1 %v5496_v4, %s5357_s21  ;;  %791 = vrot.lane.b32.xlu0 %v5499_v5, %s5357_s21 }
  0x76   : > { %838 = vrot.lane.b32.xlu1 %v5496_v4, %s5358_s22  ;;  %836 = vrot.lane.b32.xlu0 %v5499_v5, %s5358_s22 }
  0x7a   : > { %519 = vrot.lane.b32.xlu1 %v5483_v2, %s5363_s12  ;;  %517 = vrot.lane.b32.xlu0 %v5480_v1, %s5363_s12 }
  0x7e   : > { %564 = vrot.lane.b32.xlu1 %v5483_v2, %s5364_s29  ;;  %562 = vrot.lane.b32.xlu0 %v5480_v1, %s5364_s29 }
  0x82   : > { %560 = vrot.lane.b32.xlu1 %v5486_v3, %s5364_s29  ;;  %515 = vrot.lane.b32.xlu0 %v5486_v3, %s5363_s12 }
  0x84   : > { %v1113_v9 = vpop.permute.xlu1 %1112  ;;  %v1065_v10 = vpop.permute.xlu0 %1064 }
  0x86   : > { %703 = vrot.lane.b32.xlu1 %v5496_v4, %s5359_s23  ;;  %701 = vrot.lane.b32.xlu0 %v5499_v5, %s5359_s23 }
  0x88   : > { %v5631_v11 = vpop.permute.xlu1 %1114  ;;  %v5633_v12 = vpop.permute.xlu0 %1066 }
  0x89   : > { %v1132_v13 = vsel %vm1130_vm0, %v1113_v9, %v5631_v11  ;;  %v1084_v14 = vsel %vm1082_vm1, %v1065_v10, %v5633_v12 }
  0x8a   : > { %748 = vrot.lane.b32.xlu1 %v5496_v4, %s5360_s24  ;;  %746 = vrot.lane.b32.xlu0 %v5499_v5, %s5360_s24  ;;  %v1366_v15 = vpack.c.bf16 %v1132_v13, %v1084_v14 }
  0x8c   : > { %v1111_v16 = vpop.permute.xlu1 %1110  ;;  %v1063_v17 = vpop.permute.xlu0 %1062  ;;  %1374 = vmatprep.subr.bf16.mxu0 %v1366_v15 }
  0x8d   : > { %v1131_v18 = vsel %vm1130_vm0, %v1111_v16, %v1113_v9  ;;  %v1083_v19 = vsel %vm1082_vm1, %v1063_v17, %v1065_v10 }
  0x8e   : > { %474 = vrot.lane.b32.xlu1 %v5483_v2, %s7198_s30  ;;  %472 = vrot.lane.b32.xlu0 %v5480_v1, %s7198_s30  ;;  %v1365_v20 = vpack.c.bf16 %v1131_v18, %v1083_v19 }
  0x90   : > { %v5649_v21 = vpop.permute.xlu1 %970  ;;  %v969_v22 = vpop.permute.xlu0 %968  ;;  %1375 = vmatpush1.bf16.msra.mxu0 %v1365_v20 }
  0x91   : > { %v988_v23 = vsel %vm986_vm2, %v969_v22, %v5649_v21 }
  0x92   : > { %611 = vrot.lane.b32.xlu1 %v5499_v5, %s5361_s25  ;;  %470 = vrot.lane.b32.xlu0 %v5486_v3, %s7198_s30 }
  0x94   : > { %v5657_v24 = vpop.permute.xlu1 %1018  ;;  %v1017_v25 = vpop.permute.xlu0 %1016 }
  0x95   : > { %v1036_v26 = vsel %vm1034_vm3, %v1017_v25, %v5657_v24 }
  0x96   : > { %656 = vrot.lane.b32.xlu1 %v5499_v5, %s5362_s26  ;;  %613 = vrot.lane.b32.xlu0 %v5496_v4, %s5361_s25  ;;  %v1357_v27 = vpack.c.bf16 %v1036_v26, %v988_v23 }
  0x98   : > { %v1015_v28 = vpop.permute.xlu1 %1014  ;;  %v967_v29 = vpop.permute.xlu0 %966  ;;  %1376 = vmatprep.subr.bf16.mxu0 %v1357_v27 }
  0x99   : > { %v1035_v30 = vsel %vm1034_vm3, %v1015_v28, %v1017_v25  ;;  %v987_v31 = vsel %vm986_vm2, %v967_v29, %v969_v22 }
  0x9a   : > { %521 = vrot.lane.b32.xlu1 %v5499_v5, %s5363_s12  ;;  %658 = vrot.lane.b32.xlu0 %v5496_v4, %s5362_s26  ;;  %v1356_v32 = vpack.c.bf16 %v1035_v30, %v987_v31 }
  0x9c   : > { %v5671_v33 = vpop.permute.xlu1 %879  ;;  %v878_v34 = vpop.permute.xlu0 %877  ;;  %1377 = vmatpush1.bf16.msra.mxu0 %v1356_v32 }
  0x9d   : > { %v895_v35 = vsel %vm893_vm4, %v878_v34, %v5671_v33 }
  0x9e   : > { %566 = vrot.lane.b32.xlu1 %v5499_v5, %s5364_s29  ;;  %523 = vrot.lane.b32.xlu0 %v5496_v4, %s5363_s12 }
  0xa0   : > { %v5679_v36 = vpop.permute.xlu1 %924  ;;  %v923_v37 = vpop.permute.xlu0 %922 }
  0xa1   : > { %v940_v38 = vsel %vm938_vm5, %v923_v37, %v5679_v36 }
  0xa2   : > { %476 = vrot.lane.b32.xlu1 %v5499_v5, %s7198_s30  ;;  %568 = vrot.lane.b32.xlu0 %v5496_v4, %s5364_s29  ;;  %v1348_v39 = vpack.c.bf16 %v940_v38, %v895_v35 }
  0xa4   : > { %v921_v41 = vpop.permute.xlu1 %920  ;;  %v876_v42 = vpop.permute.xlu0 %875  ;;  %1378 = vmatprep.subr.bf16.mxu0 %v1348_v39 }
  0xa5   : > { %v939_v43 = vsel %vm938_vm5, %v921_v41, %v923_v37  ;;  %v894_v44 = vsel %vm893_vm4, %v876_v42, %v878_v34 }
  0xa6   : > { %1072 = vrot.lane.b32.xlu1 %v5520_v6, %s5352_s16  ;;  %478 = vrot.lane.b32.xlu0 %v5496_v4, %s7198_s30  ;;  %v1347_v45 = vpack.c.bf16 %v939_v43, %v894_v44 }
  0xa8   : > { %v5695_v46 = vpop.permute.xlu1 %1070  ;;  %v1069_v47 = vpop.permute.xlu0 %1068  ;;  %1379 = vmatpush1.bf16.msra.mxu0 %v1347_v45 }
  0xa9   : > { %v1085_v48 = vsel %vm1082_vm1, %v5633_v12, %v1069_v47  ;;  %v1086_v49 = vsel %vm1082_vm1, %v1069_v47, %v5695_v46 }
  0xaa   : > { %1120 = vrot.lane.b32.xlu1 %v5520_v6, %s5351_s15  ;;  %1074 = vrot.lane.b32.xlu0 %v5528_v7, %s5352_s16 }
  0xac   : > { %v5705_v50 = vpop.permute.xlu1 %1118  ;;  %v1117_v51 = vpop.permute.xlu0 %1116 }
  0xad   : > { %v1133_v52 = vsel %vm1130_vm0, %v5631_v11, %v1117_v51  ;;  %v1134_v53 = vsel %vm1130_vm0, %v1117_v51, %v5705_v50 }
  0xae   : > { %976 = vrot.lane.b32.xlu1 %v5520_v6, %s5353_s17  ;;  %1122 = vrot.lane.b32.xlu0 %v5528_v7, %s5351_s15  ;;  %v1368_v54 = vpack.c.bf16 %v1134_v53, %v1086_v49  ;;  %v1367_v55 = vpack.c.bf16 %v1133_v52, %v1085_v48 }
  0xb0   : > { %v5715_v56 = vpop.permute.xlu1 %789  ;;  %v788_v57 = vpop.permute.xlu0 %787  ;;  %1415 = vmatprep.subr.bf16.mxu1 %v1368_v54 }
  0xb1   : > { %v805_v58 = vsel %vm803_vm6, %v788_v57, %v5715_v56  ;;  %1416 = vmatpush1.bf16.msra.mxu1 %v1367_v55 }
  0xb2   : > { %1024 = vrot.lane.b32.xlu1 %v5520_v6, %s5354_s18  ;;  %978 = vrot.lane.b32.xlu0 %v5528_v7, %s5353_s17 }
  0xb4   : > { %v5723_v59 = vpop.permute.xlu1 %834  ;;  %v833_v60 = vpop.permute.xlu0 %832 }
  0xb5   : > { %v850_v61 = vsel %vm848_vm7, %v833_v60, %v5723_v59 }
  0xb6   : > { %885 = vrot.lane.b32.xlu1 %v5520_v6, %s5355_s19  ;;  %1026 = vrot.lane.b32.xlu0 %v5528_v7, %s5354_s18  ;;  %v1339_v62 = vpack.c.bf16 %v850_v61, %v805_v58 }
  0xb8   : > { %v831_v63 = vpop.permute.xlu1 %830  ;;  %v786_v0 = vpop.permute.xlu0 %785  ;;  %1380 = vmatprep.subr.bf16.mxu0 %v1339_v62 }
  0xb9   : > { %v849_v1 = vsel %vm848_vm7, %v831_v63, %v833_v60  ;;  %v804_v2 = vsel %vm803_vm6, %v786_v0, %v788_v57  ;;  %v449_v60 = vld [vmem:[%s5477_s14 + $0x48] sm:$0xff] }
  0xba   : > { %930 = vrot.lane.b32.xlu1 %v5520_v6, %s5356_s20  ;;  %887 = vrot.lane.b32.xlu0 %v5528_v7, %s5355_s19  ;;  %v1338_v3 = vpack.c.bf16 %v849_v1, %v804_v2 }
  0xbc   : > { %v5737_v4 = vpop.permute.xlu1 %974  ;;  %v973_v5 = vpop.permute.xlu0 %972  ;;  %1381 = vmatpush1.bf16.msra.mxu0 %v1338_v3 }
  0xbd   : > { %v989_v9 = vsel %vm986_vm2, %v5649_v21, %v973_v5  ;;  %v990_v10 = vsel %vm986_vm2, %v973_v5, %v5737_v4 }
  0xbe   : > { %795 = vrot.lane.b32.xlu1 %v5520_v6, %s5357_s21  ;;  %932 = vrot.lane.b32.xlu0 %v5528_v7, %s5356_s20 }
  0xc0   : > { %v5747_v11 = vpop.permute.xlu1 %1022  ;;  %v1021_v12 = vpop.permute.xlu0 %1020 }
  0xc1   : > { %v1037_v13 = vsel %vm1034_vm3, %v5657_v24, %v1021_v12  ;;  %v1038_v14 = vsel %vm1034_vm3, %v1021_v12, %v5747_v11 }
  0xc2   : > { %840 = vrot.lane.b32.xlu1 %v5520_v6, %s5358_s22  ;;  %797 = vrot.lane.b32.xlu0 %v5528_v7, %s5357_s21  ;;  %v1359_v15 = vpack.c.bf16 %v1038_v14, %v990_v10  ;;  %v1358_v16 = vpack.c.bf16 %v1037_v13, %v989_v9 }
  0xc4   : > { %v5757_v17 = vpop.permute.xlu1 %699  ;;  %v698_v18 = vpop.permute.xlu0 %697  ;;  %1417 = vmatprep.subr.bf16.mxu1 %v1359_v15 }
  0xc5   : > { %v715_v19 = vsel %vm713_vm8, %v698_v18, %v5757_v17  ;;  %1418 = vmatpush1.bf16.msra.mxu1 %v1358_v16 }
  0xc6   : > { %705 = vrot.lane.b32.xlu1 %v5520_v6, %s5359_s23  ;;  %842 = vrot.lane.b32.xlu0 %v5528_v7, %s5358_s22 }
  0xc8   : > { %v5765_v20 = vpop.permute.xlu1 %744  ;;  %v743_v21 = vpop.permute.xlu0 %742 }
  0xc9   : > { %v760_v22 = vsel %vm758_vm9, %v743_v21, %v5765_v20 }
  0xca   : > { %750 = vrot.lane.b32.xlu1 %v5520_v6, %s5360_s24  ;;  %707 = vrot.lane.b32.xlu0 %v5528_v7, %s5359_s23  ;;  %v1330_v23 = vpack.c.bf16 %v760_v22, %v715_v19 }
  0xcc   : > { %v741_v24 = vpop.permute.xlu1 %740  ;;  %v696_v25 = vpop.permute.xlu0 %695  ;;  %1382 = vmatprep.subr.bf16.mxu0 %v1330_v23 }
  0xcd   : > { %v759_v26 = vsel %vm758_vm9, %v741_v24, %v743_v21  ;;  %v714_v27 = vsel %vm713_vm8, %v696_v25, %v698_v18 }
  0xce   : > { %615 = vrot.lane.b32.xlu1 %v5520_v6, %s5361_s25  ;;  %752 = vrot.lane.b32.xlu0 %v5528_v7, %s5360_s24  ;;  %v1329_v28 = vpack.c.bf16 %v759_v26, %v714_v27 }
  0xd0   : > { %v5779_v29 = vpop.permute.xlu1 %883  ;;  %v882_v30 = vpop.permute.xlu0 %881  ;;  %1383 = vmatpush1.bf16.msra.mxu0 %v1329_v28 }
  0xd1   : > { %v896_v31 = vsel %vm893_vm4, %v5671_v33, %v882_v30  ;;  %v897_v32 = vsel %vm893_vm4, %v882_v30, %v5779_v29 }
  0xd2   : > { %660 = vrot.lane.b32.xlu1 %v5520_v6, %s5362_s26  ;;  %617 = vrot.lane.b32.xlu0 %v5528_v7, %s5361_s25 }
  0xd4   : > { %v5789_v34 = vpop.permute.xlu1 %928  ;;  %v927_v35 = vpop.permute.xlu0 %926 }
  0xd5   : > { %v941_v37 = vsel %vm938_vm5, %v5679_v36, %v927_v35  ;;  %v942_v38 = vsel %vm938_vm5, %v927_v35, %v5789_v34  ;;  %v5808_v36 = vld [vmem:[%s5477_s14 + $0x40] sm:$0xff]  ;;  %s5375_s14 = smov 90  }
  0xd6   : > { %525 = vrot.lane.b32.xlu1 %v5520_v6, %s5363_s12  ;;  %662 = vrot.lane.b32.xlu0 %v5528_v7, %s5362_s26  ;;  %v1350_v33 = vpack.c.bf16 %v942_v38, %v897_v32  ;;  %v1349_v39 = vpack.c.bf16 %v941_v37, %v896_v31  ;;  %460 = vst.msk [vmem:[#allocation2 + $0x40] sm:$0xff] %vm459_vm12, %v5808_v36 }
  0xd8   : > { %v5799_v41 = vpop.permute.xlu1 %609  ;;  %v608_v42 = vpop.permute.xlu0 %607  ;;  %1419 = vmatprep.subr.bf16.mxu1 %v1350_v33 }
  0xd9   : > { %v625_v43 = vsel %vm623_vm10, %v608_v42, %v5799_v41  ;;  %1420 = vmatpush1.bf16.msra.mxu1 %v1349_v39  ;;  %v5341_v39 = vld [vmem:[#allocation2] sm:$0xff] }
  0xda   : > { %570 = vrot.lane.b32.xlu1 %v5520_v6, %s5364_s29  ;;  %527 = vrot.lane.b32.xlu0 %v5528_v7, %s5363_s12 }
  0xdc   : > { %v5812_v44 = vpop.permute.xlu1 %654  ;;  %v653_v45 = vpop.permute.xlu0 %652 }
  0xdd   : > { %v670_v47 = vsel %vm668_vm11, %v653_v45, %v5812_v44 }
  0xde   : > { %480 = vrot.lane.b32.xlu1 %v5520_v6, %s7198_s30  ;;  %572 = vrot.lane.b32.xlu0 %v5528_v7, %s5364_s29  ;;  %v1321_v48 = vpack.c.bf16 %v670_v47, %v625_v43  ;;  %v5902_v47 = vld [vmem:[%s7184_s1] sm:$0xf] }
  0xe0   : > { %v651_v49 = vpop.permute.xlu1 %650  ;;  %v606_v51 = vpop.permute.xlu0 %605  ;;  %1384 = vmatprep.subr.bf16.mxu0 %v1321_v48 }
  0xe1   : > { %v669_v52 = vsel %vm668_vm11, %v651_v49, %v653_v45  ;;  %v624_v53 = vsel %vm623_vm10, %v606_v51, %v608_v42 }
  0xe2   : > { %1076 = vrot.lane.b32.xlu1 %v5588_v8, %s5352_s16  ;;  %482 = vrot.lane.b32.xlu0 %v5528_v7, %s7198_s30  ;;  %v1320_v54 = vpack.c.bf16 %v669_v52, %v624_v53 }
  0xe4   : > { %v5826_v6 = vpop.permute.xlu1 %793  ;;  %v792_v55 = vpop.permute.xlu0 %791  ;;  %1385 = vmatpush1.bf16.msra.mxu0 %v1320_v54 }
  0xe5   : > { %v806_v57 = vsel %vm803_vm6, %v5715_v56, %v792_v55  ;;  %v807_v58 = vsel %vm803_vm6, %v792_v55, %v5826_v6 }
  0xe6   : > { %1124 = vrot.lane.b32.xlu1 %v5588_v8, %s5351_s15  ;;  %1078 = vrot.lane.b32.xlu0 %v5808_v36, %s5352_s16 }
  0xe8   : > { %v5837_v61 = vpop.permute.xlu1 %838  ;;  %v837_v7 = vpop.permute.xlu0 %836 }
  0xe9   : > { %v851_v62 = vsel %vm848_vm7, %v5723_v59, %v837_v7  ;;  %v852_v63 = vsel %vm848_vm7, %v837_v7, %v5837_v61 }
  0xea   : > { %1080 = vrot.lane.b32.xlu1 %v449_v60, %s5352_s16  ;;  %1126 = vrot.lane.b32.xlu0 %v5808_v36, %s5351_s15  ;;  %v1341_v56 = vpack.c.bf16 %v852_v63, %v807_v58  ;;  %v1340_v0 = vpack.c.bf16 %v851_v62, %v806_v57  ;;  %s5377_s16 = smov 108  }
  0xec   : > { %v5846_v1 = vpop.permute.xlu1 %519  ;;  %v518_v2 = vpop.permute.xlu0 %517  ;;  %1421 = vmatprep.subr.bf16.mxu1 %v1341_v56 }
  0xed   : > { %v535_v3 = vsel %vm533_vm13, %v518_v2, %v5846_v1  ;;  %1422 = vmatpush1.bf16.msra.mxu1 %v1340_v0 }
  0xee   : > { %980 = vrot.lane.b32.xlu1 %v5588_v8, %s5353_s17  ;;  %1128 = vrot.lane.b32.xlu0 %v449_v60, %s5351_s15  ;;  %s5376_s15 = smov 107  }
  0xf0   : > { %v5853_v59 = vpop.permute.xlu1 %564  ;;  %v563_v5 = vpop.permute.xlu0 %562 }
  0xf1   : > { %v580_v9 = vsel %vm578_vm14, %v563_v5, %v5853_v59 }
  0xf2   : > { %1028 = vrot.lane.b32.xlu1 %v5588_v8, %s5354_s18  ;;  %982 = vrot.lane.b32.xlu0 %v5808_v36, %s5353_s17  ;;  %v1312_v10 = vpack.c.bf16 %v580_v9, %v535_v3 }
  0xf4   : > { %v561_v12 = vpop.permute.xlu1 %560  ;;  %v516_v13 = vpop.permute.xlu0 %515  ;;  %1386 = vmatprep.subr.bf16.mxu0 %v1312_v10  ;;  %v5342_v10 = vld [vmem:[#allocation2 + $0x18] sm:$0xff] }
  0xf5   : > { %v579_v14 = vsel %vm578_vm14, %v561_v12, %v563_v5  ;;  %v534_v15 = vsel %vm533_vm13, %v516_v13, %v518_v2 }
  0xf6   : > { %984 = vrot.lane.b32.xlu1 %v449_v60, %s5353_s17  ;;  %1030 = vrot.lane.b32.xlu0 %v5808_v36, %s5354_s18  ;;  %v1311_v16 = vpack.c.bf16 %v579_v14, %v534_v15  ;;  %s5378_s17 = smov 109  }
  0xf8   : > { %v5866_v18 = vpop.permute.xlu1 %703  ;;  %v702_v19 = vpop.permute.xlu0 %701  ;;  %1387 = vmatpush1.bf16.msra.mxu0 %v1311_v16 }
  0xf9   : > { %v716_v21 = vsel %vm713_vm8, %v5757_v17, %v702_v19  ;;  %v717_v22 = vsel %vm713_vm8, %v702_v19, %v5866_v18 }
  0xfa   : > { %889 = vrot.lane.b32.xlu1 %v5588_v8, %s5355_s19  ;;  %1032 = vrot.lane.b32.xlu0 %v449_v60, %s5354_s18  ;;  %s5379_s18 = smov 110  }
  0xfc   : > { %v5875_v23 = vpop.permute.xlu1 %748  ;;  %v747_v24 = vpop.permute.xlu0 %746 }
  0xfd   : > { %v761_v25 = vsel %vm758_vm9, %v5765_v20, %v747_v24  ;;  %v762_v26 = vsel %vm758_vm9, %v747_v24, %v5875_v23  ;;  %v5340_v20 = vld [vmem:[#allocation2 + $0x8] sm:$0xff] }
  0xfe   : > { %934 = vrot.lane.b32.xlu1 %v5588_v8, %s5356_s20  ;;  %891 = vrot.lane.b32.xlu0 %v5808_v36, %s5355_s19  ;;  %v1332_v17 = vpack.c.bf16 %v762_v26, %v717_v22  ;;  %v1331_v27 = vpack.c.bf16 %v761_v25, %v716_v21  ;;  %s5383_s19 = smov 116  }
 0x100   : > { %v475_v28 = vpop.permute.xlu1 %474  ;;  %v473_v30 = vpop.permute.xlu0 %472  ;;  %1423 = vmatprep.subr.bf16.mxu1 %v1332_v17 }
 0x101   : > { %v490_v31 = vsel %vm7197_vm15, %v473_v30, %v475_v28  ;;  %1424 = vmatpush1.bf16.msra.mxu1 %v1331_v27 }
 0x102   : > { %799 = vrot.lane.b32.xlu1 %v5588_v8, %s5357_s21  ;;  %936 = vrot.lane.b32.xlu0 %v5808_v36, %s5356_s20  ;;  %v1303_v32 = vpack.c.bf16 %v490_v31, %v5340_v20  ;;  %s5370_s20 = smov 71  }
 0x104   : > { %v612_v35 = vpop.permute.xlu1 %611  ;;  %v471_v37 = vpop.permute.xlu0 %470  ;;  %1388 = vmatprep.subr.bf16.mxu0 %v1303_v32 }
 0x105   : > { %v626_v38 = vsel %vm623_vm10, %v5799_v41, %v612_v35  ;;  %v489_v33 = vsel %vm7197_vm15, %v471_v37, %v473_v30 }
 0x106   : > { %844 = vrot.lane.b32.xlu1 %v5588_v8, %s5358_s22  ;;  %801 = vrot.lane.b32.xlu0 %v5808_v36, %s5357_s21  ;;  %v1302_v42 = vpack.c.bf16 %v489_v33, %v5341_v39  ;;  %s5371_s21 = smov 72  }
 0x108   : > { %v657_v43 = vpop.permute.xlu1 %656  ;;  %v5897_v45 = vpop.permute.xlu0 %613  ;;  %1389 = vmatpush1.bf16.msra.mxu0 %v1302_v42 }
 0x109   : > { %v671_v41 = vsel %vm668_vm11, %v5812_v44, %v657_v43  ;;  %v627_v48 = vsel %vm623_vm10, %v612_v35, %v5897_v45 }
 0x10a   : > { %709 = vrot.lane.b32.xlu1 %v5588_v8, %s5359_s23  ;;  %846 = vrot.lane.b32.xlu0 %v5808_v36, %s5358_s22  ;;  %v1322_v54 = vpack.c.bf16 %v671_v41, %v626_v38  ;;  %s5372_s22 = smov 73  }
 0x10b   : > { %1407 = vmatmul.mubr.bf16.vlgmr.msra.gmra.mxu0 %v5902_v47 }
 0x10c   : > { %v522_v49 = vpop.permute.xlu1 %521  ;;  %v5913_v51 = vpop.permute.xlu0 %658  ;;  %1488 = vmatprep.mubr.bf16.mxu0 %v5366_v40 }
 0x10d   : > { %v536_v52 = vsel %vm533_vm13, %v5846_v1, %v522_v49  ;;  %v672_v44 = vsel %vm668_vm11, %v657_v43, %v5913_v51 }
 0x10e   : > { %754 = vrot.lane.b32.xlu1 %v5588_v8, %s5360_s24  ;;  %711 = vrot.lane.b32.xlu0 %v5808_v36, %s5359_s23  ;;  %v1323_v53 = vpack.c.bf16 %v672_v44, %v627_v48 }
 0x110   : > { %v567_v55 = vpop.permute.xlu1 %566  ;;  %v5924_v57 = vpop.permute.xlu0 %523  ;;  %1425 = vmatprep.subr.bf16.mxu1 %v1323_v53 }
 0x111   : > { %v581_v58 = vsel %vm578_vm14, %v5853_v59, %v567_v55  ;;  %v537_v60 = vsel %vm533_vm13, %v522_v49, %v5924_v57  ;;  %1426 = vmatpush1.bf16.msra.mxu1 %v1322_v54  ;;  %v1160_v59 = vld [vmem:[#allocation2 + $0x10] sm:$0xff] }
 0x112   : > { %619 = vrot.lane.b32.xlu1 %v5588_v8, %s5361_s25  ;;  %756 = vrot.lane.b32.xlu0 %v5808_v36, %s5360_s24  ;;  %v1313_v1 = vpack.c.bf16 %v581_v58, %v536_v52 }
 0x114   : > { %v477_v7 = vpop.permute.xlu1 %476  ;;  %v5934_v62 = vpop.permute.xlu0 %568 }
 0x115   : > { %v491_v63 = vsel %vm7197_vm15, %v475_v28, %v477_v7  ;;  %v582_v56 = vsel %vm578_vm14, %v567_v55, %v5934_v62 }
 0x116   : > { %664 = vrot.lane.b32.xlu1 %v5588_v8, %s5362_s26  ;;  %621 = vrot.lane.b32.xlu0 %v5808_v36, %s5361_s25  ;;  %v1314_v0 = vpack.c.bf16 %v582_v56, %v537_v60  ;;  %v1304_v13 = vpack.c.bf16 %v491_v63, %v1160_v59  ;;  %s5373_s25 = smov 74  }
 0x118   : > { %v1073_v2 = vpop.permute.xlu1 %1072  ;;  %v5943_v3 = vpop.permute.xlu0 %478  ;;  %1427 = vmatprep.subr.bf16.mxu1 %v1314_v0 }
 0x119   : > { %v1087_v5 = vsel %vm1082_vm1, %v5695_v46, %v1073_v2  ;;  %v492_v9 = vsel %vm7197_vm15, %v477_v7, %v5943_v3  ;;  %1428 = vmatpush1.bf16.msra.mxu1 %v1313_v1 }
 0x11a   : > { %529 = vrot.lane.b32.xlu1 %v5588_v8, %s5363_s12  ;;  %666 = vrot.lane.b32.xlu0 %v5808_v36, %s5362_s26  ;;  %v1305_v12 = vpack.c.bf16 %v492_v9, %v5342_v10  ;;  %s5374_s26 = smov 89  }
 0x11c   : > { %v1121_v14 = vpop.permute.xlu1 %1120  ;;  %v5953_v15 = vpop.permute.xlu0 %1074  ;;  %1429 = vmatprep.subr.bf16.mxu1 %v1305_v12 }
 0x11d   : > { %v1135_v46 = vsel %vm1130_vm0, %v5705_v50, %v1121_v14  ;;  %v1088_v16 = vsel %vm1082_vm1, %v1073_v2, %v5953_v15  ;;  %1430 = vmatpush1.bf16.msra.mxu1 %v1304_v13 }
 0x11e   : > { %574 = vrot.lane.b32.xlu1 %v5588_v8, %s5364_s29  ;;  %531 = vrot.lane.b32.xlu0 %v5808_v36, %s5363_s12  ;;  %v1369_v25 = vpack.c.bf16 %v1135_v46, %v1087_v5 }
 0x120   : > { %v977_v19 = vpop.permute.xlu1 %976  ;;  %v5963_v21 = vpop.permute.xlu0 %1122  ;;  %1448 = vmatmul.mubr.bf16.vlgmr.msra.gmra.mxu1 %v5902_v47 }
 0x121   : > { %v991_v22 = vsel %vm986_vm2, %v5737_v4, %v977_v19  ;;  %v1136_v50 = vsel %vm1130_vm0, %v1121_v14, %v5963_v21  ;;  %1529 = vmatprep.mubr.bf16.mxu1 %v5366_v40 }
 0x122   : > { %484 = vrot.lane.b32.xlu1 %v5588_v8, %s7198_s30  ;;  %576 = vrot.lane.b32.xlu0 %v5808_v36, %s5364_s29  ;;  %v1370_v24 = vpack.c.bf16 %v1136_v50, %v1088_v16 }
 0x124   : > { %v1025_v26 = vpop.permute.xlu1 %1024  ;;  %v5975_v17 = vpop.permute.xlu0 %978  ;;  %1456 = vmatprep.subr.bf16.mxu0 %v1370_v24 }
 0x125   : > { %v1039_v4 = vsel %vm1034_vm3, %v5747_v11, %v1025_v26  ;;  %v992_v27 = vsel %vm986_vm2, %v977_v19, %v5975_v17  ;;  %1457 = vmatpush1.bf16.msra.mxu0 %v1369_v25 }
 0x126   : > { %486 = vrot.lane.b32.xlu0 %v5808_v36, %s7198_s30  ;;  %v1360_v32 = vpack.c.bf16 %v1039_v4, %v991_v22  ;;  %s7202_s30 = smov 127  }
 0x128   : > { %v886_v8 = vpop.permute.xlu1 %885  ;;  %v5983_v28 = vpop.permute.xlu0 %1026 }
 0x129   : > { %v898_v30 = vsel %vm893_vm4, %v5779_v29, %v886_v8  ;;  %v1040_v31 = vsel %vm1034_vm3, %v1025_v26, %v5983_v28 }
 0x12a   : > { %v1361_v20 = vpack.c.bf16 %v1040_v31, %v992_v27  ;;  %v1163_v27 = vld [vmem:[#allocation2 + $0x28] sm:$0xff] }
 0x12c   : > { %v931_v35 = vpop.permute.xlu1 %930  ;;  %v5989_v11 = vpop.permute.xlu0 %887  ;;  %1458 = vmatprep.subr.bf16.mxu0 %v1361_v20 }
 0x12d   : > { %v943_v37 = vsel %vm938_vm5, %v5789_v34, %v931_v35  ;;  %v899_v36 = vsel %vm893_vm4, %v886_v8, %v5989_v11  ;;  %1459 = vmatpush1.bf16.msra.mxu0 %v1360_v32 }
 0x12e   : > { %v1351_v43 = vpack.c.bf16 %v943_v37, %v898_v30 }
 0x130   : > { %v796_v38 = vpop.permute.xlu1 %795  ;;  %v5995_v33 = vpop.permute.xlu0 %932 }
 0x131   : > { %v808_v29 = vsel %vm803_vm6, %v5826_v6, %v796_v38  ;;  %v944_v39 = vsel %vm938_vm5, %v931_v35, %v5995_v33 }
 0x132   : > { %v1352_v42 = vpack.c.bf16 %v944_v39, %v899_v36 }
 0x134   : > { %v841_v41 = vpop.permute.xlu1 %840  ;;  %v6001_v48 = vpop.permute.xlu0 %797  ;;  %1460 = vmatprep.subr.bf16.mxu0 %v1352_v42 }
 0x135   : > { %v853_v34 = vsel %vm848_vm7, %v5837_v61, %v841_v41  ;;  %v809_v49 = vsel %vm803_vm6, %v796_v38, %v6001_v48  ;;  %1461 = vmatpush1.bf16.msra.mxu0 %v1351_v43 }
 0x136   : > { %v1342_v55 = vpack.c.bf16 %v853_v34, %v808_v29  ;;  %v5367_v29 = vmov 0.0  }
 0x138   : > { %v706_v52 = vpop.permute.xlu1 %705  ;;  %v6007_v44 = vpop.permute.xlu0 %842 }
 0x139   : > { %v718_v6 = vsel %vm713_vm8, %v5866_v18, %v706_v52  ;;  %v854_v53 = vsel %vm848_vm7, %v841_v41, %v6007_v44 }
 0x13a   : > { %v1343_v54 = vpack.c.bf16 %v854_v53, %v809_v49 }
 0x13c   : > { %v751_v58 = vpop.permute.xlu1 %750  ;;  %v6013_v60 = vpop.permute.xlu0 %707  ;;  %1462 = vmatprep.subr.bf16.mxu0 %v1343_v54 }
 0x13d   : > { %v763_v61 = vsel %vm758_vm9, %v5875_v23, %v751_v58  ;;  %v719_v7 = vsel %vm713_vm8, %v706_v52, %v6013_v60  ;;  %1463 = vmatpush1.bf16.msra.mxu0 %v1342_v55 }
 0x13e   : > { %v1333_v2 = vpack.c.bf16 %v763_v61, %v718_v6 }
 0x140   : > { %v616_v63 = vpop.permute.xlu1 %615  ;;  %v6019_v56 = vpop.permute.xlu0 %752 }
 0x141   : > { %v628_v18 = vsel %vm623_vm10, %v5897_v45, %v616_v63  ;;  %v764_v0 = vsel %vm758_vm9, %v751_v58, %v6019_v56 }
 0x142   : > { %v1334_v1 = vpack.c.bf16 %v764_v0, %v719_v7 }
 0x144   : > { %v661_v59 = vpop.permute.xlu1 %660  ;;  %v6025_v5 = vpop.permute.xlu0 %617  ;;  %1464 = vmatprep.subr.bf16.mxu0 %v1334_v1 }
 0x145   : > { %v673_v23 = vsel %vm668_vm11, %v5913_v51, %v661_v59  ;;  %v629_v9 = vsel %vm623_vm10, %v616_v63, %v6025_v5  ;;  %1465 = vmatpush1.bf16.msra.mxu0 %v1333_v2 }
 0x146   : > { %v1324_v46 = vpack.c.bf16 %v673_v23, %v628_v18 }
 0x148   : > { %v526_v10 = vpop.permute.xlu1 %525  ;;  %v6031_v12 = vpop.permute.xlu0 %662 }
 0x149   : > { %v538_v45 = vsel %vm533_vm13, %v5924_v57, %v526_v10  ;;  %v674_v13 = vsel %vm668_vm11, %v661_v59, %v6031_v12 }
 0x14a   : > { %v1325_v14 = vpack.c.bf16 %v674_v13, %v629_v9 }
 0x14c   : > { %v571_v16 = vpop.permute.xlu1 %570  ;;  %v6037_v19 = vpop.permute.xlu0 %527  ;;  %1466 = vmatprep.subr.bf16.mxu0 %v1325_v14 }
 0x14d   : > { %v583_v51 = vsel %vm578_vm14, %v5934_v62, %v571_v16  ;;  %v539_v22 = vsel %vm533_vm13, %v526_v10, %v6037_v19  ;;  %1467 = vmatpush1.bf16.msra.mxu0 %v1324_v46  ;;  %v1162_v62 = vld [vmem:[#allocation2 + $0x20] sm:$0xff] }
 0x14e   : > { %v1315_v4 = vpack.c.bf16 %v583_v51, %v538_v45 }
 0x150   : > { %v481_v50 = vpop.permute.xlu1 %480  ;;  %v6043_v24 = vpop.permute.xlu0 %572 }
 0x151   : > { %v493_v57 = vsel %vm7197_vm15, %v5943_v3, %v481_v50  ;;  %v584_v25 = vsel %vm578_vm14, %v571_v16, %v6043_v24 }
 0x152   : > { %v1316_v26 = vpack.c.bf16 %v584_v25, %v539_v22  ;;  %v1306_v3 = vpack.c.bf16 %v493_v57, %v1162_v62 }
 0x154   : > { %v1077_v8 = vpop.permute.xlu1 %1076  ;;  %v6049_v30 = vpop.permute.xlu0 %482  ;;  %1468 = vmatprep.subr.bf16.mxu0 %v1316_v26 }
 0x155   : > { %v1089_v31 = vsel %vm1082_vm1, %v5953_v15, %v1077_v8  ;;  %v494_v20 = vsel %vm7197_vm15, %v481_v50, %v6049_v30  ;;  %1469 = vmatpush1.bf16.msra.mxu0 %v1315_v4  ;;  %vm5368_vm15 = vmmov 0  }
 0x156   : > { %v1307_v32 = vpack.c.bf16 %v494_v20, %v1163_v27 }
 0x158   : > { %v1125_v35 = vpop.permute.xlu1 %1124  ;;  %v1079_v37 = vpop.permute.xlu0 %1078  ;;  %1470 = vmatprep.subr.bf16.mxu0 %v1307_v32 }
 0x159   : > { %v1137_v36 = vsel %vm1130_vm0, %v5963_v21, %v1125_v35  ;;  %v1090_v38 = vsel %vm1082_vm1, %v1077_v8, %v1079_v37  ;;  %1471 = vmatpush1.bf16.msra.mxu0 %v1306_v3 }
 0x15a   : > { %4920 = vmatprep.subr.bf16.mxu0 %v5367_v29  ;;  %v1371_v41 = vpack.c.bf16 %v1137_v36, %v1089_v31 }
 0x15c   : > { %v1081_v39 = vpop.permute.xlu1 %1080  ;;  %v1127_v15 = vpop.permute.xlu0 %1126  ;;  %1489 = vmatmul.mubr.bf16.vlgmr.msra.gmra.mxu0 %v5902_v47 }
 0x15d   : > { %v1091_v42 = vsel %vm1082_vm1, %v1079_v37, %v1081_v39  ;;  %v1138_v43 = vsel %vm1130_vm0, %v1125_v35, %v1127_v15  ;;  %4936 = vmatprep.mubr.msk.bf16.mxu0 %vm5368_vm15, %v5367_v29 }
 0x15e   : > { %1109 = vst.msk [vmem:[#allocation2 + $0x430] sm:$0xff] %vm459_vm12, %v1091_v42  ;;  %v1372_v21 = vpack.c.bf16 %v1138_v43, %v1090_v38 }
 0x160   : > { %v981_v34 = vpop.permute.xlu1 %980  ;;  %v1129_v49 = vpop.permute.xlu0 %1128  ;;  %1497 = vmatprep.subr.bf16.mxu1 %v1372_v21 }
 0x161   : > { %v993_v52 = vsel %vm986_vm2, %v5975_v17, %v981_v34  ;;  %v1139_v6 = vsel %vm1130_vm0, %v1127_v15, %v1129_v49  ;;  %1498 = vmatpush1.bf16.msra.mxu1 %v1371_v41  ;;  %vm7200_vm0 = vcmask 1039360  }
 0x162   : > { %1157 = vst.msk [vmem:[#allocation2 + $0x478] sm:$0xff] %vm459_vm12, %v1139_v6  ;;  %vm7201_vm1 = vmmov %vm7200_vm0 }
 0x164   : > { %v1029_v53 = vpop.permute.xlu1 %1028  ;;  %v983_v54 = vpop.permute.xlu0 %982 }
 0x165   : > { %v1041_v55 = vsel %vm1034_vm3, %v5983_v28, %v1029_v53  ;;  %v994_v58 = vsel %vm986_vm2, %v981_v34, %v983_v54  ;;  %v1292_v0 = vld [vmem:[#allocation2 + $0x430] sm:$0xff] }
 0x166   : > { %v1362_v59 = vpack.c.bf16 %v1041_v55, %v993_v52 }
 0x168   : > { %v985_v61 = vpop.permute.xlu1 %984  ;;  %v1031_v7 = vpop.permute.xlu0 %1030 }
 0x169   : > { %v995_v63 = vsel %vm986_vm2, %v983_v54, %v985_v61  ;;  %v1042_v18 = vsel %vm1034_vm3, %v1029_v53, %v1031_v7  ;;  %v1301_v17 = vld [vmem:[#allocation2 + $0x478] sm:$0xff]  ;;  %vm2928_vm2 = vcmask 1044480  }
 0x16a   : > { %1013 = vst.msk [vmem:[#allocation2 + $0x3a0] sm:$0xff] %vm459_vm12, %v995_v63  ;;  %v1373_v1 = vpack.c.bf16 %v1301_v17, %v1292_v0  ;;  %v1363_v2 = vpack.c.bf16 %v1042_v18, %v994_v58 }
 0x16c   : > { %v890_v23 = vpop.permute.xlu1 %889  ;;  %v1033_v9 = vpop.permute.xlu0 %1032  ;;  %4921 = vmatpush3.bf16.msra.mxu0 %v1373_v1  ;;  %1499 = vmatprep.subr.bf16.mxu1 %v1363_v2 }
 0x16d   : > { %v900_v28 = vsel %vm893_vm4, %v5989_v11, %v890_v23  ;;  %v1043_v10 = vsel %vm1034_vm3, %v1031_v7, %v1033_v9  ;;  %1500 = vmatpush1.bf16.msra.mxu1 %v1362_v59  ;;  %4922 = vmatprep.subr.bf16.mxu0 %v5367_v29  ;;  %vm2929_vm3 = vcmask 1045504  }
 0x16e   : > { %1061 = vst.msk [vmem:[#allocation2 + $0x3e8] sm:$0xff] %vm459_vm12, %v1043_v10 }
 0x170   : > { %v935_v45 = vpop.permute.xlu1 %934  ;;  %v892_v13 = vpop.permute.xlu0 %891 }
 0x171   : > { %v945_v14 = vsel %vm938_vm5, %v5995_v33, %v935_v45  ;;  %v901_v46 = vsel %vm893_vm4, %v890_v23, %v892_v13  ;;  %919 = vst.msk [vmem:[#allocation2 + $0x310] sm:$0xff] %vm459_vm12, %v892_v13  ;;  %v1274_v50 = vld [vmem:[#allocation2 + $0x3a0] sm:$0xff] }
 0x172   : > { %v1353_v4 = vpack.c.bf16 %v945_v14, %v900_v28 }
 0x174   : > { %v800_v16 = vpop.permute.xlu1 %799  ;;  %v937_v51 = vpop.permute.xlu0 %936 }
 0x175   : > { %v810_v11 = vsel %vm803_vm6, %v6001_v48, %v800_v16  ;;  %v946_v22 = vsel %vm938_vm5, %v935_v45, %v937_v51  ;;  %964 = vst.msk [vmem:[#allocation2 + $0x358] sm:$0xff] %vm459_vm12, %v937_v51  ;;  %v1283_v57 = vld [vmem:[#allocation2 + $0x3e8] sm:$0xff]  ;;  %v1165_v51 = vld [vmem:[#allocation2 + $0x38] sm:$0xff] }
 0x176   : > { %v1364_v25 = vpack.c.bf16 %v1283_v57, %v1274_v50  ;;  %v1354_v26 = vpack.c.bf16 %v946_v22, %v901_v46  ;;  %v1164_v22 = vld [vmem:[#allocation2 + $0x30] sm:$0xff]  ;;  %v5049_v57 = vld [vmem:[%s7187_s4 + $0xac] ss:$12 sps:$4 sm:$0xff]  }
 0x178   : > { %v845_v27 = vpop.permute.xlu1 %844  ;;  %v802_v33 = vpop.permute.xlu0 %801  ;;  %4923 = vmatpush3.bf16.msra.mxu0 %v1364_v25  ;;  %1501 = vmatprep.subr.bf16.mxu1 %v1354_v26  ;;  %v1256_v20 = vld [vmem:[#allocation2 + $0x310] sm:$0xff] }
 0x179   : > { %v855_v8 = vsel %vm848_vm7, %v6007_v44, %v845_v27  ;;  %v811_v62 = vsel %vm803_vm6, %v800_v16, %v802_v33  ;;  %829 = vst.msk [vmem:[#allocation2 + $0x280] sm:$0xff] %vm459_vm12, %v802_v33  ;;  %4924 = vmatprep.subr.bf16.mxu0 %v5367_v29  ;;  %1502 = vmatpush1.bf16.msra.mxu1 %v1353_v4  ;;  %v5047_v33 = vld [vmem:[%s7187_s4 + $0xa8] ss:$12 sps:$4 sm:$0xff]  }
 0x17a   : > { %v1344_v36 = vpack.c.bf16 %v855_v8, %v810_v11  ;;  %v1166_v8 = vld [vmem:[#allocation2 + $0x40] sm:$0xff] }
 0x17c   : > { %v710_v48 = vpop.permute.xlu1 %709  ;;  %v847_v31 = vpop.permute.xlu0 %846  ;;  %v1265_v32 = vld [vmem:[#allocation2 + $0x358] sm:$0xff] }
 0x17d   : > { %v720_v3 = vsel %vm713_vm8, %v6013_v60, %v710_v48  ;;  %v856_v35 = vsel %vm848_vm7, %v845_v27, %v847_v31  ;;  %874 = vst.msk [vmem:[#allocation2 + $0x2c8] sm:$0xff] %vm459_vm12, %v847_v31  ;;  %v1355_v37 = vpack.c.bf16 %v1265_v32, %v1256_v20  ;;  %v5091_v31 = vld [vmem:[%s7187_s4 + $0x22c] ss:$12 sps:$4 sm:$0xff]   ;;  %v5050_v32 = vld [vmem:[%s7187_s4 + $0x90] ss:$12 sps:$4 sm:$0xff]   ;;  %vm3359_vm7 = vcmask 89088  }
 0x17e   : > { %v1345_v44 = vpack.c.bf16 %v856_v35, %v811_v62  ;;  %v5052_v62 = vld [vmem:[%s7187_s4 + $0x94] ss:$12 sps:$4 sm:$0xff]  }
 0x17f   : > { %4925 = vmatpush3.bf16.msra.mxu0 %v1355_v37  ;;  %v5089_v35 = vld [vmem:[%s7187_s4 + $0x228] ss:$12 sps:$4 sm:$0xff]  }
 0x180   : > { %v755_v38 = vpop.permute.xlu1 %754  ;;  %v712_v39 = vpop.permute.xlu0 %711  ;;  %4926 = vmatprep.subr.bf16.mxu0 %v5367_v29  ;;  %1503 = vmatprep.subr.bf16.mxu1 %v1345_v44  ;;  %v1238_v21 = vld [vmem:[#allocation2 + $0x280] sm:$0xff] }
 0x181   : > { %v765_v15 = vsel %vm758_vm9, %v6019_v56, %v755_v38  ;;  %v721_v42 = vsel %vm713_vm8, %v710_v48, %v712_v39  ;;  %739 = vst.msk [vmem:[#allocation2 + $0x1f0] sm:$0xff] %vm459_vm12, %v712_v39  ;;  %1504 = vmatpush1.bf16.msra.mxu1 %v1344_v36  ;;  %v5097_v37 = vld [vmem:[%s7187_s4 + $0x214] ss:$12 sps:$4 sm:$0xff]   ;;  %v5053_v44 = vld [vmem:[%s7187_s4 + $0x78] ss:$12 sps:$4 sm:$0xff]  }
 0x182   : > { %v1335_v56 = vpack.c.bf16 %v765_v15, %v720_v3  ;;  %v5055_v3 = vld [vmem:[%s7187_s4 + $0x7c] ss:$12 sps:$4 sm:$0xff]   ;;  %v5058_v36 = vld [vmem:[%s7187_s4 + $0x64] ss:$12 sps:$4 sm:$0xff]   ;;  %v5061_v15 = vld [vmem:[%s7187_s4 + $0x4c] ss:$12 sps:$4 sm:$0xff]  }
 0x183   : > { %v5103_v39 = vld [vmem:[%s7187_s4 + $0x1fc] ss:$12 sps:$4 sm:$0xff]  }
 0x184   : > { %v620_v60 = vpop.permute.xlu1 %619  ;;  %v757_v43 = vpop.permute.xlu0 %756  ;;  %v1247_v41 = vld [vmem:[#allocation2 + $0x2c8] sm:$0xff] }
 0x185   : > { %v630_v34 = vsel %vm623_vm10, %v6025_v5, %v620_v60  ;;  %v766_v49 = vsel %vm758_vm9, %v755_v38, %v757_v43  ;;  %784 = vst.msk [vmem:[#allocation2 + $0x238] sm:$0xff] %vm459_vm12, %v757_v43  ;;  %v1346_v52 = vpack.c.bf16 %v1247_v41, %v1238_v21  ;;  %v5095_v38 = vld [vmem:[%s7187_s4 + $0x210] ss:$12 sps:$4 sm:$0xff]   ;;  %v5059_v43 = vld [vmem:[%s7187_s4 + $0x48] ss:$12 sps:$4 sm:$0xff]  }
 0x186   : > { %v1336_v6 = vpack.c.bf16 %v766_v49, %v721_v42  ;;  %v5101_v42 = vld [vmem:[%s7187_s4 + $0x1f8] ss:$12 sps:$4 sm:$0xff]   ;;  %v5064_v21 = vld [vmem:[%s7187_s4 + $0x34] ss:$12 sps:$4 sm:$0xff]   ;;  %v5062_v49 = vld [vmem:[%s7187_s4 + $0x30] ss:$12 sps:$4 sm:$0xff]  }
 0x187   : > { %4927 = vmatpush3.bf16.msra.mxu0 %v1346_v52  ;;  %v5107_v41 = vld [vmem:[%s7187_s4 + $0x1e0] ss:$12 sps:$4 sm:$0xff]   ;;  %v5067_v52 = vld [vmem:[%s7187_s4 + $0x1c] ss:$12 sps:$4 sm:$0xff]  }
 0x188   : > { %v665_v53 = vpop.permute.xlu1 %664  ;;  %v622_v54 = vpop.permute.xlu0 %621  ;;  %4928 = vmatprep.subr.bf16.mxu0 %v5367_v29  ;;  %1505 = vmatprep.subr.bf16.mxu1 %v1336_v6  ;;  %v1220_v7 = vld [vmem:[#allocation2 + $0x1f0] sm:$0xff] }
 0x189   : > { %v675_v55 = vsel %vm668_vm11, %v6031_v12, %v665_v53  ;;  %v631_v58 = vsel %vm623_vm10, %v620_v60, %v622_v54  ;;  %649 = vst.msk [vmem:[#allocation2 + $0x160] sm:$0xff] %vm459_vm12, %v622_v54  ;;  %1506 = vmatpush1.bf16.msra.mxu1 %v1335_v56  ;;  %v5109_v60 = vld [vmem:[%s7187_s4 + $0x1e4] ss:$12 sps:$4 sm:$0xff]   ;;  %v5113_v6 = vld [vmem:[%s7187_s4 + $0x1c8] ss:$12 sps:$4 sm:$0xff]   ;;  %vm3560_vm10 = vcmask 588800  }
 0x18a   : > { %v1326_v12 = vpack.c.bf16 %v675_v55, %v630_v34  ;;  %v5115_v34 = vld [vmem:[%s7187_s4 + $0x1cc] ss:$12 sps:$4 sm:$0xff]   ;;  %v5121_v56 = vld [vmem:[%s7187_s4 + $0x1b4] ss:$12 sps:$4 sm:$0xff]   ;;  %v5070_v54 = vld [vmem:[%s7187_s4 + $0x4] ss:$12 sps:$4 sm:$0xff]  }
 0x18b   : > { %v5119_v55 = vld [vmem:[%s7187_s4 + $0x1b0] ss:$12 sps:$4 sm:$0xff]  }
 0x18c   : > { %v530_v5 = vpop.permute.xlu1 %529  ;;  %v667_v61 = vpop.permute.xlu0 %666  ;;  %v1229_v63 = vld [vmem:[#allocation2 + $0x238] sm:$0xff] }
 0x18d   : > { %v540_v18 = vsel %vm533_vm13, %v6037_v19, %v530_v5  ;;  %v676_v0 = vsel %vm668_vm11, %v665_v53, %v667_v61  ;;  %694 = vst.msk [vmem:[#allocation2 + $0x1a8] sm:$0xff] %vm459_vm12, %v667_v61  ;;  %v1337_v17 = vpack.c.bf16 %v1229_v63, %v1220_v7  ;;  %v5065_v53 = vld [vmem:[%s7187_s4 + $0x18] ss:$12 sps:$4 sm:$0xff]   ;;  %vm3575_vm11 = vcmask 580608  }
 0x18e   : > { %v1327_v1 = vpack.c.bf16 %v676_v0, %v631_v58  ;;  %v5127_v58 = vld [vmem:[%s7187_s4 + $0x19c] ss:$12 sps:$4 sm:$0xff]   ;;  %v5073_v61 = vld [vmem:[%s7187_s4 + $0x16c] ss:$12 sps:$4 sm:$0xff]   ;;  %v5133_v63 = vld [vmem:[%s7187_s4 + $0x184] ss:$12 sps:$4 sm:$0xff]  }
 0x18f   : > { %4929 = vmatpush3.bf16.msra.mxu0 %v1337_v17  ;;  %v5125_v7 = vld [vmem:[%s7187_s4 + $0x198] ss:$12 sps:$4 sm:$0xff]   ;;  %v5076_v0 = vld [vmem:[%s7187_s4 + $0x154] ss:$12 sps:$4 sm:$0xff]  }
 0x190   : > { %v575_v2 = vpop.permute.xlu1 %574  ;;  %v532_v59 = vpop.permute.xlu0 %531  ;;  %4930 = vmatprep.subr.bf16.mxu0 %v5367_v29  ;;  %1507 = vmatprep.subr.bf16.mxu1 %v1327_v1  ;;  %v1202_v10 = vld [vmem:[#allocation2 + $0x160] sm:$0xff]  ;;  %v5139_v1 = vld [vmem:[%s7187_s4 + $0x2ec] ss:$12 sps:$4 sm:$0xff]  }
 0x191   : > { %v585_v23 = vsel %vm578_vm14, %v6043_v24, %v575_v2  ;;  %v541_v9 = vsel %vm533_vm13, %v530_v5, %v532_v59  ;;  %559 = vst.msk [vmem:[#allocation2 + $0xd0] sm:$0xff] %vm459_vm12, %v532_v59  ;;  %1508 = vmatpush1.bf16.msra.mxu1 %v1326_v12  ;;  %v5068_v5 = vld [vmem:[%s7187_s4] ss:$12 sps:$4 sm:$0xff]   ;;  %v5074_v12 = vld [vmem:[%s7187_s4 + $0x150] ss:$12 sps:$4 sm:$0xff]  }
 0x192   : > { %v1317_v24 = vpack.c.bf16 %v585_v23, %v540_v18  ;;  %v5071_v18 = vld [vmem:[%s7187_s4 + $0x168] ss:$12 sps:$4 sm:$0xff]   ;;  %v5131_v17 = vld [vmem:[%s7187_s4 + $0x180] ss:$12 sps:$4 sm:$0xff]  }
 0x193   : > { %v5137_v59 = vld [vmem:[%s7187_s4 + $0x2e8] ss:$12 sps:$4 sm:$0xff]  }
 0x194   : > { %v485_v19 = vpop.permute.xlu1 %484  ;;  %v577_v28 = vpop.permute.xlu0 %576  ;;  %v1211_v45 = vld [vmem:[#allocation2 + $0x1a8] sm:$0xff]  ;;  %v5145_v23 = vld [vmem:[%s7187_s4 + $0x2d4] ss:$12 sps:$4 sm:$0xff]  }
 0x195   : > { %v495_v13 = vsel %vm7200_vm0, %v6049_v30, %v485_v19  ;;  %v586_v14 = vsel %vm578_vm14, %v575_v2, %v577_v28  ;;  %604 = vst.msk [vmem:[#allocation2 + $0x118] sm:$0xff] %vm459_vm12, %v577_v28  ;;  %v1328_v46 = vpack.c.bf16 %v1211_v45, %v1202_v10  ;;  %v5079_v2 = vld [vmem:[%s7187_s4 + $0x13c] ss:$12 sps:$4 sm:$0xff]   ;;  %v5080_v45 = vld [vmem:[%s7187_s4 + $0x120] ss:$12 sps:$4 sm:$0xff]   ;;  %vm3545_vm0 = vcmask 596992  }
 0x196   : > { %v1318_v16 = vpack.c.bf16 %v586_v14, %v541_v9  ;;  %v1308_v25 = vpack.c.bf16 %v495_v13, %v1164_v22  ;;  %v5077_v9 = vld [vmem:[%s7187_s4 + $0x138] ss:$12 sps:$4 sm:$0xff]   ;;  %v5143_v28 = vld [vmem:[%s7187_s4 + $0x2d0] ss:$12 sps:$4 sm:$0xff]  }
 0x197   : > { %4931 = vmatpush3.bf16.msra.mxu0 %v1328_v46  ;;  %v5151_v10 = vld [vmem:[%s7187_s4 + $0x2bc] ss:$12 sps:$4 sm:$0xff]   ;;  %v5085_v13 = vld [vmem:[%s7187_s4 + $0x10c] ss:$12 sps:$4 sm:$0xff]  }
 0x198   : > { %v487_v11 = vpop.permute.xlu0 %486  ;;  %4932 = vmatprep.subr.bf16.mxu0 %v5367_v29  ;;  %1509 = vmatprep.subr.bf16.mxu1 %v1318_v16  ;;  %v1184_v26 = vld [vmem:[#allocation2 + $0xd0] sm:$0xff]  ;;  %v5149_v46 = vld [vmem:[%s7187_s4 + $0x2b8] ss:$12 sps:$4 sm:$0xff]  }
 0x199   : > { %v496_v50 = vsel %vm7201_vm1, %v485_v19, %v487_v11  ;;  %514 = vst.msk [vmem:[#allocation2 + $0x88] sm:$0xff] %vm459_vm12, %v487_v11  ;;  %1510 = vmatpush1.bf16.msra.mxu1 %v1317_v24  ;;  %v5082_v19 = vld [vmem:[%s7187_s4 + $0x124] ss:$12 sps:$4 sm:$0xff]   ;;  %v5083_v24 = vld [vmem:[%s7187_s4 + $0x108] ss:$12 sps:$4 sm:$0xff]   ;;  %vm3500_vm1 = vcmask 736256  }
 0x19a   : > { %v1309_v30 = vpack.c.bf16 %v496_v50, %v1165_v51  ;;  %v5157_v16 = vld [vmem:[%s7187_s4 + $0x2a4] ss:$12 sps:$4 sm:$0xff]   ;;  %v5088_v11 = vld [vmem:[%s7187_s4 + $0xf4] ss:$12 sps:$4 sm:$0xff]  }
 0x19b   : > { %v5155_v50 = vld [vmem:[%s7187_s4 + $0x2a0] ss:$12 sps:$4 sm:$0xff]  }
 0x19c   : > { %v1193_v4 = vld [vmem:[#allocation2 + $0x118] sm:$0xff]  ;;  %1511 = vmatprep.subr.bf16.mxu1 %v1309_v30 }
 0x19d   : > { %v1319_v27 = vpack.c.bf16 %v1193_v4, %v1184_v26  ;;  %1512 = vmatpush1.bf16.msra.mxu1 %v1308_v25  ;;  %v5086_v25 = vld [vmem:[%s7187_s4 + $0xf0] ss:$12 sps:$4 sm:$0xff]  }
 0x19e   : > { %2941 = vmatprep.subr.bf16.mxu1 %v5049_v57  ;;  %v5163_v57 = vld [vmem:[%s7187_s4 + $0x28c] ss:$12 sps:$4 sm:$0xff]   ;;  %v5094_v4 = vld [vmem:[%s7187_s4 + $0xdc] ss:$12 sps:$4 sm:$0xff]  }
 0x19f   : > { %4933 = vmatpush3.bf16.msra.mxu0 %v1319_v27  ;;  %v5161_v27 = vld [vmem:[%s7187_s4 + $0x288] ss:$12 sps:$4 sm:$0xff]  }
 0x1a0   : > { %4934 = vmatprep.subr.bf16.mxu0 %v5367_v29  ;;  %v1175_v48 = vld [vmem:[#allocation2 + $0x88] sm:$0xff]  ;;  %1530 = vmatmul.mubr.bf16.vlgmr.msra.gmra.mxu1 %v5902_v47 }
 0x1a1   : > { %v1310_v20 = vpack.c.bf16 %v1175_v48, %v1166_v8  ;;  %2942 = vmatpush1.bf16.msra.mxu1 %v5047_v33  ;;  %v5169_v33 = vld [vmem:[%s7187_s4 + $0x274] ss:$12 sps:$4 sm:$0xff]   ;;  %v5092_v8 = vld [vmem:[%s7187_s4 + $0xd8] ss:$12 sps:$4 sm:$0xff]   ;;  %v5167_v48 = vld [vmem:[%s7187_s4 + $0x270] ss:$12 sps:$4 sm:$0xff]  }
 0x1a2   : > { %2943 = vmatprep.subr.bf16.mxu1 %v5052_v62  ;;  %v5100_v62 = vld [vmem:[%s7187_s4 + $0xc4] ss:$12 sps:$4 sm:$0xff]  }
 0x1a3   : > { %4935 = vmatpush3.bf16.msra.mxu0 %v1310_v20  ;;  %v5098_v20 = vld [vmem:[%s7187_s4 + $0xc0] ss:$12 sps:$4 sm:$0xff]  }
 0x1a4   : > { %2982 = vmatprep.subr.bf16.mxu0 %v5091_v31  ;;  %v5175_v31 = vld [vmem:[%s7187_s4 + $0x25c] ss:$12 sps:$4 sm:$0xff]  }
 0x1a5   : > { %2944 = vmatpush1.bf16.msra.mxu1 %v5050_v32  ;;  %v5106_v32 = vld [vmem:[%s7187_s4 + $0x3ac] ss:$12 sps:$4 sm:$0xff]  }
 0x1a6   : > { %4937 = vmatmul.mubr.bf16.vlgmr.msra.gmra.mxu0 %v5902_v47  ;;  %2945 = vmatprep.subr.bf16.mxu1 %v5055_v3  ;;  %v5056_v47 = vld [vmem:[%s7187_s4 + $0x60] ss:$12 sps:$4 sm:$0xff]   ;;  %v5173_v3 = vld [vmem:[%s7187_s4 + $0x258] ss:$12 sps:$4 sm:$0xff]  }
 0x1a7   : > { %2983 = vmatpush1.bf16.msra.mxu0 %v5089_v35 }
 0x1a8   : > { %2984 = vmatprep.subr.bf16.mxu0 %v5097_v37  ;;  %v5181_v37 = vld [vmem:[%s7187_s4 + $0x244] ss:$12 sps:$4 sm:$0xff]  }
 0x1a9   : > { %2946 = vmatpush1.bf16.msra.mxu1 %v5053_v44  ;;  %v5104_v44 = vld [vmem:[%s7187_s4 + $0x3a8] ss:$12 sps:$4 sm:$0xff]  }
 0x1aa   : > { %2947 = vmatprep.subr.bf16.mxu1 %v5058_v36  ;;  %v5112_v36 = vld [vmem:[%s7187_s4 + $0x394] ss:$12 sps:$4 sm:$0xff]  }
 0x1ab   : > { %2985 = vmatpush1.bf16.msra.mxu0 %v5095_v38  ;;  %v5179_v38 = vld [vmem:[%s7187_s4 + $0x240] ss:$12 sps:$4 sm:$0xff]  }
 0x1ac   : > { %2986 = vmatprep.subr.bf16.mxu0 %v5103_v39 }
 0x1ad   : > { %2948 = vmatpush1.bf16.msra.mxu1 %v5056_v47  ;;  %v5193_v47 = vld [vmem:[%s7187_s4 + $0x52c] ss:$12 sps:$4 sm:$0xff]  }
 0x1ae   : > { %2949 = vmatprep.subr.bf16.mxu1 %v5061_v15  ;;  %v5110_v15 = vld [vmem:[%s7187_s4 + $0x390] ss:$12 sps:$4 sm:$0xff]  }
 0x1af   : > { %2987 = vmatpush1.bf16.msra.mxu0 %v5101_v42  ;;  %v5118_v42 = vld [vmem:[%s7187_s4 + $0x37c] ss:$12 sps:$4 sm:$0xff]  }
 0x1b0   : > { %2988 = vmatprep.subr.bf16.mxu0 %v5109_v60 }
 0x1b1   : > { %2950 = vmatpush1.bf16.msra.mxu1 %v5059_v43 }
 0x1b2   : > { %2951 = vmatprep.subr.bf16.mxu1 %v5064_v21 }
 0x1b3   : > { %2989 = vmatpush1.bf16.msra.mxu0 %v5107_v41  ;;  %v5191_v41 = vld [vmem:[%s7187_s4 + $0x528] ss:$12 sps:$4 sm:$0xff]  }
 0x1b4   : > { %2990 = vmatprep.subr.bf16.mxu0 %v5115_v34 }
 0x1b5   : > { %2952 = vmatpush1.bf16.msra.mxu1 %v5062_v49  ;;  %v5196_v49 = vld [vmem:[%s7187_s4 + $0x514] ss:$12 sps:$4 sm:$0xff]  }
 0x1b6   : > { %2953 = vmatprep.subr.bf16.mxu1 %v5067_v52  ;;  %v5116_v52 = vld [vmem:[%s7187_s4 + $0x378] ss:$12 sps:$4 sm:$0xff]  }
 0x1b7   : > { %2991 = vmatpush1.bf16.msra.mxu0 %v5113_v6  ;;  %v5124_v6 = vld [vmem:[%s7187_s4 + $0x364] ss:$12 sps:$4 sm:$0xff]  }
 0x1b8   : > { %2992 = vmatprep.subr.bf16.mxu0 %v5121_v56 }
 0x1b9   : > { %2954 = vmatpush1.bf16.msra.mxu1 %v5065_v53  ;;  %v5194_v53 = vld [vmem:[%s7187_s4 + $0x510] ss:$12 sps:$4 sm:$0xff]  }
 0x1ba   : > { %2955 = vmatprep.subr.bf16.mxu1 %v5070_v54  ;;  %v5199_v54 = vld [vmem:[%s7187_s4 + $0x4fc] ss:$12 sps:$4 sm:$0xff]  }
 0x1bb   : > { %2993 = vmatpush1.bf16.msra.mxu0 %v5119_v55  ;;  %v5122_v55 = vld [vmem:[%s7187_s4 + $0x360] ss:$12 sps:$4 sm:$0xff]  }
 0x1bc   : > { %2994 = vmatprep.subr.bf16.mxu0 %v5127_v58  ;;  %v5130_v58 = vld [vmem:[%s7187_s4 + $0x34c] ss:$12 sps:$4 sm:$0xff]  }
 0x1bd   : > { %2956 = vmatpush1.bf16.msra.mxu1 %v5068_v5  ;;  %v5197_v5 = vld [vmem:[%s7187_s4 + $0x4f8] ss:$12 sps:$4 sm:$0xff]  }
 0x1be   : > { %2957 = vmatprep.subr.bf16.mxu1 %v5073_v61  ;;  %v5202_v61 = vld [vmem:[%s7187_s4 + $0x4e4] ss:$12 sps:$4 sm:$0xff]  }
 0x1bf   : > { %2995 = vmatpush1.bf16.msra.mxu0 %v5125_v7  ;;  %v5128_v7 = vld [vmem:[%s7187_s4 + $0x348] ss:$12 sps:$4 sm:$0xff]  }
 0x1c0   : > { %2996 = vmatprep.subr.bf16.mxu0 %v5133_v63  ;;  %v5136_v63 = vld [vmem:[%s7187_s4 + $0x334] ss:$12 sps:$4 sm:$0xff]  }
 0x1c1   : > { %2958 = vmatpush2.bf16.msra.mxu1 %v5071_v18  ;;  %v5200_v18 = vld [vmem:[%s7187_s4 + $0x4e0] ss:$12 sps:$4 sm:$0xff]  }
 0x1c2   : > { %2959 = vmatprep.subr.bf16.mxu1 %v5076_v0  ;;  %v5205_v0 = vld [vmem:[%s7187_s4 + $0x4cc] ss:$12 sps:$4 sm:$0xff]  }
 0x1c3   : > { %2997 = vmatpush1.bf16.msra.mxu0 %v5131_v17  ;;  %v5134_v17 = vld [vmem:[%s7187_s4 + $0x330] ss:$12 sps:$4 sm:$0xff]  }
 0x1c4   : > { %2998 = vmatprep.subr.bf16.mxu0 %v5139_v1  ;;  %v5142_v1 = vld [vmem:[%s7187_s4 + $0x31c] ss:$12 sps:$4 sm:$0xff]  }
 0x1c5   : > { %2960 = vmatpush2.bf16.msra.mxu1 %v5074_v12  ;;  %v5203_v12 = vld [vmem:[%s7187_s4 + $0x4c8] ss:$12 sps:$4 sm:$0xff]  }
 0x1c6   : > { %2961 = vmatprep.subr.bf16.mxu1 %v5079_v2  ;;  %v5208_v2 = vld [vmem:[%s7187_s4 + $0x4b4] ss:$12 sps:$4 sm:$0xff]  }
 0x1c7   : > { %2999 = vmatpush2.bf16.msra.mxu0 %v5137_v59  ;;  %v5140_v59 = vld [vmem:[%s7187_s4 + $0x318] ss:$12 sps:$4 sm:$0xff]  }
 0x1c8   : > { %3000 = vmatprep.subr.bf16.mxu0 %v5145_v23  ;;  %v5148_v23 = vld [vmem:[%s7187_s4 + $0x304] ss:$12 sps:$4 sm:$0xff]  }
 0x1c9   : > { %2962 = vmatpush2.bf16.msra.mxu1 %v5077_v9  ;;  %v5206_v9 = vld [vmem:[%s7187_s4 + $0x4b0] ss:$12 sps:$4 sm:$0xff]  }
 0x1ca   : > { %2963 = vmatprep.subr.bf16.mxu1 %v5082_v19  ;;  %v5211_v19 = vld [vmem:[%s7187_s4 + $0x49c] ss:$12 sps:$4 sm:$0xff]  }
 0x1cb   : > { %v1408_v14 = vpop.f32.mrf.mxu0  ;;  %3001 = vmatpush2.bf16.msra.mxu0 %v5143_v28  ;;  %v5146_v28 = vld [vmem:[%s7187_s4 + $0x300] ss:$12 sps:$4 sm:$0xff]  }
 0x1cc   : > { %3002 = vmatprep.subr.bf16.mxu0 %v5151_v10  ;;  %v6322_v35 = vpack.c.bf16 %v1408_v14, %v1408_v14  ;;  %v5154_v10 = vld [vmem:[%s7187_s4 + $0x46c] ss:$12 sps:$4 sm:$0xff]   ;;  %v5152_v14 = vld [vmem:[%s7187_s4 + $0x468] ss:$12 sps:$4 sm:$0xff]  }
 0x1cd   : > { %2964 = vmatpush2.bf16.msra.mxu1 %v5080_v45  ;;  %v1410_v51 = vpop.f32.mrf.mxu0  ;;  %v5209_v45 = vld [vmem:[%s7187_s4 + $0x498] ss:$12 sps:$4 sm:$0xff]  }
 0x1ce   : > { %2965 = vmatprep.subr.bf16.mxu1 %v5085_v13  ;;  %v6280_v22 = vpack.c.bf16 %v1410_v51, %v1410_v51  ;;  %v5214_v13 = vld [vmem:[%s7187_s4 + $0x484] ss:$12 sps:$4 sm:$0xff]  }
 0x1cf   : > { %3003 = vmatpush2.bf16.msra.mxu0 %v5149_v46  ;;  %v1412_v30 = vpop.f32.mrf.mxu0  ;;  %v5160_v46 = vld [vmem:[%s7187_s4 + $0x454] ss:$12 sps:$4 sm:$0xff]   ;;  %v5158_v51 = vld [vmem:[%s7187_s4 + $0x450] ss:$12 sps:$4 sm:$0xff]  }
 0x1d0   : > { %2973 = vmatprep.mubr.bf16.mxu1 %v6280_v22  ;;  %3004 = vmatprep.subr.bf16.mxu0 %v5157_v16  ;;  %v5212_v16 = vld [vmem:[%s7187_s4 + $0x480] ss:$12 sps:$4 sm:$0xff]  }
 0x1d1   : > { %2966 = vmatpush2.bf16.msra.mxu1 %v5083_v24  ;;  %v1413_v26 = vpop.f32.mrf.mxu0  ;;  %v5217_v24 = vld [vmem:[%s7187_s4 + $0x5ec] ss:$12 sps:$4 sm:$0xff]   ;;  %v5220_v30 = vld [vmem:[%s7187_s4 + $0x5d4] ss:$12 sps:$4 sm:$0xff]  }
 0x1d2   : > { %2967 = vmatprep.subr.bf16.mxu1 %v5088_v11  ;;  %v5166_v11 = vld [vmem:[%s7187_s4 + $0x43c] ss:$12 sps:$4 sm:$0xff]  }
 0x1d3   : > { %3005 = vmatpush2.bf16.msra.mxu0 %v5155_v50  ;;  %v5215_v50 = vld [vmem:[%s7187_s4 + $0x5e8] ss:$12 sps:$4 sm:$0xff]   ;;  %v5218_v26 = vld [vmem:[%s7187_s4 + $0x5d0] ss:$12 sps:$4 sm:$0xff]  }
 0x1d4   : > { %3006 = vmatprep.subr.bf16.mxu0 %v5163_v57  ;;  %v5164_v57 = vld [vmem:[%s7187_s4 + $0x438] ss:$12 sps:$4 sm:$0xff]  }
 0x1d5   : > { %2968 = vmatpush2.bf16.msra.mxu1 %v5086_v25  ;;  %v5172_v25 = vld [vmem:[%s7187_s4 + $0x424] ss:$12 sps:$4 sm:$0xff]  }
 0x1d6   : > { %2969 = vmatprep.subr.bf16.mxu1 %v5094_v4  ;;  %v5223_v4 = vld [vmem:[%s7187_s4 + $0x5bc] ss:$12 sps:$4 sm:$0xff]  }
 0x1d7   : > { %3007 = vmatpush2.bf16.msra.mxu0 %v5161_v27  ;;  %v5170_v27 = vld [vmem:[%s7187_s4 + $0x420] ss:$12 sps:$4 sm:$0xff]  }
 0x1d8   : > { %3008 = vmatprep.subr.bf16.mxu0 %v5169_v33  ;;  %v5178_v33 = vld [vmem:[%s7187_s4 + $0x40c] ss:$12 sps:$4 sm:$0xff]  }
 0x1d9   : > { %2970 = vmatpush2.bf16.msra.mxu1 %v5092_v8  ;;  %v5221_v8 = vld [vmem:[%s7187_s4 + $0x5b8] ss:$12 sps:$4 sm:$0xff]  }
 0x1da   : > { %2971 = vmatprep.subr.bf16.mxu1 %v5100_v62  ;;  %v5226_v62 = vld [vmem:[%s7187_s4 + $0x5a4] ss:$12 sps:$4 sm:$0xff]  }
 0x1db   : > { %3009 = vmatpush2.bf16.msra.mxu0 %v5167_v48  ;;  %v5176_v48 = vld [vmem:[%s7187_s4 + $0x408] ss:$12 sps:$4 sm:$0xff]  }
 0x1dc   : > { %3010 = vmatprep.subr.bf16.mxu0 %v5175_v31  ;;  %v5184_v31 = vld [vmem:[%s7187_s4 + $0x3f4] ss:$12 sps:$4 sm:$0xff]  }
 0x1dd   : > { %2972 = vmatpush2.bf16.msra.mxu1 %v5098_v20  ;;  %v5224_v20 = vld [vmem:[%s7187_s4 + $0x5a0] ss:$12 sps:$4 sm:$0xff]  }
 0x1de   : > { %3023 = vmatprep.subr.bf16.mxu1 %v5106_v32  ;;  %v5229_v32 = vld [vmem:[%s7187_s4 + $0x58c] ss:$12 sps:$4 sm:$0xff]  }
 0x1df   : > { %3011 = vmatpush2.bf16.msra.mxu0 %v5173_v3  ;;  %v5182_v3 = vld [vmem:[%s7187_s4 + $0x3f0] ss:$12 sps:$4 sm:$0xff]  }
 0x1e0   : > { %2974 = vmatmul.mubr.bf16.vlgmr.msra.gmra.mxu1 %v6322_v35  ;;  %v1449_v39 = vpop.f32.mrf.mxu1  ;;  %3012 = vmatprep.subr.bf16.mxu0 %v5181_v37  ;;  %v5187_v37 = vld [vmem:[%s7187_s4 + $0x3dc] ss:$12 sps:$4 sm:$0xff]  }
 0x1e1   : > { %3024 = vmatpush1.bf16.msra.mxu1 %v5104_v44  ;;  %v6346_v43 = vpack.c.bf16 %v1449_v39, %v1449_v39  ;;  %v5227_v44 = vld [vmem:[%s7187_s4 + $0x588] ss:$12 sps:$4 sm:$0xff]  }
 0x1e2   : > { %3025 = vmatprep.subr.bf16.mxu1 %v5112_v36  ;;  %v1451_v60 = vpop.f32.mrf.mxu1  ;;  %v5369_v36 = vmov 65535   ;;  %v5235_v39 = vld [vmem:[%s7187_s4 + $0x574] ss:$12 sps:$4 sm:$0xff]  }
 0x1e3   : > { %3013 = vmatpush2.bf16.msra.mxu0 %v5179_v38  ;;  %v6348_v21 = vpack.c.bf16 %v1451_v60, %v1451_v60  ;;  %v2930_v38 = vsel %vm2928_vm2, 4294967295, %v5369_v36  ;;  %vm3515_vm2 = vcmask 728064  }
 0x1e4   : > { %v1453_v34 = vpop.f32.mrf.mxu1  ;;  %3064 = vmatprep.subr.bf16.mxu0 %v5193_v47  ;;  %v5185_v47 = vld [vmem:[%s7187_s4 + $0x3d8] ss:$12 sps:$4 sm:$0xff]   ;;  %v6512_v60 = vsel %vm2929_vm3, %v2930_v38, 0  ;;  %v5260_v38 = vld [vmem:[%s7187_s4 + $0x50] ss:$12 sps:$4 sm:$0xff]   ;;  %vm3442_vm3 = vcmask 883712  }
 0x1e5   : > { %3026 = vmatpush1.bf16.msra.mxu1 %v5110_v15  ;;  %3014 = vmatprep.mubr.bf16.mxu0 %v6348_v21  ;;  %v5190_v15 = vld [vmem:[%s7187_s4 + $0x3c4] ss:$12 sps:$4 sm:$0xff]   ;;  %v5241_v34 = vld [vmem:[%s7187_s4 + $0x55c] ss:$12 sps:$4 sm:$0xff]  }
 0x1e6   : > { %3027 = vmatprep.subr.bf16.mxu1 %v5118_v42  ;;  %v1454_v56 = vpop.f32.mrf.mxu1  ;;  %3015 = vmatmul.mubr.bf16.vlgmr.msra.gmra.mxu0 %v6346_v43  ;;  %v5232_v42 = vld [vmem:[%s7187_s4 + $0x61c] ss:$12 sps:$4 sm:$0x3f]  }
 0x1e7   : > { %3065 = vmatpush1.bf16.msra.mxu0 %v5191_v41  ;;  %v5233_v41 = vld [vmem:[%s7187_s4 + $0x570] ss:$12 sps:$4 sm:$0xff]   ;;  %v5239_v56 = vld [vmem:[%s7187_s4 + $0x558] ss:$12 sps:$4 sm:$0xff]  }
 0x1e8   : > { %3066 = vmatprep.subr.bf16.mxu0 %v5196_v49  ;;  %v5188_v49 = vld [vmem:[%s7187_s4 + $0x3c0] ss:$12 sps:$4 sm:$0xff]  }
 0x1e9   : > { %3028 = vmatpush1.bf16.msra.mxu1 %v5116_v52  ;;  %v2936_v52 = vand.u32 %v5232_v42, %v6512_v60  ;;  %v5264_v42 = vld [vmem:[%s7187_s4 + $0x38] ss:$12 sps:$4 sm:$0xff]  }
 0x1ea   : > { %3029 = vmatprep.subr.bf16.mxu1 %v5124_v6  ;;  %v5230_v6 = vld [vmem:[%s7187_s4 + $0x618] ss:$12 sps:$4 sm:$0x3f]  }
 0x1eb   : > { %3067 = vmatpush1.bf16.msra.mxu0 %v5194_v53 }
 0x1ec   : > { %3068 = vmatprep.subr.bf16.mxu0 %v5199_v54  ;;  %v5245_v54 = vld [vmem:[%s7187_s4 + $0x544] ss:$12 sps:$4 sm:$0xff]  }
 0x1ed   : > { %3030 = vmatpush1.bf16.msra.mxu1 %v5122_v55 }
 0x1ee   : > { %3031 = vmatprep.subr.bf16.mxu1 %v5130_v58 }
 0x1ef   : > { %3069 = vmatpush1.bf16.msra.mxu0 %v5197_v5 }
 0x1f0   : > { %3070 = vmatprep.subr.bf16.mxu0 %v5202_v61  ;;  %v2933_v61 = vand.u32 %v5230_v6, %v6512_v60  ;;  %v5271_v6 = vld [vmem:[%s7187_s4 + $0xc8] ss:$12 sps:$4 sm:$0xff]  }
 0x1f1   : > { %3032 = vmatpush1.bf16.msra.mxu1 %v5128_v7 }
 0x1f2   : > { %3033 = vmatprep.subr.bf16.mxu1 %v5136_v63  ;;  %v5238_v63 = vld [vmem:[%s7187_s4 + $0x604] ss:$12 sps:$4 sm:$0xff]  }
 0x1f3   : > { %3071 = vmatpush1.bf16.msra.mxu0 %v5200_v18  ;;  %v5243_v18 = vld [vmem:[%s7187_s4 + $0x540] ss:$12 sps:$4 sm:$0xff]  }
 0x1f4   : > { %3072 = vmatprep.subr.bf16.mxu0 %v5205_v0  ;;  %v5249_v0 = vld [vmem:[%s7187_s4 + $0x2f0] ss:$12 sps:$4 sm:$0xff]  }
 0x1f5   : > { %3034 = vmatpush1.bf16.msra.mxu1 %v5134_v17 }
 0x1f6   : > { %3035 = vmatprep.subr.bf16.mxu1 %v5142_v1  ;;  %v5236_v1 = vld [vmem:[%s7187_s4 + $0x600] ss:$12 sps:$4 sm:$0xff]  }
 0x1f7   : > { %3073 = vmatpush1.bf16.msra.mxu0 %v5203_v12  ;;  %v5242_v12 = vld [vmem:[%s7187_s4 + $0x170] ss:$12 sps:$4 sm:$0xff]  }
 0x1f8   : > { %3074 = vmatprep.subr.bf16.mxu0 %v5208_v2 }
 0x1f9   : > { %3036 = vmatpush1.bf16.msra.mxu1 %v5140_v59 }
 0x1fa   : > { %3037 = vmatprep.subr.bf16.mxu1 %v5148_v23 }
 0x1fb   : > { %3075 = vmatpush1.bf16.msra.mxu0 %v5206_v9 }
 0x1fc   : > { %3076 = vmatprep.subr.bf16.mxu0 %v5211_v19  ;;  %v5250_v19 = vld [vmem:[%s7187_s4 + $0x230] ss:$12 sps:$4 sm:$0xff]  }
 0x1fd   : > { %3038 = vmatpush1.bf16.msra.mxu1 %v5146_v28 }
 0x1fe   : > { %3039 = vmatprep.subr.bf16.mxu1 %v5154_v10  ;;  %v5253_v10 = vld [vmem:[%s7187_s4 + $0x2d8] ss:$12 sps:$4 sm:$0xff]  }
 0x1ff   : > { %3077 = vmatpush1.bf16.msra.mxu0 %v5209_v45 }
 0x200   : > { %3078 = vmatprep.subr.bf16.mxu0 %v5214_v13 }
 0x201   : > { %3040 = vmatpush2.bf16.msra.mxu1 %v5152_v14  ;;  %v5254_v14 = vld [vmem:[%s7187_s4 + $0x218] ss:$12 sps:$4 sm:$0xff]  }
 0x202   : > { %3041 = vmatprep.subr.bf16.mxu1 %v5160_v46 }
 0x203   : > { %3079 = vmatpush1.bf16.msra.mxu0 %v5212_v16  ;;  %v5257_v16 = vld [vmem:[%s7187_s4 + $0x2c0] ss:$12 sps:$4 sm:$0xff]  }
 0x204   : > { %3080 = vmatprep.subr.bf16.mxu0 %v5217_v24 }
 0x205   : > { %3042 = vmatpush2.bf16.msra.mxu1 %v5158_v51  ;;  %v5258_v51 = vld [vmem:[%s7187_s4 + $0x200] ss:$12 sps:$4 sm:$0xff]  }
 0x206   : > { %3043 = vmatprep.subr.bf16.mxu1 %v5166_v11 }
 0x207   : > { %3081 = vmatpush2.bf16.msra.mxu0 %v5215_v50 }
 0x208   : > { %3082 = vmatprep.subr.bf16.mxu0 %v5220_v30  ;;  %v5246_v30 = vld [vmem:[%s7187_s4 + $0xb0] ss:$12 sps:$4 sm:$0xff]  }
 0x209   : > { %3044 = vmatpush2.bf16.msra.mxu1 %v5164_v57 }
 0x20a   : > { %3045 = vmatprep.subr.bf16.mxu1 %v5172_v25  ;;  %v5247_v25 = vld [vmem:[%s7187_s4 + $0x158] ss:$12 sps:$4 sm:$0xff]  }
 0x20b   : > { %3083 = vmatpush2.bf16.msra.mxu0 %v5218_v26  ;;  %v5262_v26 = vld [vmem:[%s7187_s4 + $0x1e8] ss:$12 sps:$4 sm:$0xff]  }
 0x20c   : > { %3084 = vmatprep.subr.bf16.mxu0 %v5223_v4  ;;  %v5265_v4 = vld [vmem:[%s7187_s4 + $0x290] ss:$12 sps:$4 sm:$0xff]  }
 0x20d   : > { %3046 = vmatpush2.bf16.msra.mxu1 %v5170_v27  ;;  %v5248_v27 = vld [vmem:[%s7187_s4 + $0x98] ss:$12 sps:$4 sm:$0xff]  }
 0x20e   : > { %3047 = vmatprep.subr.bf16.mxu1 %v5178_v33  ;;  %v5251_v33 = vld [vmem:[%s7187_s4 + $0x140] ss:$12 sps:$4 sm:$0xff]  }
 0x20f   : > { %3085 = vmatpush2.bf16.msra.mxu0 %v5221_v8  ;;  %v5266_v8 = vld [vmem:[%s7187_s4 + $0x1d0] ss:$12 sps:$4 sm:$0xff]  }
 0x210   : > { %3086 = vmatprep.subr.bf16.mxu0 %v5226_v62  ;;  %v5269_v62 = vld [vmem:[%s7187_s4 + $0x278] ss:$12 sps:$4 sm:$0xff]  }
 0x211   : > { %3048 = vmatpush2.bf16.msra.mxu1 %v5176_v48  ;;  %v5255_v48 = vld [vmem:[%s7187_s4 + $0x128] ss:$12 sps:$4 sm:$0xff]  }
 0x212   : > { %3049 = vmatprep.subr.bf16.mxu1 %v5184_v31  ;;  %v5270_v31 = vld [vmem:[%s7187_s4 + $0x1b8] ss:$12 sps:$4 sm:$0xff]  }
 0x213   : > { %3087 = vmatpush2.bf16.msra.mxu0 %v5224_v20  ;;  %v5273_v20 = vld [vmem:[%s7187_s4 + $0x260] ss:$12 sps:$4 sm:$0xff]  }
 0x214   : > { %3088 = vmatprep.subr.bf16.mxu0 %v5229_v32  ;;  %v5256_v32 = vld [vmem:[%s7187_s4 + $0x68] ss:$12 sps:$4 sm:$0xff]  }
 0x215   : > { %3050 = vmatpush2.bf16.msra.mxu1 %v5182_v3  ;;  %v5259_v3 = vld [vmem:[%s7187_s4 + $0x110] ss:$12 sps:$4 sm:$0xff]  }
 0x216   : > { %3051 = vmatprep.subr.bf16.mxu1 %v5187_v37  ;;  %v5274_v37 = vld [vmem:[%s7187_s4 + $0x1a0] ss:$12 sps:$4 sm:$0xff]  }
 0x217   : > { %3089 = vmatpush2.bf16.msra.mxu0 %v5227_v44  ;;  %v5276_v44 = vld [vmem:[%s7187_s4 + $0x248] ss:$12 sps:$4 sm:$0xff]  }
 0x218   : > { %3090 = vmatprep.subr.bf16.mxu0 %v5235_v39  ;;  %v5263_v39 = vld [vmem:[%s7187_s4 + $0xf8] ss:$12 sps:$4 sm:$0xff]  }
 0x219   : > { %3052 = vmatpush2.bf16.msra.mxu1 %v5185_v47  ;;  %v5278_v47 = vld [vmem:[%s7187_s4 + $0x188] ss:$12 sps:$4 sm:$0xff]  }
 0x21a   : > { %3053 = vmatprep.subr.bf16.mxu1 %v5190_v15  ;;  %v5281_v15 = vld [vmem:[%s7187_s4 + $0x5f0] ss:$12 sps:$4 sm:$0xff]  }
 0x21b   : > { %3091 = vmatpush2.bf16.msra.mxu0 %v5233_v41  ;;  %v5267_v41 = vld [vmem:[%s7187_s4 + $0xe0] ss:$12 sps:$4 sm:$0xff]  }
 0x21c   : > { %v1490_v53 = vpop.f32.mrf.mxu0  ;;  %3092 = vmatprep.subr.bf16.mxu0 %v5241_v34  ;;  %v5282_v34 = vld [vmem:[%s7187_s4 + $0x530] ss:$12 sps:$4 sm:$0xff]  }
 0x21d   : > { %3054 = vmatpush2.bf16.msra.mxu1 %v5188_v49  ;;  %v6533_v58 = vpack.c.bf16 %v1490_v53, %v1490_v53  ;;  %v5285_v49 = vld [vmem:[%s7187_s4 + $0x5d8] ss:$12 sps:$4 sm:$0xff]   ;;  %v5289_v53 = vld [vmem:[%s7187_s4 + $0x5c0] ss:$12 sps:$4 sm:$0xff]  }
 0x21e   : > { %v1492_v55 = vpop.f32.mrf.mxu0  ;;  %3117 = vmatprep.subr.bf16.mxu1 %v2936_v52  ;;  %v5268_v52 = vld [vmem:[%s7187_s4 + $0x20] ss:$12 sps:$4 sm:$0xff]  }
 0x21f   : > { %v6535_v5 = vpack.c.bf16 %v1492_v55, %v1492_v55  ;;  %3093 = vmatpush2.bf16.msra.mxu0 %v5239_v56  ;;  %v5286_v56 = vld [vmem:[%s7187_s4 + $0x518] ss:$12 sps:$4 sm:$0xff]   ;;  %v5290_v55 = vld [vmem:[%s7187_s4 + $0x500] ss:$12 sps:$4 sm:$0xff]  }
 0x220   : > { %v1494_v7 = vpop.f32.mrf.mxu0  ;;  %3094 = vmatprep.subr.bf16.mxu0 %v5245_v54  ;;  %v5275_v54 = vld [vmem:[%s7187_s4 + $0x470] ss:$12 sps:$4 sm:$0xff]  }
 0x221   : > { %3055 = vmatprep.mubr.bf16.mxu1 %v6535_v5  ;;  %v5277_v7 = vld [vmem:[%s7187_s4 + $0x3b0] ss:$12 sps:$4 sm:$0xff]  }
 0x222   : > { %3056 = vmatmul.mubr.bf16.vlgmr.msra.gmra.mxu1 %v6533_v58  ;;  %v1495_v17 = vpop.f32.mrf.mxu0 }
 0x223   : > { %3118 = vmatpush1.bf16.msra.mxu1 %v2933_v61  ;;  %3137 = vmatprep.mubr.bf16.mxu1 %v5366_v40  ;;  %v5293_v61 = vld [vmem:[%s7187_s4 + $0x5a8] ss:$12 sps:$4 sm:$0xff]   ;;  %v5280_v17 = vld [vmem:[%s7187_s4 + $0x398] ss:$12 sps:$4 sm:$0xff]  }
 0x224   : > { %3119 = vmatprep.subr.bf16.mxu1 %v5238_v63  ;;  %3095 = vmatpush2.bf16.msra.mxu0 %v5243_v18  ;;  %v5279_v63 = vld [vmem:[%s7187_s4 + $0x458] ss:$12 sps:$4 sm:$0xff]   ;;  %v5294_v18 = vld [vmem:[%s7187_s4 + $0x4e8] ss:$12 sps:$4 sm:$0xff]  }
 0x225   : > { %4778 = vmatprep.subr.bf16.mxu0 %v5249_v0  ;;  %v5297_v0 = vld [vmem:[%s7187_s4 + $0x590] ss:$12 sps:$4 sm:$0xff]  }
 0x227   : > { %3120 = vmatpush1.bf16.msra.mxu1 %v5236_v1  ;;  %v5283_v1 = vld [vmem:[%s7187_s4 + $0x440] ss:$12 sps:$4 sm:$0xff]  }
 0x228   : > { %4756 = vmatprep.subr.bf16.mxu1 %v5242_v12  ;;  %v5298_v12 = vld [vmem:[%s7187_s4 + $0x4d0] ss:$12 sps:$4 sm:$0xff]  }
 0x260   : > { %v1531_v2 = vpop.f32.mrf.mxu1 }
 0x261   : > { %v6556_v23 = vpack.c.bf16 %v1531_v2, %v1531_v2  ;;  %v5287_v2 = vld [vmem:[%s7187_s4 + $0x428] ss:$12 sps:$4 sm:$0xff]  }
 0x262   : > { %v1533_v59 = vpop.f32.mrf.mxu1 }
 0x263   : > { %v6558_v9 = vpack.c.bf16 %v1533_v59, %v1533_v59  ;;  %v5302_v59 = vld [vmem:[%s7187_s4 + $0x4b8] ss:$12 sps:$4 sm:$0xff]  }
 0x264   : > { %v1535_v28 = vpop.f32.mrf.mxu1 }
 0x265   : > { %3096 = vmatprep.mubr.bf16.mxu0 %v6558_v9  ;;  %v5291_v28 = vld [vmem:[%s7187_s4 + $0x410] ss:$12 sps:$4 sm:$0xff]  }
 0x266   : > { %v1572_v45 = vpop.f32.mrf.mxu0  ;;  %v1536_v13 = vpop.f32.mrf.mxu1  ;;  %3097 = vmatmul.mubr.bf16.vlgmr.msra.gmra.mxu0 %v6556_v23 }
 0x267   : > { %1586 = vst.msk [vmem:[#allocation5 + $0x40] sm:$0xff] %vm459_vm12, %v1572_v45  ;;  %4779 = vmatpush3.bf16.msra.mxu0 %v5250_v19  ;;  %3218 = vmatprep.mubr.bf16.mxu0 %v6348_v21  ;;  %v5261_v21 = vld [vmem:[%s7187_s4 + $0x2a8] ss:$12 sps:$4 sm:$0xff]   ;;  %v5292_v13 = vld [vmem:[%s7187_s4 + $0x350] ss:$12 sps:$4 sm:$0xff]  }
 0x268   : > { %v4938_v46 = vpop.f32.mrf.mxu0  ;;  %4780 = vmatprep.subr.bf16.mxu0 %v5253_v10  ;;  %v5288_v19 = vld [vmem:[%s7187_s4 + $0x368] ss:$12 sps:$4 sm:$0xff]   ;;  %v5306_v10 = vld [vmem:[%s7187_s4 + $0x4a0] ss:$12 sps:$4 sm:$0xff]  }
 0x269   : > { %v5307_v45 = vld [vmem:[%s7187_s4 + $0x548] ss:$12 sps:$4 sm:$0xff]  }
 0x26a   : > { %v1575_v24 = vpop.f32.mrf.mxu0  ;;  %v5309_v46 = vld [vmem:[%s7187_s4 + $0x488] ss:$12 sps:$4 sm:$0xff]  }
 0x26b   : > { %4781 = vmatpush3.bf16.msra.mxu0 %v5254_v14  ;;  %v5295_v14 = vld [vmem:[%s7187_s4 + $0x3f8] ss:$12 sps:$4 sm:$0xff]  }
 0x26c   : > { %v4939_v11 = vpop.f32.mrf.mxu0  ;;  %4782 = vmatprep.subr.bf16.mxu0 %v5257_v16  ;;  %v1869_v16 = vld [vmem:[%s7190_s7] sm:$0xff] }
 0x26d   : > { %v1870_v11 = vld [vmem:[%s7190_s7 + $0x8] sm:$0xff] }
 0x26e   : > { %v1595_v50 = vld [vmem:[#allocation5 + $0x40] sm:$0xff] }
 0x26f   : > { %v6585_v57 = vpack.c.bf16 %v1595_v50, %v1595_v50  ;;  %4783 = vmatpush3.bf16.msra.mxu0 %v5258_v51  ;;  %v5296_v51 = vld [vmem:[%s7187_s4 + $0x338] ss:$12 sps:$4 sm:$0xff]   ;;  %v5299_v50 = vld [vmem:[%s7187_s4 + $0x3e0] ss:$12 sps:$4 sm:$0xff]  }
 0x270   : > { %4784 = vmatprep.subr.bf16.mxu0 %v5261_v21 }
 0x271   : > { %4712 = vmatmul.mubr.msk.bf16.vlgmr.msra.gmra.mxu1 %vm459_vm12, %v6585_v57 }
 0x272   : > { %4757 = vmatpush3.bf16.msra.mxu1 %v5246_v30  ;;  %3178 = vmatprep.mubr.bf16.mxu1 %v6280_v22  ;;  %v5252_v22 = vld [vmem:[%s7187_s4 + $0x80] ss:$12 sps:$4 sm:$0xff]  }
 0x273   : > { %4758 = vmatprep.subr.bf16.mxu1 %v5247_v25  ;;  %4785 = vmatpush3.bf16.msra.mxu0 %v5262_v26 }
 0x274   : > { %4786 = vmatprep.subr.bf16.mxu0 %v5265_v4  ;;  %v5300_v4 = vld [vmem:[%s7187_s4 + $0x320] ss:$12 sps:$4 sm:$0xff]  }
 0x276   : > { %4759 = vmatpush3.bf16.msra.mxu1 %v5248_v27 }
 0x277   : > { %4760 = vmatprep.subr.bf16.mxu1 %v5251_v33  ;;  %4787 = vmatpush3.bf16.msra.mxu0 %v5266_v8  ;;  %v5303_v8 = vld [vmem:[%s7187_s4 + $0x3c8] ss:$12 sps:$4 sm:$0xff]  }
 0x278   : > { %4788 = vmatprep.subr.bf16.mxu0 %v5269_v62 }
 0x27a   : > { %4761 = vmatpush3.bf16.msra.mxu1 %v5252_v22 }
 0x27b   : > { %4762 = vmatprep.subr.bf16.mxu1 %v5255_v48  ;;  %4789 = vmatpush3.bf16.msra.mxu0 %v5270_v31  ;;  %v5304_v31 = vld [vmem:[%s7187_s4 + $0x308] ss:$12 sps:$4 sm:$0xff]  }
 0x27c   : > { %4790 = vmatprep.subr.bf16.mxu0 %v5273_v20 }
 0x27e   : > { %4763 = vmatpush3.bf16.msra.mxu1 %v5256_v32 }
 0x27f   : > { %4764 = vmatprep.subr.bf16.mxu1 %v5259_v3  ;;  %4791 = vmatpush3.bf16.msra.mxu0 %v5274_v37  ;;  %v5310_v37 = vld [vmem:[%s7187_s4 + $0x608] ss:$12 sps:$4 sm:$0xff]  }
 0x280   : > { %4792 = vmatprep.subr.bf16.mxu0 %v5276_v44 }
 0x282   : > { %4765 = vmatpush3.bf16.msra.mxu1 %v5260_v38 }
 0x283   : > { %4766 = vmatprep.subr.bf16.mxu1 %v5263_v39  ;;  %4793 = vmatpush3.bf16.msra.mxu0 %v5278_v47 }
 0x284   : > { %4822 = vmatprep.subr.bf16.mxu0 %v5281_v15 }
 0x286   : > { %4767 = vmatpush3.bf16.msra.mxu1 %v5264_v42  ;;  %3219 = vmatmul.mubr.bf16.vlgmr.msra.gmra.mxu0 %v6346_v43  ;;  %v5272_v43 = vld [vmem:[%s7187_s4 + $0x8] ss:$12 sps:$4 sm:$0xff]  }
 0x287   : > { %4768 = vmatprep.subr.bf16.mxu1 %v5267_v41  ;;  %4823 = vmatpush3.bf16.msra.mxu0 %v5282_v34 }
 0x288   : > { %3298 = vmatprep.mubr.bf16.mxu0 %v6558_v9  ;;  %4824 = vmatprep.subr.bf16.mxu0 %v5285_v49  ;;  %v5305_v9 = vld [vmem:[%s7187_s4 + $0x560] ss:$12 sps:$4 sm:$0xff]  }
 0x28a   : > { %4769 = vmatpush3.bf16.msra.mxu1 %v5268_v52 }
 0x28b   : > { %4770 = vmatprep.subr.bf16.mxu1 %v5271_v6  ;;  %4825 = vmatpush3.bf16.msra.mxu0 %v5286_v56 }
 0x28c   : > { %4826 = vmatprep.subr.bf16.mxu0 %v5289_v53 }
 0x28e   : > { %4771 = vmatpush3.bf16.msra.mxu1 %v5272_v43 }
 0x28f   : > { %4800 = vmatprep.subr.bf16.mxu1 %v5275_v54  ;;  %4827 = vmatpush3.bf16.msra.mxu0 %v5290_v55 }
 0x290   : > { %4828 = vmatprep.subr.bf16.mxu0 %v5293_v61 }
 0x291   : > { %3179 = vmatmul.mubr.bf16.vlgmr.msra.gmra.mxu1 %v6322_v35  ;;  %v5301_v35 = vld [vmem:[%s7187_s4 + $0x578] ss:$12 sps:$4 sm:$0xff]  }
 0x292   : > { %4801 = vmatpush3.bf16.msra.mxu1 %v5277_v7  ;;  %3258 = vmatprep.mubr.bf16.mxu1 %v6535_v5  ;;  %v5284_v5 = vld [vmem:[%s7187_s4 + $0x380] ss:$12 sps:$4 sm:$0xff]  }
 0x293   : > { %4802 = vmatprep.subr.bf16.mxu1 %v5279_v63  ;;  %4829 = vmatpush3.bf16.msra.mxu0 %v5294_v18 }
 0x294   : > { %4830 = vmatprep.subr.bf16.mxu0 %v5297_v0 }
 0x296   : > { %4803 = vmatpush3.bf16.msra.mxu1 %v5280_v17 }
 0x297   : > { %4804 = vmatprep.subr.bf16.mxu1 %v5283_v1  ;;  %4831 = vmatpush3.bf16.msra.mxu0 %v5298_v12 }
 0x298   : > { %4832 = vmatprep.subr.bf16.mxu0 %v5301_v35 }
 0x29a   : > { %4805 = vmatpush3.bf16.msra.mxu1 %v5284_v5 }
 0x29b   : > { %4806 = vmatprep.subr.bf16.mxu1 %v5287_v2  ;;  %4833 = vmatpush3.bf16.msra.mxu0 %v5302_v59 }
 0x29c   : > { %4834 = vmatprep.subr.bf16.mxu0 %v5305_v9 }
 0x29e   : > { %4807 = vmatpush3.bf16.msra.mxu1 %v5288_v19 }
 0x29f   : > { %4808 = vmatprep.subr.bf16.mxu1 %v5291_v28  ;;  %4835 = vmatpush3.bf16.msra.mxu0 %v5306_v10 }
 0x2a0   : > { %4836 = vmatprep.subr.bf16.mxu0 %v5307_v45  ;;  %v2975_v24 = vpop.f32.mrf.mxu1  ;;  %v1871_v45 = vld [vmem:[%s7190_s7 + $0x10] sm:$0xff] }
 0x2a1   : > { %v2976_v30 = vadd.f32 %v2975_v24, %v1869_v16 }
 0x2a2   : > { %4809 = vmatpush3.bf16.msra.mxu1 %v5292_v13  ;;  %v2977_v21 = vpop.f32.mrf.mxu1 }
 0x2a3   : > { %4810 = vmatprep.subr.bf16.mxu1 %v5295_v14  ;;  %4837 = vmatpush3.bf16.msra.mxu0 %v5309_v46  ;;  %v2978_v26 = vadd.f32 %v2977_v21, %v1870_v11 }
 0x2a4   : > { %v2979_v25 = vpop.f32.mrf.mxu1  ;;  %4948 = vmatprep.subr.bf16.mxu0 %v5367_v29 }
 0x2a6   : > { %4811 = vmatpush3.bf16.msra.mxu1 %v5296_v51  ;;  %3299 = vmatmul.mubr.bf16.vlgmr.msra.gmra.mxu0 %v6556_v23  ;;  %v2980_v27 = vpop.f32.mrf.mxu1  ;;  %v3016_v33 = vpop.f32.mrf.mxu0  ;;  %v5308_v23 = vld [vmem:[%s7187_s4 + $0x620] ss:$12 sps:$4 sm:$0x3f]  }
 0x2a7   : > { %4812 = vmatprep.subr.bf16.mxu1 %v5299_v50  ;;  %v3017_v62 = vadd.f32 %v3016_v33, %v2976_v30  ;;  %4964 = vmatprep.mubr.msk.bf16.mxu0 %vm5368_vm15, %v5367_v29  ;;  %v2939_v3 = vand.u32 %v5308_v23, %v6512_v60 }
 0x2a8   : > { %v3018_v22 = vpop.f32.mrf.mxu0 }
 0x2a9   : > { %v3019_v48 = vadd.f32 %v3018_v22, %v2978_v26 }
 0x2aa   : > { %4813 = vmatpush3.bf16.msra.mxu1 %v5300_v4  ;;  %v3020_v20 = vpop.f32.mrf.mxu0 }
 0x2ab   : > { %4814 = vmatprep.subr.bf16.mxu1 %v5303_v8 }
 0x2ac   : > { %v3021_v32 = vpop.f32.mrf.mxu0 }
 0x2ae   : > { %4815 = vmatpush3.bf16.msra.mxu1 %v5304_v31 }
 0x2af   : > { %4940 = vmatprep.subr.bf16.mxu1 %v5367_v29 }
 0x2b1   : > { %3259 = vmatmul.mubr.bf16.vlgmr.msra.gmra.mxu1 %v6533_v58 }
 0x2b2   : > { %4941 = vmatpush3.bf16.msra.mxu1 %v2939_v3  ;;  %4944 = vmatprep.mubr.msk.bf16.mxu1 %vm5368_vm15, %v5367_v29 }
 0x2b3   : > { %4942 = vmatprep.subr.bf16.mxu1 %v5367_v29 }
 0x2b6   : > { %4943 = vmatpush3.bf16.msra.mxu1 %v5310_v37 }
 0x2b9   : > { %4945 = vmatmul.mubr.msk.bf16.vlgmr.msra.gmra.mxu1 %vm459_vm12, %v6585_v57  ;;  %vm3530_vm12 = vcmask 605184  }
 0x2ba   : > { %3694 = vmatprep.mubr.bf16.mxu1 %v5366_v40 }
 0x2e2   : > { %v3057_v44 = vpop.f32.mrf.mxu1 }
 0x2e3   : > { %v3058_v38 = vadd.f32 %v3057_v44, %v3017_v62 }
 0x2e4   : > { %v3059_v39 = vpop.f32.mrf.mxu1 }
 0x2e5   : > { %v3060_v58 = vadd.f32 %v3059_v39, %v3019_v48 }
 0x2e6   : > { %v3061_v47 = vpop.f32.mrf.mxu1 }
 0x2e8   : > { %v3062_v15 = vpop.f32.mrf.mxu1 }
 0x326   : > { %v3098_v42 = vpop.f32.mrf.mxu0 }
 0x327   : > { %v3099_v52 = vadd.f32 %v3098_v42, %v3058_v38 }
 0x328   : > { %v3100_v41 = vpop.f32.mrf.mxu0 }
 0x329   : > { %v3101_v53 = vadd.f32 %v3100_v41, %v3060_v58 }
 0x32a   : > { %v3102_v34 = vpop.f32.mrf.mxu0 }
 0x32c   : > { %v3103_v49 = vpop.f32.mrf.mxu0 }
 0x331   : > { %v3139_v6 = vpop.f32.mrf.mxu1 }
 0x332   : > { %v3140_v56 = vadd.f32 %v3139_v6, %v3099_v52 }
 0x333   : > { %v3141_v43 = vpop.f32.mrf.mxu1 }
 0x334   : > { %vm3346_vm4 = vcmp.ge.f32.partialorder %v3140_v56, 0.0  ;;  %v3349_v54 = vmul.f32 0.2, %v3140_v56  ;;  %v3142_v57 = vadd.f32 %v3141_v43, %v3101_v53 }
 0x335   : > { %v3143_v55 = vpop.f32.mrf.mxu1 }
 0x336   : > { %v6784_v40 = vsel %vm3346_vm4, %v3140_v56, %v3349_v54  ;;  %vm3347_vm5 = vcmp.ge.f32.partialorder %v3142_v57, 0.0  ;;  %v3350_v61 = vmul.f32 0.2, %v3142_v57  ;;  %vm3457_vm4 = vcmask 875520  }
 0x337   : > { %v3144_v7 = vpop.f32.mrf.mxu1  ;;  %3569 = vrot.lane.b32.xlu0 %v6784_v40, %s5370_s20  ;;  %3554 = vrot.lane.b32.xlu1 %v6784_v40, %s5371_s21 }
 0x338   : > { %v6790_v63 = vsel %vm3347_vm5, %v3142_v57, %v3350_v61  ;;  %vm3412_vm5 = vcmask 900096  }
 0x33b   : > { %3539 = vrot.lane.b32.xlu0 %v6784_v40, %s5372_s22  ;;  %3524 = vrot.lane.b32.xlu1 %v6784_v40, %s5373_s25 }
 0x33f   : > { %3509 = vrot.lane.b32.xlu0 %v6784_v40, %s5374_s26  ;;  %3494 = vrot.lane.b32.xlu1 %v6784_v40, %s5375_s14 }
 0x343   : > { %3480 = vrot.lane.b32.xlu0 %v6784_v40, %s5360_s24  ;;  %3466 = vrot.lane.b32.xlu1 %v6784_v40, %s5359_s23 }
 0x346   : > { %v4794_v18 = vpop.f32.mrf.mxu0 }
 0x347   : > { %3451 = vrot.lane.b32.xlu0 %v6784_v40, %s5376_s15  ;;  %3436 = vrot.lane.b32.xlu1 %v6784_v40, %s5377_s16 }
 0x348   : > { %v4795_v0 = vpop.f32.mrf.mxu0 }
 0x349   : > { %v4796_v46 = vadd.f32 %v4795_v0, %v4794_v18 }
 0x34a   : > { %v4797_v17 = vpop.f32.mrf.mxu0 }
 0x34b   : > { %3421 = vrot.lane.b32.xlu0 %v6784_v40, %s5378_s17  ;;  %3406 = vrot.lane.b32.xlu1 %v6784_v40, %s5379_s18 }
 0x34c   : > { %v4798_v1 = vpop.f32.mrf.mxu0 }
 0x34f   : > { %3392 = vrot.lane.b32.xlu0 %v6784_v40, %s5364_s29  ;;  %3378 = vrot.lane.b32.xlu1 %v6784_v40, %s5363_s12 }
 0x351   : > { %v4772_v12 = vpop.f32.mrf.mxu1 }
 0x353   : > { %v4773_v35 = vpop.f32.mrf.mxu1  ;;  %3556 = vrot.lane.b32.xlu1 %v6790_v63, %s5371_s21 }
 0x354   : > { %v4774_v28 = vadd.f32 %v4773_v35, %v4772_v12 }
 0x355   : > { %v4775_v5 = vpop.f32.mrf.mxu1 }
 0x356   : > { %v3181_v13 = vadd.f32 %v4774_v28, %v1871_v45 }
 0x357   : > { %v4776_v2 = vpop.f32.mrf.mxu1  ;;  %3571 = vrot.lane.b32.xlu1 %v6790_v63, %s5370_s20 }
 0x358   : > { %v3221_v24 = vadd.f32 %v4796_v46, %v3181_v13 }
 0x35b   : > { %3526 = vrot.lane.b32.xlu1 %v6790_v63, %s5373_s25 }
 0x35f   : > { %3541 = vrot.lane.b32.xlu1 %v6790_v63, %s5372_s22 }
 0x363   : > { %3496 = vrot.lane.b32.xlu1 %v6790_v63, %s5375_s14 }
 0x366   : > { %v4838_v59 = vpop.f32.mrf.mxu0 }
 0x367   : > { %3511 = vrot.lane.b32.xlu1 %v6790_v63, %s5374_s26 }
 0x368   : > { %v4839_v9 = vpop.f32.mrf.mxu0 }
 0x369   : > { %v4840_v50 = vadd.f32 %v4839_v9, %v4838_v59 }
 0x36a   : > { %v4841_v19 = vpop.f32.mrf.mxu0 }
 0x36b   : > { %3468 = vrot.lane.b32.xlu1 %v6790_v63, %s5359_s23 }
 0x36c   : > { %v4842_v10 = vpop.f32.mrf.mxu0 }
 0x36f   : > { %3482 = vrot.lane.b32.xlu1 %v6790_v63, %s5360_s24 }
 0x371   : > { %v4816_v14 = vpop.f32.mrf.mxu1 }
 0x373   : > { %v4817_v16 = vpop.f32.mrf.mxu1  ;;  %3438 = vrot.lane.b32.xlu1 %v6790_v63, %s5377_s16 }
 0x374   : > { %v4818_v51 = vadd.f32 %v4817_v16, %v4816_v14 }
 0x375   : > { %v4819_v11 = vpop.f32.mrf.mxu1 }
 0x376   : > { %v3261_v21 = vadd.f32 %v4818_v51, %v3221_v24 }
 0x377   : > { %v4820_v30 = vpop.f32.mrf.mxu1  ;;  %3453 = vrot.lane.b32.xlu1 %v6790_v63, %s5376_s15 }
 0x378   : > { %v3301_v25 = vadd.f32 %v4840_v50, %v3261_v21 }
 0x379   : > { %v3340_v26 = vpop.f32.mrf.mxu1 }
 0x37a   : > { %v3341_v4 = vadd.f32 %v3340_v26, %v3301_v25 }
 0x37b   : > { %v4946_v27 = vpop.f32.mrf.mxu1  ;;  %3408 = vrot.lane.b32.xlu1 %v6790_v63, %s5379_s18 }
 0x37c   : > { %vm3348_vm6 = vcmp.ge.f32.partialorder %v3341_v4, 0.0  ;;  %v3351_v33 = vmul.f32 0.2, %v3341_v4 }
 0x37d   : > { %v3343_v8 = vpop.f32.mrf.mxu1 }
 0x37e   : > { %v3354_v62 = vsel %vm3348_vm6, %v3341_v4, %v3351_v33  ;;  %vm3427_vm6 = vcmask 891904  }
 0x37f   : > { %v4947_v22 = vpop.f32.mrf.mxu1  ;;  %3558 = vrot.lane.b32.xlu0 %v3354_v62, %s5371_s21  ;;  %3423 = vrot.lane.b32.xlu1 %v6790_v63, %s5378_s17  ;;  %3360 = vst.msk [vmem:[#allocation3 + $0x10] sm:$0xff] %vm3359_vm7, %v3354_v62  ;;  %s5387_s21 = smov 118  }
 0x383   : > { %3573 = vrot.lane.b32.xlu0 %v3354_v62, %s5370_s20  ;;  %3380 = vrot.lane.b32.xlu1 %v6790_v63, %s5363_s12  ;;  %s5386_s20 = smov 98  }
 0x387   : > { %3528 = vrot.lane.b32.xlu0 %v3354_v62, %s5373_s25  ;;  %3394 = vrot.lane.b32.xlu1 %v6790_v63, %s5364_s29  ;;  %s5389_s25 = smov 106  }
 0x38b   : > { %3543 = vrot.lane.b32.xlu0 %v3354_v62, %s5372_s22  ;;  %3366 = vrot.lane.b32.xlu1 %v6790_v63, %s7202_s30  ;;  %s5388_s22 = smov 105  }
 0x38f   : > { %3498 = vrot.lane.b32.xlu0 %v3354_v62, %s5375_s14  ;;  %3364 = vrot.lane.b32.xlu1 %v6784_v40, %s7202_s30  ;;  %s5380_s14 = smov 95  }
 0x393   : > { %3513 = vrot.lane.b32.xlu0 %v3354_v62, %s5374_s26 }
 0x397   : > { %3470 = vrot.lane.b32.xlu0 %v3354_v62, %s5359_s23  ;;  %s5384_s23 = smov 97  }
 0x39b   : > { %3484 = vrot.lane.b32.xlu0 %v3354_v62, %s5360_s24  ;;  %s5385_s24 = smov 117  }
 0x39f   : > { %3440 = vrot.lane.b32.xlu0 %v3354_v62, %s5377_s16 }
 0x3a3   : > { %3455 = vrot.lane.b32.xlu0 %v3354_v62, %s5376_s15 }
 0x3a7   : > { %3410 = vrot.lane.b32.xlu0 %v3354_v62, %s5379_s18  ;;  %s5382_s18 = smov 96  }
 0x3a9   : > { %v3555_v48 = vpop.permute.xlu1 %3554  ;;  %v3570_v39 = vpop.permute.xlu0 %3569 }
 0x3ab   : > { %3425 = vrot.lane.b32.xlu0 %v3354_v62, %s5378_s17  ;;  %s5381_s17 = smov 115  }
 0x3ad   : > { %v3525_v31 = vpop.permute.xlu1 %3524  ;;  %v3540_v41 = vpop.permute.xlu0 %3539 }
 0x3af   : > { %3382 = vrot.lane.b32.xlu0 %v3354_v62, %s5363_s12 }
 0x3b1   : > { %v3495_v23 = vpop.permute.xlu1 %3494  ;;  %v3510_v52 = vpop.permute.xlu0 %3509 }
 0x3b3   : > { %3396 = vrot.lane.b32.xlu0 %v3354_v62, %s5364_s29 }
 0x3b5   : > { %v3467_v20 = vpop.permute.xlu1 %3466  ;;  %v3481_v54 = vpop.permute.xlu0 %3480 }
 0x3b7   : > { %3368 = vrot.lane.b32.xlu0 %v3354_v62, %s7202_s30 }
 0x3b9   : > { %v3437_v32 = vpop.permute.xlu1 %3436  ;;  %v3452_v61 = vpop.permute.xlu0 %3451 }
 0x3bd   : > { %v3407_v3 = vpop.permute.xlu1 %3406  ;;  %v3422_v1 = vpop.permute.xlu0 %3421 }
 0x3c1   : > { %v3379_v37 = vpop.permute.xlu1 %3378  ;;  %v3393_v5 = vpop.permute.xlu0 %3392 }
 0x3c5   : > { %v3557_v44 = vpop.permute.xlu1 %3556 }
 0x3c6   : > { %v3561_v38 = vsel %vm3560_vm10, %v3555_v48, %v3557_v44 }
 0x3c9   : > { %v3572_v58 = vpop.permute.xlu1 %3571 }
 0x3ca   : > { %v3576_v47 = vsel %vm3575_vm11, %v3570_v39, %v3572_v58 }
 0x3cb   : > { %v3653_v24 = vpack.c.bf16 %v3576_v47, %v3561_v38 }
 0x3cd   : > { %v3527_v15 = vpop.permute.xlu1 %3526 }
 0x3ce   : > { %v6870_v42 = vsel %vm3530_vm12, %v3525_v31, %v3527_v15 }
 0x3d1   : > { %v3542_v34 = vpop.permute.xlu1 %3541 }
 0x3d2   : > { %v6873_v49 = vsel %vm3545_vm0, %v3540_v41, %v3542_v34 }
 0x3d3   : > { %v3650_v62 = vpack.c.bf16 %v6873_v49, %v6870_v42 }
 0x3d5   : > { %v3497_v6 = vpop.permute.xlu1 %3496 }
 0x3d6   : > { %v6876_v56 = vsel %vm3500_vm1, %v3495_v23, %v3497_v6 }
 0x3d9   : > { %v3512_v53 = vpop.permute.xlu1 %3511 }
 0x3da   : > { %v6879_v43 = vsel %vm3515_vm2, %v3510_v52, %v3512_v53 }
 0x3db   : > { %v3647_v39 = vpack.c.bf16 %v6879_v43, %v6876_v56 }
 0x3dd   : > { %v6881_v57 = vpop.permute.xlu1 %3468 }
 0x3de   : > { %v6885_v55 = vsel %vm713_vm8, %v3467_v20, %v6881_v57 }
 0x3e1   : > { %v6887_v7 = vpop.permute.xlu1 %3482 }
 0x3e2   : > { %v6891_v18 = vsel %vm758_vm9, %v3481_v54, %v6887_v7 }
 0x3e5   : > { %v6893_v0 = vpop.permute.xlu1 %3438 }
 0x3e6   : > { %v6897_v17 = vsel %vm3442_vm3, %v3437_v32, %v6893_v0 }
 0x3e9   : > { %v6899_v12 = vpop.permute.xlu1 %3453 }
 0x3ea   : > { %v6903_v35 = vsel %vm3457_vm4, %v3452_v61, %v6899_v12 }
 0x3ed   : > { %v6905_v2 = vpop.permute.xlu1 %3408 }
 0x3ee   : > { %v6909_v59 = vsel %vm3412_vm5, %v3407_v3, %v6905_v2 }
 0x3f1   : > { %v3559_v9 = vpop.permute.xlu0 %3558  ;;  %v6911_v19 = vpop.permute.xlu1 %3423 }
 0x3f2   : > { %v3562_v28 = vsel %vm3560_vm10, %v3557_v44, %v3559_v9  ;;  %3568 = vst.msk [vmem:[#allocation3 + $0x160] sm:$0xff] %vm3359_vm7, %v3559_v9  ;;  %v6917_v10 = vsel %vm3427_vm6, %v3422_v1, %v6911_v19  ;;  %vm7203_vm10 = vcmask 1039360  }
 0x3f5   : > { %v3574_v45 = vpop.permute.xlu0 %3573  ;;  %v6919_v13 = vpop.permute.xlu1 %3380 }
 0x3f6   : > { %v3577_v14 = vsel %vm3575_vm11, %v3572_v58, %v3574_v45  ;;  %3583 = vst.msk [vmem:[#allocation3 + $0x178] sm:$0xff] %vm3359_vm7, %v3574_v45  ;;  %v6925_v46 = vsel %vm533_vm13, %v3379_v37, %v6919_v13  ;;  %vm4295_vm11 = vcmask 1041408  }
 0x3f7   : > { %v3654_v16 = vpack.c.bf16 %v3577_v14, %v3562_v28 }
 0x3f9   : > { %v3529_v51 = vpop.permute.xlu0 %3528  ;;  %v6927_v11 = vpop.permute.xlu1 %3394  ;;  %3662 = vmatprep.subr.bf16.mxu1 %v3654_v16  ;;  %v3628_v25 = vld [vmem:[#allocation3 + $0x160] sm:$0xff] }
 0x3fa   : > { %v3532_v21 = vsel %vm3530_vm12, %v3527_v15, %v3529_v51  ;;  %3538 = vst.msk [vmem:[#allocation3 + $0x130] sm:$0xff] %vm3359_vm7, %v3529_v51  ;;  %v6933_v50 = vsel %vm578_vm14, %v3393_v5, %v6927_v11  ;;  %3663 = vmatpush1.bf16.msra.mxu1 %v3653_v24 }
 0x3fd   : > { %v3544_v30 = vpop.permute.xlu0 %3543  ;;  %v3631_v26 = vld [vmem:[#allocation3 + $0x178] sm:$0xff]  ;;  %v6935_v4 = vpop.permute.xlu1 %3366 }
 0x3fe   : > { %v3547_v27 = vsel %vm3545_vm0, %v3542_v34, %v3544_v30  ;;  %3553 = vst.msk [vmem:[#allocation3 + $0x148] sm:$0xff] %vm3359_vm7, %v3544_v30  ;;  %v3655_v33 = vpack.c.bf16 %v3631_v26, %v3628_v25  ;;  %v5312_v25 = vld [vmem:[%s7188_s5 + $0x78] sm:$0xff]  }
 0x3ff   : > { %v3651_v8 = vpack.c.bf16 %v3547_v27, %v3532_v21  ;;  %v5311_v27 = vld [vmem:[%s7185_s2] sm:$0xff]  }
 0x400   : > { %4949 = vmatpush3.bf16.msra.mxu0 %v3655_v33  ;;  %v5314_v33 = vld [vmem:[%s7188_s5 + $0x70] sm:$0xff]  }
 0x401   : > { %v3499_v22 = vpop.permute.xlu0 %3498  ;;  %v3365_v48 = vpop.permute.xlu1 %3364  ;;  %4950 = vmatprep.subr.bf16.mxu0 %v5367_v29  ;;  %3664 = vmatprep.subr.bf16.mxu1 %v3651_v8  ;;  %v3622_v32 = vld [vmem:[#allocation3 + $0x130] sm:$0xff] }
 0x402   : > { %v3502_v31 = vsel %vm3500_vm1, %v3497_v6, %v3499_v22  ;;  %3508 = vst.msk [vmem:[#allocation3 + $0x100] sm:$0xff] %vm3359_vm7, %v3499_v22  ;;  %v6946_v23 = vsel %vm7203_vm10, %v3365_v48, %v6935_v4  ;;  %3665 = vmatpush1.bf16.msra.mxu1 %v3650_v62  ;;  %v3644_v6 = vpack.c.bf16 %v6891_v18, %v6885_v55  ;;  %v5315_v22 = vld [vmem:[%s7188_s5 + $0x30] sm:$0xff]   ;;  %v5316_v48 = vld [vmem:[%s7188_s5 + $0x68] sm:$0xff]  }
 0x403   : > { %v3641_v18 = vpack.c.bf16 %v6903_v35, %v6897_v17  ;;  %v3638_v35 = vpack.c.bf16 %v6917_v10, %v6909_v59  ;;  %v3635_v10 = vpack.c.bf16 %v6933_v50, %v6925_v46  ;;  %v3632_v26 = vpack.c.bf16 %v6946_v23, %v6784_v40  ;;  %v3586_v40 = vld [vmem:[#allocation3 + $0x10] sm:$0xff]  ;;  %v5318_v23 = vld [vmem:[%s7188_s5 + $0x60] sm:$0xff]  }
 0x405   : > { %v3514_v20 = vpop.permute.xlu0 %3513  ;;  %v3625_v3 = vld [vmem:[#allocation3 + $0x148] sm:$0xff] }
 0x406   : > { %v3517_v37 = vsel %vm3515_vm2, %v3512_v53, %v3514_v20  ;;  %3523 = vst.msk [vmem:[#allocation3 + $0x118] sm:$0xff] %vm3359_vm7, %v3514_v20  ;;  %v3652_v44 = vpack.c.bf16 %v3625_v3, %v3622_v32  ;;  %v5319_v20 = vld [vmem:[%s7188_s5 + $0x20] sm:$0xff]   ;;  %v5320_v32 = vld [vmem:[%s7188_s5 + $0x58] sm:$0xff]  }
 0x407   : > { %v3648_v38 = vpack.c.bf16 %v3517_v37, %v3502_v31  ;;  %v5317_v31 = vld [vmem:[%s7188_s5 + $0x28] sm:$0xff]   ;;  %v5321_v3 = vld [vmem:[%s7188_s5 + $0x18] sm:$0xff]   ;;  %v5322_v37 = vld [vmem:[%s7188_s5 + $0x50] sm:$0xff]  }
 0x408   : > { %4951 = vmatpush3.bf16.msra.mxu0 %v3652_v44  ;;  %v5323_v44 = vld [vmem:[%s7188_s5 + $0x10] sm:$0xff]  }
 0x409   : > { %v3471_v58 = vpop.permute.xlu0 %3470  ;;  %4952 = vmatprep.subr.bf16.mxu0 %v5367_v29  ;;  %3666 = vmatprep.subr.bf16.mxu1 %v3648_v38  ;;  %v3616_v42 = vld [vmem:[#allocation3 + $0x100] sm:$0xff]  ;;  %v5324_v38 = vld [vmem:[%s7188_s5 + $0x48] sm:$0xff]  }
 0x40a   : > { %v3473_v47 = vsel %vm713_vm8, %v6881_v57, %v3471_v58  ;;  %3479 = vst.msk [vmem:[#allocation3 + $0xd0] sm:$0xff] %vm3359_vm7, %v3471_v58  ;;  %3667 = vmatpush1.bf16.msra.mxu1 %v3647_v39  ;;  %vm7204_vm8 = vmmov %vm7203_vm10  ;;  %v5325_v39 = vld [vmem:[%s7188_s5 + $0x8] sm:$0xff]   ;;  %v5327_v58 = vld [vmem:[%s7188_s5 + $0x40] sm:$0xff]  }
 0x40d   : > { %v3485_v15 = vpop.permute.xlu0 %3484  ;;  %v3619_v41 = vld [vmem:[#allocation3 + $0x118] sm:$0xff] }
 0x40e   : > { %v3487_v34 = vsel %vm758_vm9, %v6887_v7, %v3485_v15  ;;  %3493 = vst.msk [vmem:[#allocation3 + $0xe8] sm:$0xff] %vm3359_vm7, %v3485_v15  ;;  %v3649_v49 = vpack.c.bf16 %v3619_v41, %v3616_v42  ;;  %v5326_v15 = vld [vmem:[%s7188_s5 + $0x80] sm:$0x3f]  }
 0x40f   : > { %v3645_v52 = vpack.c.bf16 %v3487_v34, %v3473_v47  ;;  %v5328_v47 = vld [vmem:[%s7188_s5] sm:$0xff]   ;;  %v3902_v42 = vand.u32 %v5326_v15, %v6512_v60 }
 0x410   : > { %4953 = vmatpush3.bf16.msra.mxu0 %v3649_v49 }
 0x411   : > { %v3441_v56 = vpop.permute.xlu0 %3440  ;;  %4954 = vmatprep.subr.bf16.mxu0 %v5367_v29  ;;  %3668 = vmatprep.subr.bf16.mxu1 %v3645_v52  ;;  %v3610_v54 = vld [vmem:[#allocation3 + $0xd0] sm:$0xff] }
 0x412   : > { %v3444_v53 = vsel %vm3442_vm3, %v6893_v0, %v3441_v56  ;;  %3450 = vst.msk [vmem:[#allocation3 + $0xa0] sm:$0xff] %vm3359_vm7, %v3441_v56  ;;  %3669 = vmatpush1.bf16.msra.mxu1 %v3644_v6  ;;  %vm4385_vm3 = vcmask 261120  }
 0x415   : > { %v3456_v43 = vpop.permute.xlu0 %3455  ;;  %v3613_v57 = vld [vmem:[#allocation3 + $0xe8] sm:$0xff] }
 0x416   : > { %v3459_v61 = vsel %vm3457_vm4, %v6899_v12, %v3456_v43  ;;  %3465 = vst.msk [vmem:[#allocation3 + $0xb8] sm:$0xff] %vm3359_vm7, %v3456_v43  ;;  %v3646_v7 = vpack.c.bf16 %v3613_v57, %v3610_v54  ;;  %vm4459_vm4 = vcmask 0  }
 0x417   : > { %v3642_v55 = vpack.c.bf16 %v3459_v61, %v3444_v53 }
 0x418   : > { %4955 = vmatpush3.bf16.msra.mxu0 %v3646_v7 }
 0x419   : > { %v3411_v1 = vpop.permute.xlu0 %3410  ;;  %4956 = vmatprep.subr.bf16.mxu0 %v5367_v29  ;;  %3670 = vmatprep.subr.bf16.mxu1 %v3642_v55  ;;  %v3604_v12 = vld [vmem:[#allocation3 + $0xa0] sm:$0xff] }
 0x41a   : > { %v3414_v0 = vsel %vm3412_vm5, %v6905_v2, %v3411_v1  ;;  %3420 = vst.msk [vmem:[#allocation3 + $0x70] sm:$0xff] %vm3359_vm7, %v3411_v1  ;;  %3671 = vmatpush1.bf16.msra.mxu1 %v3641_v18 }
 0x41d   : > { %v3426_v5 = vpop.permute.xlu0 %3425  ;;  %v3607_v9 = vld [vmem:[#allocation3 + $0xb8] sm:$0xff] }
 0x41e   : > { %v3429_v28 = vsel %vm3427_vm6, %v6911_v19, %v3426_v5  ;;  %3435 = vst.msk [vmem:[#allocation3 + $0x88] sm:$0xff] %vm3359_vm7, %v3426_v5  ;;  %v3643_v45 = vpack.c.bf16 %v3607_v9, %v3604_v12  ;;  %v3795_v5 = vld [vmem:[%s7191_s8] sm:$0xff] }
 0x41f   : > { %v3639_v17 = vpack.c.bf16 %v3429_v28, %v3414_v0 }
 0x420   : > { %4957 = vmatpush3.bf16.msra.mxu0 %v3643_v45 }
 0x421   : > { %v3383_v14 = vpop.permute.xlu0 %3382  ;;  %4958 = vmatprep.subr.bf16.mxu0 %v5367_v29  ;;  %3672 = vmatprep.subr.bf16.mxu1 %v3639_v17  ;;  %v3598_v19 = vld [vmem:[#allocation3 + $0x70] sm:$0xff]  ;;  %v3796_v17 = vld [vmem:[%s7191_s8 + $0x8] sm:$0xff] }
 0x422   : > { %v3385_v2 = vsel %vm533_vm13, %v6919_v13, %v3383_v14  ;;  %3391 = vst.msk [vmem:[#allocation3 + $0x40] sm:$0xff] %vm3359_vm7, %v3383_v14  ;;  %3673 = vmatpush1.bf16.msra.mxu1 %v3638_v35  ;;  %vm3996_vm13 = vcmask 547840  }
 0x425   : > { %v3397_v16 = vpop.permute.xlu0 %3396  ;;  %v3601_v24 = vld [vmem:[#allocation3 + $0x88] sm:$0xff] }
 0x426   : > { %v3399_v51 = vsel %vm578_vm14, %v6927_v11, %v3397_v16  ;;  %3405 = vst.msk [vmem:[#allocation3 + $0x58] sm:$0xff] %vm3359_vm7, %v3397_v16  ;;  %v3640_v21 = vpack.c.bf16 %v3601_v24, %v3598_v19 }
 0x427   : > { %v3636_v59 = vpack.c.bf16 %v3399_v51, %v3385_v2 }
 0x428   : > { %4959 = vmatpush3.bf16.msra.mxu0 %v3640_v21 }
 0x429   : > { %v3369_v30 = vpop.permute.xlu0 %3368  ;;  %4960 = vmatprep.subr.bf16.mxu0 %v5367_v29  ;;  %3674 = vmatprep.subr.bf16.mxu1 %v3636_v59  ;;  %v3592_v46 = vld [vmem:[#allocation3 + $0x40] sm:$0xff] }
 0x42a   : > { %v3371_v13 = vsel %vm7204_vm8, %v6935_v4, %v3369_v30  ;;  %3377 = vst.msk [vmem:[#allocation3 + $0x28] sm:$0xff] %vm3359_vm7, %v3369_v30  ;;  %3675 = vmatpush1.bf16.msra.mxu1 %v3635_v10  ;;  %v5331_v30 = vld [vmem:[%s7186_s3 + $0x4] ss:$8 sps:$4 sm:$0xff]  }
 0x42b   : > { %v3633_v11 = vpack.c.bf16 %v3371_v13, %v6790_v63  ;;  %v5313_v63 = vld [vmem:[%s7188_s5 + $0x38] sm:$0xff]  }
 0x42d   : > { %v3595_v50 = vld [vmem:[#allocation3 + $0x58] sm:$0xff]  ;;  %3676 = vmatprep.subr.bf16.mxu1 %v3633_v11 }
 0x42e   : > { %v3637_v4 = vpack.c.bf16 %v3595_v50, %v3592_v46  ;;  %3677 = vmatpush1.bf16.msra.mxu1 %v3632_v26 }
 0x42f   : > { %4856 = vmatprep.subr.bf16.mxu1 %v5312_v25 }
 0x430   : > { %4961 = vmatpush3.bf16.msra.mxu0 %v3637_v4 }
 0x431   : > { %4962 = vmatprep.subr.bf16.mxu0 %v5367_v29  ;;  %v3589_v8 = vld [vmem:[#allocation3 + $0x28] sm:$0xff]  ;;  %3695 = vmatmul.mubr.bf16.vlgmr.msra.gmra.mxu1 %v5311_v27 }
 0x432   : > { %v3634_v62 = vpack.c.bf16 %v3589_v8, %v3586_v40  ;;  %4857 = vmatpush3.bf16.msra.mxu1 %v5313_v63 }
 0x433   : > { %4858 = vmatprep.subr.bf16.mxu1 %v5314_v33 }
 0x434   : > { %4963 = vmatpush3.bf16.msra.mxu0 %v3634_v62 }
 0x435   : > { %4968 = vmatprep.subr.bf16.mxu0 %v5367_v29 }
 0x436   : > { %4859 = vmatpush3.bf16.msra.mxu1 %v5315_v22 }
 0x437   : > { %4965 = vmatmul.mubr.bf16.vlgmr.msra.gmra.mxu0 %v5311_v27  ;;  %4860 = vmatprep.subr.bf16.mxu1 %v5316_v48 }
 0x438   : > { %4970 = vmatprep.mubr.msk.bf16.mxu0 %vm5368_vm15, %v5367_v29  ;;  %4969 = vmatpush3.bf16.msra.mxu0 %v3902_v42 }
 0x43a   : > { %4861 = vmatpush3.bf16.msra.mxu1 %v5317_v31 }
 0x43b   : > { %4862 = vmatprep.subr.bf16.mxu1 %v5318_v23 }
 0x43e   : > { %4863 = vmatpush3.bf16.msra.mxu1 %v5319_v20 }
 0x43f   : > { %4864 = vmatprep.subr.bf16.mxu1 %v5320_v32 }
 0x442   : > { %4865 = vmatpush3.bf16.msra.mxu1 %v5321_v3 }
 0x443   : > { %4866 = vmatprep.subr.bf16.mxu1 %v5322_v37 }
 0x446   : > { %4867 = vmatpush3.bf16.msra.mxu1 %v5323_v44 }
 0x447   : > { %4868 = vmatprep.subr.bf16.mxu1 %v5324_v38 }
 0x44a   : > { %4869 = vmatpush3.bf16.msra.mxu1 %v5325_v39 }
 0x44b   : > { %4870 = vmatprep.subr.bf16.mxu1 %v5327_v58 }
 0x44e   : > { %4871 = vmatpush3.bf16.msra.mxu1 %v5328_v47 }
 0x4f1   : > { %v3696_v41 = vpop.f32.mrf.mxu1 }
 0x4f3   : > { %v3698_v34 = vpop.f32.mrf.mxu1 }
 0x4f5   : > { %v3700_v49 = vpop.f32.mrf.mxu1 }
 0x4f6   : > { %v3758_v43 = vpack.c.bf16 %v3700_v49, %v3696_v41 }
 0x4f7   : > { %v3739_v52 = vpop.f32.mrf.mxu0  ;;  %v3702_v6 = vpop.f32.mrf.mxu1 }
 0x4f8   : > { %3748 = vst.msk [vmem:[#allocation6 + $0x10] sm:$0xff] %vm3359_vm7, %v3739_v52  ;;  %v3759_v56 = vpack.c.bf16 %v3702_v6, %v3698_v34 }
 0x4f9   : > { %v4966_v53 = vpop.f32.mrf.mxu0 }
 0x4fa   : > { %3936 = vmatprep.mubr.bf16.mxu1 %v3759_v56 }
 0x4fb   : > { %v3742_v54 = vpop.f32.mrf.mxu0  ;;  %3937 = vmatmul.mubr.bf16.vlgmr.msra.gmra.mxu1 %v3758_v43 }
 0x4fc   : > { %3751 = vst.msk [vmem:[#allocation6 + $0x28] sm:$0xff] %vm3359_vm7, %v3742_v54 }
 0x4fd   : > { %v4967_v57 = vpop.f32.mrf.mxu0 }
 0x4ff   : > { %v3754_v61 = vld [vmem:[#allocation6 + $0x10] sm:$0xff] }
 0x503   : > { %v3757_v7 = vld [vmem:[#allocation6 + $0x28] sm:$0xff] }
 0x504   : > { %v3760_v60 = vpack.c.bf16 %v3757_v7, %v3754_v61 }
 0x506   : > { %4971 = vmatmul.mubr.msk.bf16.vlgmr.msra.gmra.mxu0 %vm3359_vm7, %v3760_v60  ;;  %vm4294_vm7 = vcmask 1040384  }
 0x507   : > { %4221 = vmatprep.mubr.bf16.mxu0 %v5331_v30 }
 0x5bb   : > { %v4872_v55 = vpop.f32.mrf.mxu1 }
 0x5bd   : > { %v4873_v18 = vpop.f32.mrf.mxu1 }
 0x5be   : > { %v4874_v0 = vadd.f32 %v4873_v18, %v4872_v55 }
 0x5bf   : > { %v4875_v1 = vpop.f32.mrf.mxu1 }
 0x5c0   : > { %v3939_v9 = vadd.f32 %v4874_v0, %v3795_v5 }
 0x5c1   : > { %v4876_v12 = vpop.f32.mrf.mxu1 }
 0x5c2   : > { %v4877_v28 = vadd.f32 %v4876_v12, %v4875_v1 }
 0x5c4   : > { %v3942_v16 = vadd.f32 %v4877_v28, %v3796_v17 }
 0x5c6   : > { %v3979_v45 = vpop.f32.mrf.mxu0 }
 0x5c7   : > { %v3980_v35 = vadd.f32 %v3979_v45, %v3939_v9 }
 0x5c8   : > { %v4972_v14 = vpop.f32.mrf.mxu0 }
 0x5c9   : > { %vm3986_vm9 = vcmp.ge.f32.partialorder %v3980_v35, 0.0  ;;  %v3988_v2 = vmul.f32 0.2, %v3980_v35 }
 0x5ca   : > { %v3982_v19 = vpop.f32.mrf.mxu0 }
 0x5cb   : > { %v3990_v24 = vsel %vm3986_vm9, %v3980_v35, %v3988_v2  ;;  %v3983_v51 = vadd.f32 %v3982_v19, %v3942_v16 }
 0x5cc   : > { %v4973_v21 = vpop.f32.mrf.mxu0  ;;  %4113 = vrot.lane.b32.xlu0 %v3990_v24, %s5380_s14  ;;  %3997 = vst.msk [vmem:[#allocation4] sm:$0xff] %vm3996_vm13, %v3990_v24 }
 0x5cd   : > { %vm3987_vm14 = vcmp.ge.f32.partialorder %v3983_v51, 0.0  ;;  %v3989_v59 = vmul.f32 0.2, %v3983_v51 }
 0x5cf   : > { %v3991_v10 = vsel %vm3987_vm14, %v3983_v51, %v3989_v59 }
 0x5d0   : > { %4115 = vrot.lane.b32.xlu1 %v3991_v10, %s5380_s14  ;;  %4049 = vrot.lane.b32.xlu0 %v3990_v24, %s5381_s17  ;;  %3998 = vst.msk [vmem:[#allocation4 + $0x8] sm:$0xff] %vm3996_vm13, %v3991_v10 }
 0x5d4   : > { %4051 = vrot.lane.b32.xlu1 %v3991_v10, %s5381_s17  ;;  %4105 = vrot.lane.b32.xlu0 %v3990_v24, %s5382_s18 }
 0x5d8   : > { %4107 = vrot.lane.b32.xlu1 %v3991_v10, %s5382_s18  ;;  %4041 = vrot.lane.b32.xlu0 %v3990_v24, %s5383_s19 }
 0x5dc   : > { %4043 = vrot.lane.b32.xlu1 %v3991_v10, %s5383_s19  ;;  %4097 = vrot.lane.b32.xlu0 %v3990_v24, %s5384_s23 }
 0x5e0   : > { %4099 = vrot.lane.b32.xlu1 %v3991_v10, %s5384_s23  ;;  %4033 = vrot.lane.b32.xlu0 %v3990_v24, %s5385_s24 }
 0x5e4   : > { %4035 = vrot.lane.b32.xlu1 %v3991_v10, %s5385_s24  ;;  %4089 = vrot.lane.b32.xlu0 %v3990_v24, %s5386_s20 }
 0x5e8   : > { %4091 = vrot.lane.b32.xlu1 %v3991_v10, %s5386_s20  ;;  %4025 = vrot.lane.b32.xlu0 %v3990_v24, %s5387_s21 }
 0x5ec   : > { %4027 = vrot.lane.b32.xlu1 %v3991_v10, %s5387_s21  ;;  %4081 = vrot.lane.b32.xlu0 %v3990_v24, %s5388_s22 }
 0x5f0   : > { %4083 = vrot.lane.b32.xlu1 %v3991_v10, %s5388_s22  ;;  %4017 = vrot.lane.b32.xlu0 %v3990_v24, %s5364_s29 }
 0x5f4   : > { %4019 = vrot.lane.b32.xlu1 %v3991_v10, %s5364_s29  ;;  %4073 = vrot.lane.b32.xlu0 %v3990_v24, %s5389_s25 }
 0x5f8   : > { %4075 = vrot.lane.b32.xlu1 %v3991_v10, %s5389_s25  ;;  %4009 = vrot.lane.b32.xlu0 %v3990_v24, %s5363_s12 }
 0x5fc   : > { %4011 = vrot.lane.b32.xlu1 %v3991_v10, %s5363_s12  ;;  %4065 = vrot.lane.b32.xlu0 %v3990_v24, %s5376_s15 }
 0x600   : > { %4067 = vrot.lane.b32.xlu1 %v3991_v10, %s5376_s15  ;;  %4001 = vrot.lane.b32.xlu0 %v3990_v24, %s7202_s30 }
 0x604   : > { %4003 = vrot.lane.b32.xlu1 %v3991_v10, %s7202_s30  ;;  %4057 = vrot.lane.b32.xlu0 %v3990_v24, %s5377_s16  ;;  %s438_s30 = scalar_lea.vmem %s7196_s13, %s7206_s28 }
 0x608   : > { %4059 = vrot.lane.b32.xlu1 %v3991_v10, %s5377_s16 }
 0x63e   : > { %v4114_v13 = vpop.permute.xlu0 %4113 }
 0x63f   : > { %4119 = vst.msk [vmem:[#allocation4 + $0xf0] sm:$0xff] %vm3996_vm13, %v4114_v13 }
 0x642   : > { %v4116_v11 = vpop.permute.xlu1 %4115  ;;  %v4050_v25 = vpop.permute.xlu0 %4049 }
 0x643   : > { %4120 = vst.msk [vmem:[#allocation4 + $0xf8] sm:$0xff] %vm3996_vm13, %v4116_v11  ;;  %4055 = vst.msk [vmem:[#allocation4 + $0x70] sm:$0xff] %vm3996_vm13, %v4050_v25 }
 0x646   : > { %v4052_v26 = vpop.permute.xlu1 %4051  ;;  %v4106_v46 = vpop.permute.xlu0 %4105  ;;  %v4151_v4 = vld [vmem:[#allocation4 + $0xf0] sm:$0xff] }
 0x647   : > { %4056 = vst.msk [vmem:[#allocation4 + $0x78] sm:$0xff] %vm3996_vm13, %v4052_v26  ;;  %4111 = vst.msk [vmem:[#allocation4 + $0xe0] sm:$0xff] %vm3996_vm13, %v4106_v46 }
 0x64a   : > { %v4108_v50 = vpop.permute.xlu1 %4107  ;;  %v4042_v27 = vpop.permute.xlu0 %4041  ;;  %v4152_v63 = vld [vmem:[#allocation4 + $0xf8] sm:$0xff]  ;;  %v4135_v62 = vld [vmem:[#allocation4 + $0x70] sm:$0xff] }
 0x64b   : > { %4112 = vst.msk [vmem:[#allocation4 + $0xe8] sm:$0xff] %vm3996_vm13, %v4108_v50  ;;  %4047 = vst.msk [vmem:[#allocation4 + $0x60] sm:$0xff] %vm3996_vm13, %v4042_v27  ;;  %v4168_v33 = vpack.c.bf16 %v4152_v63, %v4151_v4 }
 0x64d   : > { %4880 = vmatprep.subr.bf16.mxu0 %v4168_v33 }
 0x64e   : > { %v4044_v40 = vpop.permute.xlu1 %4043  ;;  %v4098_v8 = vpop.permute.xlu0 %4097  ;;  %v4136_v22 = vld [vmem:[#allocation4 + $0x78] sm:$0xff]  ;;  %v4149_v20 = vld [vmem:[#allocation4 + $0xe0] sm:$0xff] }
 0x64f   : > { %4048 = vst.msk [vmem:[#allocation4 + $0x68] sm:$0xff] %vm3996_vm13, %v4044_v40  ;;  %4103 = vst.msk [vmem:[#allocation4 + $0xd0] sm:$0xff] %vm3996_vm13, %v4098_v8  ;;  %v4160_v48 = vpack.c.bf16 %v4136_v22, %v4135_v62  ;;  %v4122_v40 = vld [vmem:[#allocation4 + $0x8] sm:$0xff] }
 0x651   : > { %4881 = vmatpush3.bf16.msra.mxu0 %v4160_v48  ;;  %v4121_v48 = vld [vmem:[#allocation4] sm:$0xff] }
 0x652   : > { %v4100_v31 = vpop.permute.xlu1 %4099  ;;  %v4034_v23 = vpop.permute.xlu0 %4033  ;;  %v4150_v32 = vld [vmem:[#allocation4 + $0xe8] sm:$0xff]  ;;  %v4133_v38 = vld [vmem:[#allocation4 + $0x60] sm:$0xff] }
 0x653   : > { %4104 = vst.msk [vmem:[#allocation4 + $0xd8] sm:$0xff] %vm3996_vm13, %v4100_v31  ;;  %4039 = vst.msk [vmem:[#allocation4 + $0x50] sm:$0xff] %vm3996_vm13, %v4034_v23  ;;  %v4167_v3 = vpack.c.bf16 %v4150_v32, %v4149_v20  ;;  %v4153_v31 = vpack.c.bf16 %v4122_v40, %v4121_v48  ;;  %v5329_v23 = vld [vmem:[%s7186_s3] ss:$8 sps:$4 sm:$0xff]   ;;  %v5332_v20 = vld [vmem:[%s7186_s3 + $0x14] ss:$8 sps:$4 sm:$0xff]  }
 0x654   : > { %v5334_v32 = vld [vmem:[%s7186_s3 + $0x10] ss:$8 sps:$4 sm:$0xff]   ;;  %v4362_v40 = vld [vmem:[%s7193_s10] sm:$0xff] }
 0x655   : > { %4882 = vmatprep.subr.bf16.mxu0 %v4167_v3  ;;  %v5335_v3 = vld [vmem:[%s7189_s6 + $0x20] ss:$0 sps:$4 sm:$0x33]  }
 0x656   : > { %v4036_v37 = vpop.permute.xlu1 %4035  ;;  %v4090_v44 = vpop.permute.xlu0 %4089  ;;  %v4134_v39 = vld [vmem:[#allocation4 + $0x68] sm:$0xff]  ;;  %v4147_v42 = vld [vmem:[#allocation4 + $0xd0] sm:$0xff] }
 0x657   : > { %4040 = vst.msk [vmem:[#allocation4 + $0x58] sm:$0xff] %vm3996_vm13, %v4036_v37  ;;  %4095 = vst.msk [vmem:[#allocation4 + $0xc0] sm:$0xff] %vm3996_vm13, %v4090_v44  ;;  %v4159_v58 = vpack.c.bf16 %v4134_v39, %v4133_v38  ;;  %v4296_v37 = vsel %vm4294_vm7, 4294967295, %v5369_v36  ;;  %v5336_v39 = vld [vmem:[%s7189_s6 + $0x18] sm:$0xff]   ;;  %v5338_v36 = vld [vmem:[%s7189_s6 + $0x8] sm:$0xff]  }
 0x658   : > { %v4297_v44 = vsel %vm4295_vm11, %v4296_v37, 0 }
 0x659   : > { %4883 = vmatpush3.bf16.msra.mxu0 %v4159_v58  ;;  %v4299_v38 = vand.u32 %v5335_v3, %v4297_v44  ;;  %v5337_v58 = vld [vmem:[%s7189_s6 + $0x10] sm:$0xff]   ;;  %v4384_v3 = vld [vmem:[#allocation8] sm:$0x1] }
 0x65a   : > { %v4092_v47 = vpop.permute.xlu1 %4091  ;;  %v4026_v15 = vpop.permute.xlu0 %4025  ;;  %v4148_v41 = vld [vmem:[#allocation4 + $0xd8] sm:$0xff]  ;;  %v4131_v6 = vld [vmem:[#allocation4 + $0x50] sm:$0xff] }
 0x65b   : > { %4096 = vst.msk [vmem:[#allocation4 + $0xc8] sm:$0xff] %vm3996_vm13, %v4092_v47  ;;  %4031 = vst.msk [vmem:[#allocation4 + $0x40] sm:$0xff] %vm3996_vm13, %v4026_v15  ;;  %v4166_v34 = vpack.c.bf16 %v4148_v41, %v4147_v42  ;;  %4974 = vmatprep.subr.bf16.mxu1 %v4299_v38  ;;  %v5339_v47 = vld [vmem:[%s7189_s6] sm:$0xff]  }
 0x65c   : > { %4975 = vmatpush3.bf16.msra.mxu1 %v4299_v38 }
 0x65d   : > { %4884 = vmatprep.subr.bf16.mxu0 %v4166_v34  ;;  %4976 = vmatprep.subr.bf16.mxu1 %v5336_v39 }
 0x65e   : > { %v4028_v49 = vpop.permute.xlu1 %4027  ;;  %v4082_v52 = vpop.permute.xlu0 %4081  ;;  %v4132_v56 = vld [vmem:[#allocation4 + $0x58] sm:$0xff]  ;;  %v4145_v57 = vld [vmem:[#allocation4 + $0xc0] sm:$0xff] }
 0x65f   : > { %4032 = vst.msk [vmem:[#allocation4 + $0x48] sm:$0xff] %vm3996_vm13, %v4028_v49  ;;  %4087 = vst.msk [vmem:[#allocation4 + $0xb0] sm:$0xff] %vm3996_vm13, %v4082_v52  ;;  %v4158_v53 = vpack.c.bf16 %v4132_v56, %v4131_v6 }
 0x660   : > { %4977 = vmatpush3.bf16.msra.mxu1 %v5336_v39 }
 0x661   : > { %4885 = vmatpush3.bf16.msra.mxu0 %v4158_v53  ;;  %4978 = vmatprep.subr.bf16.mxu1 %v5337_v58 }
 0x662   : > { %v4084_v43 = vpop.permute.xlu1 %4083  ;;  %v4018_v54 = vpop.permute.xlu0 %4017  ;;  %v4146_v61 = vld [vmem:[#allocation4 + $0xc8] sm:$0xff]  ;;  %v4129_v18 = vld [vmem:[#allocation4 + $0x40] sm:$0xff] }
 0x663   : > { %4088 = vst.msk [vmem:[#allocation4 + $0xb8] sm:$0xff] %vm3996_vm13, %v4084_v43  ;;  %4023 = vst.msk [vmem:[#allocation4 + $0x30] sm:$0xff] %vm3996_vm13, %v4018_v54  ;;  %v4165_v7 = vpack.c.bf16 %v4146_v61, %v4145_v57 }
 0x664   : > { %4979 = vmatpush3.bf16.msra.mxu1 %v5337_v58 }
 0x665   : > { %4886 = vmatprep.subr.bf16.mxu0 %v4165_v7  ;;  %4980 = vmatprep.subr.bf16.mxu1 %v5338_v36 }
 0x666   : > { %v4020_v60 = vpop.permute.xlu1 %4019  ;;  %v4074_v55 = vpop.permute.xlu0 %4073  ;;  %v4130_v1 = vld [vmem:[#allocation4 + $0x48] sm:$0xff]  ;;  %v4143_v9 = vld [vmem:[#allocation4 + $0xb0] sm:$0xff] }
 0x667   : > { %4024 = vst.msk [vmem:[#allocation4 + $0x38] sm:$0xff] %vm3996_vm13, %v4020_v60  ;;  %4079 = vst.msk [vmem:[#allocation4 + $0xa0] sm:$0xff] %vm3996_vm13, %v4074_v55  ;;  %v4157_v0 = vpack.c.bf16 %v4130_v1, %v4129_v18 }
 0x668   : > { %4981 = vmatpush3.bf16.msra.mxu1 %v5338_v36 }
 0x669   : > { %4887 = vmatpush3.bf16.msra.mxu0 %v4157_v0  ;;  %4982 = vmatprep.subr.bf16.mxu1 %v5339_v47  ;;  %v4259_v0 = vld [vmem:[%s7192_s9 + $0x10] sm:$0xff] }
 0x66a   : > { %v4076_v5 = vpop.permute.xlu1 %4075  ;;  %v4010_v12 = vpop.permute.xlu0 %4009  ;;  %v4144_v28 = vld [vmem:[#allocation4 + $0xb8] sm:$0xff]  ;;  %v4127_v14 = vld [vmem:[#allocation4 + $0x30] sm:$0xff] }
 0x66b   : > { %4080 = vst.msk [vmem:[#allocation4 + $0xa8] sm:$0xff] %vm3996_vm13, %v4076_v5  ;;  %4015 = vst.msk [vmem:[#allocation4 + $0x20] sm:$0xff] %vm3996_vm13, %v4010_v12  ;;  %v4164_v45 = vpack.c.bf16 %v4144_v28, %v4143_v9  ;;  %v4257_v28 = vld [vmem:[%s7192_s9] sm:$0xff] }
 0x66c   : > { %4983 = vmatpush3.bf16.msra.mxu1 %v5339_v47 }
 0x66d   : > { %4888 = vmatprep.subr.bf16.mxu0 %v4164_v45  ;;  %4988 = vmatprep.subr.mxu1 %v5367_v29  ;;  %v4260_v45 = vld [vmem:[%s7192_s9 + $0x18] sm:$0xff] }
 0x66e   : > { %v4012_v17 = vpop.permute.xlu1 %4011  ;;  %v4066_v35 = vpop.permute.xlu0 %4065  ;;  %v4128_v2 = vld [vmem:[#allocation4 + $0x38] sm:$0xff]  ;;  %v4141_v51 = vld [vmem:[#allocation4 + $0xa0] sm:$0xff] }
 0x66f   : > { %4016 = vst.msk [vmem:[#allocation4 + $0x28] sm:$0xff] %vm3996_vm13, %v4012_v17  ;;  %4071 = vst.msk [vmem:[#allocation4 + $0x90] sm:$0xff] %vm3996_vm13, %v4066_v35  ;;  %v4156_v16 = vpack.c.bf16 %v4128_v2, %v4127_v14  ;;  %v4364_v35 = vld [vmem:[%s7193_s10 + $0x10] sm:$0xff]  ;;  %v4258_v2 = vld [vmem:[%s7192_s9 + $0x8] sm:$0xff] }
 0x671   : > { %4889 = vmatpush3.bf16.msra.mxu0 %v4156_v16 }
 0x672   : > { %v4068_v19 = vpop.permute.xlu1 %4067  ;;  %v4002_v24 = vpop.permute.xlu0 %4001  ;;  %v4142_v21 = vld [vmem:[#allocation4 + $0xa8] sm:$0xff]  ;;  %v4125_v13 = vld [vmem:[#allocation4 + $0x20] sm:$0xff] }
 0x673   : > { %4072 = vst.msk [vmem:[#allocation4 + $0x98] sm:$0xff] %vm3996_vm13, %v4068_v19  ;;  %4007 = vst.msk [vmem:[#allocation4 + $0x10] sm:$0xff] %vm3996_vm13, %v4002_v24  ;;  %v4163_v59 = vpack.c.bf16 %v4142_v21, %v4141_v51 }
 0x675   : > { %4890 = vmatprep.subr.bf16.mxu0 %v4163_v59 }
 0x676   : > { %v4004_v10 = vpop.permute.xlu1 %4003  ;;  %v4058_v30 = vpop.permute.xlu0 %4057  ;;  %v4126_v11 = vld [vmem:[#allocation4 + $0x28] sm:$0xff]  ;;  %v4139_v46 = vld [vmem:[#allocation4 + $0x90] sm:$0xff] }
 0x677   : > { %4008 = vst.msk [vmem:[#allocation4 + $0x18] sm:$0xff] %vm3996_vm13, %v4004_v10  ;;  %4063 = vst.msk [vmem:[#allocation4 + $0x80] sm:$0xff] %vm3996_vm13, %v4058_v30  ;;  %v4155_v25 = vpack.c.bf16 %v4126_v11, %v4125_v13  ;;  %v4365_v30 = vld [vmem:[%s7193_s10 + $0x18] sm:$0xff] }
 0x679   : > { %4891 = vmatpush3.bf16.msra.mxu0 %v4155_v25 }
 0x67a   : > { %v4060_v26 = vpop.permute.xlu1 %4059  ;;  %v4140_v50 = vld [vmem:[#allocation4 + $0x98] sm:$0xff]  ;;  %v4123_v4 = vld [vmem:[#allocation4 + $0x10] sm:$0xff] }
 0x67b   : > { %4064 = vst.msk [vmem:[#allocation4 + $0x88] sm:$0xff] %vm3996_vm13, %v4060_v26  ;;  %v4162_v27 = vpack.c.bf16 %v4140_v50, %v4139_v46  ;;  %v4363_v46 = vld [vmem:[%s7193_s10 + $0x8] sm:$0xff] }
 0x67d   : > { %4892 = vmatprep.subr.bf16.mxu0 %v4162_v27 }
 0x67e   : > { %v4124_v63 = vld [vmem:[#allocation4 + $0x18] sm:$0xff]  ;;  %v4137_v8 = vld [vmem:[#allocation4 + $0x80] sm:$0xff] }
 0x67f   : > { %v4154_v33 = vpack.c.bf16 %v4124_v63, %v4123_v4 }
 0x681   : > { %4893 = vmatpush3.bf16.msra.mxu0 %v4154_v33 }
 0x682   : > { %v4138_v62 = vld [vmem:[#allocation4 + $0x88] sm:$0xff] }
 0x683   : > { %v4161_v22 = vpack.c.bf16 %v4138_v62, %v4137_v8 }
 0x685   : > { %4894 = vmatprep.subr.bf16.mxu0 %v4161_v22 }
 0x686   : > { %4895 = vmatpush3.bf16.msra.mxu0 %v4153_v31 }
 0x689   : > { %4222 = vmatmul.mubr.bf16.vlgmr.msra.gmra.mxu0 %v5329_v23 }
 0x68a   : > { %4229 = vmatprep.mubr.bf16.mxu0 %v5332_v20  ;;  %v4383_v20 = vld [vmem:[%s7194_s11] sm:$0x1] }
 0x691   : > { %4230 = vmatmul.mubr.bf16.gmra.mxu0 %v5334_v32 }
 0x749   : > { %v4896_v15 = vpop.f32.mrf.mxu0 }
 0x74b   : > { %v4897_v42 = vpop.f32.mrf.mxu0 }
 0x74c   : > { %v4898_v41 = vadd.f32 %v4897_v42, %v4896_v15 }
 0x74d   : > { %v4899_v34 = vpop.f32.mrf.mxu0 }
 0x74e   : > { %4238 = vst.msk [vmem:[#allocation7] sm:$0xff] %vm3996_vm13, %v4898_v41 }
 0x74f   : > { %v4900_v49 = vpop.f32.mrf.mxu0 }
 0x750   : > { %v4901_v52 = vadd.f32 %v4900_v49, %v4899_v34 }
 0x751   : > { %v4902_v6 = vpop.f32.mrf.mxu0 }
 0x752   : > { %4239 = vst.msk [vmem:[#allocation7 + $0x8] sm:$0xff] %vm3996_vm13, %v4901_v52 }
 0x753   : > { %v4903_v56 = vpop.f32.mrf.mxu0 }
 0x754   : > { %v4904_v53 = vadd.f32 %v4903_v56, %v4902_v6 }
 0x755   : > { %v4905_v43 = vpop.f32.mrf.mxu0  ;;  %v4242_v61 = vld [vmem:[#allocation7] sm:$0xff] }
 0x756   : > { %4240 = vst.msk [vmem:[#allocation7 + $0x10] sm:$0xff] %vm3996_vm13, %v4904_v53 }
 0x757   : > { %v4906_v54 = vpop.f32.mrf.mxu0 }
 0x758   : > { %v4907_v57 = vadd.f32 %v4906_v54, %v4905_v43 }
 0x759   : > { %v4243_v7 = vld [vmem:[#allocation7 + $0x8] sm:$0xff] }
 0x75a   : > { %4241 = vst.msk [vmem:[#allocation7 + $0x18] sm:$0xff] %vm3996_vm13, %v4907_v57  ;;  %v4246_v60 = vpack.c.bf16 %v4243_v7, %v4242_v61 }
 0x75c   : > { %4984 = vmatprep.mubr.msk.bf16.mxu1 %vm3996_vm13, %v4246_v60 }
 0x75d   : > { %v4244_v55 = vld [vmem:[#allocation7 + $0x10] sm:$0xff] }
 0x761   : > { %v4245_v18 = vld [vmem:[#allocation7 + $0x18] sm:$0xff] }
 0x762   : > { %v4247_v1 = vpack.c.bf16 %v4245_v18, %v4244_v55 }
 0x764   : > { %4985 = vmatmul.mubr.msk.bf16.vlgmr.msra.gmra.mxu1 %vm3996_vm13, %v4247_v1 }
 0x765   : > { %4996 = vmatprep.mubr.msk.f32.mxu1 %vm5368_vm15, %v5367_v29  ;;  %vm4370_vm15 = vcmask 130048  }
 0x824   : > { %v4986_v5 = vpop.f32.mrf.mxu1 }
 0x825   : > { %v4344_v12 = vadd.f32 %v4986_v5, %v4259_v0 }
 0x826   : > { %v4335_v9 = vpop.f32.mrf.mxu1 }
 0x827   : > { %vm4352_vm12 = vcmp.ge.f32.partialorder %v4344_v12, 0.0  ;;  %v4356_v17 = vmul.f32 0.2, %v4344_v12  ;;  %v4336_v16 = vadd.f32 %v4335_v9, %v4257_v28 }
 0x828   : > { %v4987_v14 = vpop.f32.mrf.mxu1 }
 0x829   : > { %v4347_v19 = vadd.f32 %v4987_v14, %v4260_v45  ;;  %v4360_v24 = vsel %vm4352_vm12, %v4344_v12, %v4356_v17  ;;  %v4354_v11 = vmul.f32 0.2, %v4336_v16  ;;  %vm4350_vm2 = vcmp.ge.f32.partialorder %v4336_v16, 0.0 }
 0x82a   : > { %v4338_v51 = vpop.f32.mrf.mxu1  ;;  %v4368_v21 = vmul.f32 %v4364_v35, %v4360_v24 }
 0x82b   : > { %vm4353_vm0 = vcmp.ge.f32.partialorder %v4347_v19, 0.0  ;;  %v4357_v59 = vmul.f32 0.2, %v4347_v19  ;;  %v4339_v10 = vadd.f32 %v4338_v51, %v4258_v2  ;;  %v4358_v33 = vsel %vm4350_vm2, %v4336_v16, %v4354_v11 }
 0x82c   : > { %v4377_v13 = vsel %vm4370_vm15, %v4368_v21, 0.0  ;;  %v4366_v62 = vmul.f32 %v4362_v40, %v4358_v33 }
 0x82d   : > { %vm4351_vm1 = vcmp.ge.f32.partialorder %v4339_v10, 0.0  ;;  %v4355_v25 = vmul.f32 0.2, %v4339_v10  ;;  %4378 = vadd.xlane.f32.xlu1 %v4377_v13  ;;  %v4361_v26 = vsel %vm4353_vm0, %v4347_v19, %v4357_v59 }
 0x82e   : > { %v4369_v50 = vmul.f32 %v4365_v30, %v4361_v26  ;;  %v4371_v22 = vsel %vm4370_vm15, %v4366_v62, 0.0 }
 0x82f   : > { %v4359_v27 = vsel %vm4351_vm1, %v4339_v10, %v4355_v25 }
 0x830   : > { %v4380_v4 = vsel %vm4370_vm15, %v4369_v50, 0.0  ;;  %v4367_v63 = vmul.f32 %v4363_v46, %v4359_v27 }
 0x831   : > { %4381 = vadd.xlane.f32.xlu0 %v4380_v4 }
 0x832   : > { %v4374_v8 = vsel %vm4370_vm15, %v4367_v63, 0.0 }
 0x835   : > { %4375 = vadd.xlane.f32.xlu0 %v4374_v8 }
 0x839   : > { %4372 = vadd.xlane.f32.xlu0 %v4371_v22 }
 0x8b6   : > { %v4379_v31 = vpop.xlane.xlu1 %4378 }
 0x8ba   : > { %v4382_v48 = vpop.xlane.xlu0 %4381 }
 0x8bb   : > { %4989 = vmatpush3.msra.mxu1 %v4382_v48 }
 0x8bc   : > { %4990 = vmatprep.subr.mxu1 %v5367_v29 }
 0x8bd   : > { %4991 = vmatpush3.msra.mxu1 %v4379_v31 }
 0x8be   : > { %4992 = vmatprep.subr.mxu1 %v5367_v29  ;;  %v4376_v23 = vpop.xlane.xlu0 %4375 }
 0x8bf   : > { %4993 = vmatpush3.msra.mxu1 %v4376_v23 }
 0x8c0   : > { %4994 = vmatprep.subr.mxu1 %v5367_v29 }
 0x8c2   : > { %v4373_v32 = vpop.xlane.xlu0 %4372 }
 0x8c3   : > { %4995 = vmatpush3.msra.mxu1 %v4373_v32 }
 0x8c4   : > { %4997 = vmatmul.mubr.msk.f32.vlgmr.msra.gmra.mxu1 %vm4385_vm3, %v4383_v20 }
 0x984   : > { %v4455_v37 = vpop.f32.mrf.mxu1 }
 0x985   : > { %v4456_v44 = vadd.f32 %v4455_v37, %v4384_v3 }
 0x986   : > { %v4998_v38 = vpop.f32.mrf.mxu1 }
 0x987   : > { %4460 = vst.msk [vmem:[%s438_s30] sm:$0x1] %vm4459_vm4, %v4456_v44 }
 0x988 PF: > { %s25_s27 = sadd.s32 1, %s5349_s27  }
 0x989   : > { %p22_p4 = scmp.ge.s32.totalorder %s25_s27, 4  }
 0x98b   :  { %24 = sbr.rel (!%p22_p4) target bundleno = 3 (0x3), region = 102 }

</bundles_post_ra>
